<compile_context>
chip_gen: v7x
topology: tpu7x:2x2x1
jax: 0.10.0
libtpu: 0.0.40
codegen_flags: <defaults>
</compile_context>

<pallas_src>
import functools

import jax
import jax.numpy as jnp
from jax.experimental import pallas as pl
from jax.experimental.pallas import tpu as pltpu

# Tap order shared by kernel, weight layout, host mask builder and reference.
_TAPS = tuple((dy, dx) for dy in (-1, 0, 1) for dx in (-1, 0, 1))


# ------------------------------ fused kernel --------------------------------

def _backbone_kernel(x_ref, m_ref, ws_ref, bs_ref, w1_ref, b1_ref,
                     w2_ref, b2_ref, w3_ref, b3_ref, o_ref, *, H, W, B):
    """One batch tile per grid step: stem 3x3 -> 1x1 -> 3x3 -> 1x1 + residual
    -> ReLU -> global avg pool.  Activations are (C, B*H*W): channels on
    sublanes, batch*spatial lane-dense; only pooled features go back to HBM."""
    S = H * W
    L = B * S
    c_feat = ws_ref.shape[0]

    x = x_ref[...]            # (C_in_pad, L) f32
    masks = m_ref[...]        # (9, L) f32, grid-invariant (VMEM resident)

    def conv3x3(a, w_r, b_r):
        # 'same' 3x3 conv as ONE im2col matmul: patches (9*Cin, L) built from
        # XLU lane rolls of the flat batch*spatial axis + precomputed masks.
        pieces = []
        for t, (dy, dx) in enumerate(_TAPS):
            off = dy * W + dx
            shifted = a if off == 0 else pltpu.roll(a, (-off) % L, axis=1)
            pieces.append(shifted * masks[t])
        patches = jnp.concatenate(pieces, axis=0).astype(jnp.bfloat16)
        y = jnp.dot(w_r[...], patches, preferred_element_type=jnp.float32)
        return y + b_r[...]

    def conv1x1(a, w_r, b_r):
        y = jnp.dot(w_r[...], a.astype(jnp.bfloat16),
                    preferred_element_type=jnp.float32)
        return y + b_r[...]

    stem = jnp.maximum(conv3x3(x, ws_ref, bs_ref), 0.0)          # (Cf, L)
    h1 = jnp.maximum(conv1x1(stem, w1_ref, b1_ref), 0.0)         # (Cm, L)
    h2 = jnp.maximum(conv3x3(h1, w2_ref, b2_ref), 0.0)           # (Cm, L)
    y = jnp.maximum(conv1x1(h2, w3_ref, b3_ref) + stem, 0.0)     # (Cf, L)

    # AdaptiveAvgPool2d((1, 1)) per image + Identity head.
    pooled = jnp.sum(y.reshape(c_feat, B, S), axis=2) * (1.0 / S)  # (Cf, B)
    o_ref[...] = pooled.T                                          # (B, Cf)


# ------------------------------ forward wrapper ------------------------------

def _pick_batch_tile(n):
    # Lane-dense 128-image tiles for large batches; small 8-aligned tiles keep
    # the grid even (>=2 steps) for v7x's two TensorCores on small batches.
    return 128 if n >= 256 else 8


@jax.jit
def backbone_forward(x_nchw, params):
    """BackBone.forward: (N, C, H, W) f32 -> (N, output_feature_dim) f32."""
    N, C, H, W = x_nchw.shape
    c_in_p = params["w_stem"].shape[1] // 9
    c_feat = params["w_stem"].shape[0]
    hw = H * W

    b_tile = _pick_batch_tile(N)
    n_pad = ((N + b_tile - 1) // b_tile) * b_tile
    L = b_tile * hw

    # One-time HBM-side layout change: channels-major, flat (batch, spatial)
    # lane axis, channels padded to 8 so sublane blocks are aligned (zero
    # channels contribute nothing).
    x = x_nchw.astype(jnp.float32)
    if n_pad > N:
        x = jnp.pad(x, ((0, n_pad - N), (0, 0), (0, 0), (0, 0)))
    x = jnp.transpose(x, (1, 0, 2, 3)).reshape(C, n_pad * hw)
    if C < c_in_p:
        x = jnp.pad(x, ((0, c_in_p - C), (0, 0)))

    # Per-tap halo validity masks, precomputed once and tiled per image in the
    # batch tile; grid-invariant input with a constant index_map.
    pos = jnp.arange(hw, dtype=jnp.int32)
    row, col = pos // W, pos % W
    mask_rows = []
    for dy, dx in _TAPS:
        ok = ((row + dy >= 0) & (row + dy < H)
              & (col + dx >= 0) & (col + dx < W))
        mask_rows.append(ok)
    masks = jnp.tile(jnp.stack(mask_rows).astype(jnp.float32), (1, b_tile))

    def wspec(shape):
        return pl.BlockSpec(shape, lambda n: (0,) * len(shape))

    out = pl.pallas_call(
        functools.partial(_backbone_kernel, H=H, W=W, B=b_tile),
        out_shape=jax.ShapeDtypeStruct((n_pad, c_feat), jnp.float32),
        grid=(n_pad // b_tile,),
        in_specs=[
            pl.BlockSpec((c_in_p, L), lambda n: (0, n)),   # batch tile of x
            pl.BlockSpec((9, L), lambda n: (0, 0)),        # resident masks
            wspec(params["w_stem"].shape), wspec(params["b_stem"].shape),
            wspec(params["w1"].shape), wspec(params["b1"].shape),
            wspec(params["w2"].shape), wspec(params["b2"].shape),
            wspec(params["w3"].shape), wspec(params["b3"].shape),
        ],
        out_specs=pl.BlockSpec((b_tile, c_feat), lambda n: (n, 0)),
        compiler_params=pltpu.CompilerParams(
            dimension_semantics=("parallel",)),
    )(x, masks, params["w_stem"], params["b_stem"], params["w1"],
      params["b1"], params["w2"], params["b2"], params["w3"], params["b3"])
    return out[:N]                                                  # (N, Cf)


# ------------------------------ parameters -----------------------------------

def init_backbone_params(key, c_in=3, c_in_pad=8, c_feat=16, c_mid=8):
    """Deterministic He-init stand-in weights (pretrained checkpoint is not
    loadable).  Conv weights are pre-flattened to (Cout, 9*Cin) im2col layout
    (tap order = _TAPS) and stored in bf16 for the MXU; biases stay f32."""
    ks = jax.random.split(key, 8)

    def he(k, shape, fan_in):
        w = jax.random.normal(k, shape, jnp.float32) * (2.0 / fan_in) ** 0.5
        return w.astype(jnp.bfloat16)

    def bias(k, n):
        return 0.1 * jax.random.normal(k, (n, 1), jnp.float32)

    return {
        "w_stem": he(ks[0], (c_feat, 9 * c_in_pad), 9 * c_in),
        "b_stem": bias(ks[1], c_feat),
        "w1": he(ks[2], (c_mid, c_feat), c_feat),
        "b1": bias(ks[3], c_mid),
        "w2": he(ks[4], (c_mid, 9 * c_mid), 9 * c_mid),
        "b2": bias(ks[5], c_mid),
        "w3": he(ks[6], (c_feat, c_mid), c_mid),
        "b3": bias(ks[7], c_feat),
    }


# ------------------------------ pure-JAX reference ---------------------------

@jax.jit
def _reference_forward(x_nchw, params):
    """f32 XLA reference of the same synthetic backbone (for validation)."""
    N, C, H, W = x_nchw.shape
    c_in_p = params["w_stem"].shape[1] // 9
    x = jnp.pad(x_nchw.astype(jnp.float32),
                ((0, 0), (0, c_in_p - C), (0, 0), (0, 0)))

    def conv3x3(a, w, b):
        ap = jnp.pad(a, ((0, 0), (0, 0), (1, 1), (1, 1)))
        cols = [ap[:, :, 1 + dy:1 + dy + H, 1 + dx:1 + dx + W]
                for dy, dx in _TAPS]
        patches = jnp.concatenate(cols, axis=1)
        y = jnp.einsum("ok,nkhw->nohw", w.astype(jnp.float32), patches)
        return y + b.reshape(1, -1, 1, 1)

    def conv1x1(a, w, b):
        y = jnp.einsum("oc,nchw->nohw", w.astype(jnp.float32), a)
        return y + b.reshape(1, -1, 1, 1)

    stem = jnp.maximum(conv3x3(x, params["w_stem"], params["b_stem"]), 0.0)
    h1 = jnp.maximum(conv1x1(stem, params["w1"], params["b1"]), 0.0)
    h2 = jnp.maximum(conv3x3(h1, params["w2"], params["b2"]), 0.0)
    y = jnp.maximum(conv1x1(h2, params["w3"], params["b3"]) + stem, 0.0)
    return jnp.mean(y, axis=(2, 3))


# ---------------------------------- main -------------------------------------

if __name__ == "__main__":
    key = jax.random.PRNGKey(0)
    k_x, k_p = jax.random.split(key)

    N, C, H, W = 16, 3, 16, 16                   # small synthetic batch (NCHW)
    x = jax.random.normal(k_x, (N, C, H, W), jnp.float32)
    params = init_backbone_params(k_p, c_in=C, c_feat=16, c_mid=8)

    out = jax.block_until_ready(backbone_forward(x, params))

    assert out.shape == (N, 16), out.shape       # output_feature_dim == 16
    assert out.dtype == jnp.float32
    assert bool(jnp.all(jnp.isfinite(out)))

    ref = jax.block_until_ready(_reference_forward(x, params))
    assert bool(jnp.allclose(out, ref, rtol=5e-2, atol=5e-2)), (out, ref)

    print("KERNEL_OK")
</pallas_src>

<mosaic_0001>
module attributes {stable_mosaic.version = 11 : i64} {
  func.func @_backbone_kernel(%arg0: i32, %arg1: memref<8x2048xf32, #tpu.memory_space<vmem>>, %arg2: memref<9x2048xf32, #tpu.memory_space<vmem>>, %arg3: memref<16x72xbf16, #tpu.memory_space<vmem>>, %arg4: memref<16x1xf32, #tpu.memory_space<vmem>>, %arg5: memref<8x16xbf16, #tpu.memory_space<vmem>>, %arg6: memref<8x1xf32, #tpu.memory_space<vmem>>, %arg7: memref<8x72xbf16, #tpu.memory_space<vmem>>, %arg8: memref<8x1xf32, #tpu.memory_space<vmem>>, %arg9: memref<16x8xbf16, #tpu.memory_space<vmem>>, %arg10: memref<16x1xf32, #tpu.memory_space<vmem>>, %arg11: memref<8x16xf32, #tpu.memory_space<vmem>>) attributes {dimension_semantics = [#tpu.dimension_semantics<parallel>], iteration_bounds = array<i64: 2>, scalar_prefetch = 0 : i64, scratch_operands = 0 : i64, tpu.core_type = #tpu.core_type<tc>, window_params = [{transform_indices = @transform_0, window_bounds = array<i64: 8, 2048>}, {pipeline_mode = #tpu.pipeline_mode<synchronous>, transform_indices = @transform_1, window_bounds = array<i64: 9, 2048>}, {pipeline_mode = #tpu.pipeline_mode<synchronous>, transform_indices = @transform_2, window_bounds = array<i64: 16, 72>}, {pipeline_mode = #tpu.pipeline_mode<synchronous>, transform_indices = @transform_3, window_bounds = array<i64: 16, 1>}, {pipeline_mode = #tpu.pipeline_mode<synchronous>, transform_indices = @transform_4, window_bounds = array<i64: 8, 16>}, {pipeline_mode = #tpu.pipeline_mode<synchronous>, transform_indices = @transform_5, window_bounds = array<i64: 8, 1>}, {pipeline_mode = #tpu.pipeline_mode<synchronous>, transform_indices = @transform_6, window_bounds = array<i64: 8, 72>}, {pipeline_mode = #tpu.pipeline_mode<synchronous>, transform_indices = @transform_7, window_bounds = array<i64: 8, 1>}, {pipeline_mode = #tpu.pipeline_mode<synchronous>, transform_indices = @transform_8, window_bounds = array<i64: 16, 8>}, {pipeline_mode = #tpu.pipeline_mode<synchronous>, transform_indices = @transform_9, window_bounds = array<i64: 16, 1>}, {transform_indices = @transform_10, window_bounds = array<i64: 8, 16>}]} {
    %c0 = arith.constant 0 : index
    %c0_0 = arith.constant 0 : index
    %0 = vector.load %arg1[%c0, %c0_0] : memref<8x2048xf32, #tpu.memory_space<vmem>>, vector<8x2048xf32>
    %c0_1 = arith.constant 0 : index
    %c0_2 = arith.constant 0 : index
    %1 = vector.load %arg2[%c0_1, %c0_2] : memref<9x2048xf32, #tpu.memory_space<vmem>>, vector<9x2048xf32>
    %c17_i32 = arith.constant 17 : i32
    %2 = tpu.dynamic_rotate %0 by %c17_i32 dim 1 : vector<8x2048xf32>, i32 -> vector<8x2048xf32>
    %3 = vector.extract_strided_slice %1 {offsets = [0, 0], sizes = [1, 2048], strides = [1, 1]} : vector<9x2048xf32> to vector<1x2048xf32>
    %4 = vector.shape_cast %3 : vector<1x2048xf32> to vector<2048xf32>
    %5 = vector.shape_cast %4 : vector<2048xf32> to vector<1x2048xf32>
    %6 = vector.broadcast %5 : vector<1x2048xf32> to vector<8x2048xf32>
    %7 = arith.mulf %2, %6 : vector<8x2048xf32>
    %c16_i32 = arith.constant 16 : i32
    %8 = tpu.dynamic_rotate %0 by %c16_i32 dim 1 : vector<8x2048xf32>, i32 -> vector<8x2048xf32>
    %9 = vector.extract_strided_slice %1 {offsets = [1, 0], sizes = [1, 2048], strides = [1, 1]} : vector<9x2048xf32> to vector<1x2048xf32>
    %10 = vector.shape_cast %9 : vector<1x2048xf32> to vector<2048xf32>
    %11 = vector.shape_cast %10 : vector<2048xf32> to vector<1x2048xf32>
    %12 = vector.broadcast %11 : vector<1x2048xf32> to vector<8x2048xf32>
    %13 = arith.mulf %8, %12 : vector<8x2048xf32>
    %c15_i32 = arith.constant 15 : i32
    %14 = tpu.dynamic_rotate %0 by %c15_i32 dim 1 : vector<8x2048xf32>, i32 -> vector<8x2048xf32>
    %15 = vector.extract_strided_slice %1 {offsets = [2, 0], sizes = [1, 2048], strides = [1, 1]} : vector<9x2048xf32> to vector<1x2048xf32>
    %16 = vector.shape_cast %15 : vector<1x2048xf32> to vector<2048xf32>
    %17 = vector.shape_cast %16 : vector<2048xf32> to vector<1x2048xf32>
    %18 = vector.broadcast %17 : vector<1x2048xf32> to vector<8x2048xf32>
    %19 = arith.mulf %14, %18 : vector<8x2048xf32>
    %c1_i32 = arith.constant 1 : i32
    %20 = tpu.dynamic_rotate %0 by %c1_i32 dim 1 : vector<8x2048xf32>, i32 -> vector<8x2048xf32>
    %21 = vector.extract_strided_slice %1 {offsets = [3, 0], sizes = [1, 2048], strides = [1, 1]} : vector<9x2048xf32> to vector<1x2048xf32>
    %22 = vector.shape_cast %21 : vector<1x2048xf32> to vector<2048xf32>
    %23 = vector.shape_cast %22 : vector<2048xf32> to vector<1x2048xf32>
    %24 = vector.broadcast %23 : vector<1x2048xf32> to vector<8x2048xf32>
    %25 = arith.mulf %20, %24 : vector<8x2048xf32>
    %26 = vector.extract_strided_slice %1 {offsets = [4, 0], sizes = [1, 2048], strides = [1, 1]} : vector<9x2048xf32> to vector<1x2048xf32>
    %27 = vector.shape_cast %26 : vector<1x2048xf32> to vector<2048xf32>
    %28 = vector.shape_cast %27 : vector<2048xf32> to vector<1x2048xf32>
    %29 = vector.broadcast %28 : vector<1x2048xf32> to vector<8x2048xf32>
    %30 = arith.mulf %0, %29 : vector<8x2048xf32>
    %c2047_i32 = arith.constant 2047 : i32
    %31 = tpu.dynamic_rotate %0 by %c2047_i32 dim 1 : vector<8x2048xf32>, i32 -> vector<8x2048xf32>
    %32 = vector.extract_strided_slice %1 {offsets = [5, 0], sizes = [1, 2048], strides = [1, 1]} : vector<9x2048xf32> to vector<1x2048xf32>
    %33 = vector.shape_cast %32 : vector<1x2048xf32> to vector<2048xf32>
    %34 = vector.shape_cast %33 : vector<2048xf32> to vector<1x2048xf32>
    %35 = vector.broadcast %34 : vector<1x2048xf32> to vector<8x2048xf32>
    %36 = arith.mulf %31, %35 : vector<8x2048xf32>
    %c2033_i32 = arith.constant 2033 : i32
    %37 = tpu.dynamic_rotate %0 by %c2033_i32 dim 1 : vector<8x2048xf32>, i32 -> vector<8x2048xf32>
    %38 = vector.extract_strided_slice %1 {offsets = [6, 0], sizes = [1, 2048], strides = [1, 1]} : vector<9x2048xf32> to vector<1x2048xf32>
    %39 = vector.shape_cast %38 : vector<1x2048xf32> to vector<2048xf32>
    %40 = vector.shape_cast %39 : vector<2048xf32> to vector<1x2048xf32>
    %41 = vector.broadcast %40 : vector<1x2048xf32> to vector<8x2048xf32>
    %42 = arith.mulf %37, %41 : vector<8x2048xf32>
    %c2032_i32 = arith.constant 2032 : i32
    %43 = tpu.dynamic_rotate %0 by %c2032_i32 dim 1 : vector<8x2048xf32>, i32 -> vector<8x2048xf32>
    %44 = vector.extract_strided_slice %1 {offsets = [7, 0], sizes = [1, 2048], strides = [1, 1]} : vector<9x2048xf32> to vector<1x2048xf32>
    %45 = vector.shape_cast %44 : vector<1x2048xf32> to vector<2048xf32>
    %46 = vector.shape_cast %45 : vector<2048xf32> to vector<1x2048xf32>
    %47 = vector.broadcast %46 : vector<1x2048xf32> to vector<8x2048xf32>
    %48 = arith.mulf %43, %47 : vector<8x2048xf32>
    %c2031_i32 = arith.constant 2031 : i32
    %49 = tpu.dynamic_rotate %0 by %c2031_i32 dim 1 : vector<8x2048xf32>, i32 -> vector<8x2048xf32>
    %50 = vector.extract_strided_slice %1 {offsets = [8, 0], sizes = [1, 2048], strides = [1, 1]} : vector<9x2048xf32> to vector<1x2048xf32>
    %51 = vector.shape_cast %50 : vector<1x2048xf32> to vector<2048xf32>
    %52 = vector.shape_cast %51 : vector<2048xf32> to vector<1x2048xf32>
    %53 = vector.broadcast %52 : vector<1x2048xf32> to vector<8x2048xf32>
    %54 = arith.mulf %49, %53 : vector<8x2048xf32>
    %55 = tpu.concatenate %7, %13, %19, %25, %30, %36, %42, %48, %54 in 0 : vector<8x2048xf32>, vector<8x2048xf32>, vector<8x2048xf32>, vector<8x2048xf32>, vector<8x2048xf32>, vector<8x2048xf32>, vector<8x2048xf32>, vector<8x2048xf32>, vector<8x2048xf32> -> vector<72x2048xf32>
    %56 = arith.truncf %55 : vector<72x2048xf32> to vector<72x2048xbf16>
    %c0_3 = arith.constant 0 : index
    %c0_4 = arith.constant 0 : index
    %57 = vector.load %arg3[%c0_3, %c0_4] : memref<16x72xbf16, #tpu.memory_space<vmem>>, vector<16x72xbf16>
    %cst = arith.constant dense<0.000000e+00> : vector<16x2048xf32>
    %58 = tpu.matmul %57, %56, %cst {dimension_numbers = #tpu.dot_dimension_numbers<[1], [0], [0], [1], [0, 0, 1, 1], [], []>} : vector<16x72xbf16>, vector<72x2048xbf16>, vector<16x2048xf32> -> vector<16x2048xf32>
    %c0_5 = arith.constant 0 : index
    %c0_6 = arith.constant 0 : index
    %59 = vector.load %arg4[%c0_5, %c0_6] : memref<16x1xf32, #tpu.memory_space<vmem>>, vector<16x1xf32>
    %60 = vector.broadcast %59 : vector<16x1xf32> to vector<16x2048xf32>
    %61 = arith.addf %58, %60 : vector<16x2048xf32>
    %cst_7 = arith.constant 0.000000e+00 : f32
    %62 = vector.broadcast %cst_7 : f32 to vector<16x2048xf32>
    %63 = arith.maximumf %61, %62 : vector<16x2048xf32>
    %c0_8 = arith.constant 0 : index
    %c0_9 = arith.constant 0 : index
    %64 = vector.load %arg5[%c0_8, %c0_9] : memref<8x16xbf16, #tpu.memory_space<vmem>>, vector<8x16xbf16>
    %65 = arith.truncf %63 : vector<16x2048xf32> to vector<16x2048xbf16>
    %cst_10 = arith.constant dense<0.000000e+00> : vector<8x2048xf32>
    %66 = tpu.matmul %64, %65, %cst_10 {dimension_numbers = #tpu.dot_dimension_numbers<[1], [0], [0], [1], [0, 0, 1, 1], [], []>} : vector<8x16xbf16>, vector<16x2048xbf16>, vector<8x2048xf32> -> vector<8x2048xf32>
    %c0_11 = arith.constant 0 : index
    %c0_12 = arith.constant 0 : index
    %67 = vector.load %arg6[%c0_11, %c0_12] : memref<8x1xf32, #tpu.memory_space<vmem>>, vector<8x1xf32>
    %68 = vector.broadcast %67 : vector<8x1xf32> to vector<8x2048xf32>
    %69 = arith.addf %66, %68 : vector<8x2048xf32>
    %cst_13 = arith.constant 0.000000e+00 : f32
    %70 = vector.broadcast %cst_13 : f32 to vector<8x2048xf32>
    %71 = arith.maximumf %69, %70 : vector<8x2048xf32>
    %c17_i32_14 = arith.constant 17 : i32
    %72 = tpu.dynamic_rotate %71 by %c17_i32_14 dim 1 : vector<8x2048xf32>, i32 -> vector<8x2048xf32>
    %73 = vector.extract_strided_slice %1 {offsets = [0, 0], sizes = [1, 2048], strides = [1, 1]} : vector<9x2048xf32> to vector<1x2048xf32>
    %74 = vector.shape_cast %73 : vector<1x2048xf32> to vector<2048xf32>
    %75 = vector.shape_cast %74 : vector<2048xf32> to vector<1x2048xf32>
    %76 = vector.broadcast %75 : vector<1x2048xf32> to vector<8x2048xf32>
    %77 = arith.mulf %72, %76 : vector<8x2048xf32>
    %c16_i32_15 = arith.constant 16 : i32
    %78 = tpu.dynamic_rotate %71 by %c16_i32_15 dim 1 : vector<8x2048xf32>, i32 -> vector<8x2048xf32>
    %79 = vector.extract_strided_slice %1 {offsets = [1, 0], sizes = [1, 2048], strides = [1, 1]} : vector<9x2048xf32> to vector<1x2048xf32>
    %80 = vector.shape_cast %79 : vector<1x2048xf32> to vector<2048xf32>
    %81 = vector.shape_cast %80 : vector<2048xf32> to vector<1x2048xf32>
    %82 = vector.broadcast %81 : vector<1x2048xf32> to vector<8x2048xf32>
    %83 = arith.mulf %78, %82 : vector<8x2048xf32>
    %c15_i32_16 = arith.constant 15 : i32
    %84 = tpu.dynamic_rotate %71 by %c15_i32_16 dim 1 : vector<8x2048xf32>, i32 -> vector<8x2048xf32>
    %85 = vector.extract_strided_slice %1 {offsets = [2, 0], sizes = [1, 2048], strides = [1, 1]} : vector<9x2048xf32> to vector<1x2048xf32>
    %86 = vector.shape_cast %85 : vector<1x2048xf32> to vector<2048xf32>
    %87 = vector.shape_cast %86 : vector<2048xf32> to vector<1x2048xf32>
    %88 = vector.broadcast %87 : vector<1x2048xf32> to vector<8x2048xf32>
    %89 = arith.mulf %84, %88 : vector<8x2048xf32>
    %c1_i32_17 = arith.constant 1 : i32
    %90 = tpu.dynamic_rotate %71 by %c1_i32_17 dim 1 : vector<8x2048xf32>, i32 -> vector<8x2048xf32>
    %91 = vector.extract_strided_slice %1 {offsets = [3, 0], sizes = [1, 2048], strides = [1, 1]} : vector<9x2048xf32> to vector<1x2048xf32>
    %92 = vector.shape_cast %91 : vector<1x2048xf32> to vector<2048xf32>
    %93 = vector.shape_cast %92 : vector<2048xf32> to vector<1x2048xf32>
    %94 = vector.broadcast %93 : vector<1x2048xf32> to vector<8x2048xf32>
    %95 = arith.mulf %90, %94 : vector<8x2048xf32>
    %96 = vector.extract_strided_slice %1 {offsets = [4, 0], sizes = [1, 2048], strides = [1, 1]} : vector<9x2048xf32> to vector<1x2048xf32>
    %97 = vector.shape_cast %96 : vector<1x2048xf32> to vector<2048xf32>
    %98 = vector.shape_cast %97 : vector<2048xf32> to vector<1x2048xf32>
    %99 = vector.broadcast %98 : vector<1x2048xf32> to vector<8x2048xf32>
    %100 = arith.mulf %71, %99 : vector<8x2048xf32>
    %c2047_i32_18 = arith.constant 2047 : i32
    %101 = tpu.dynamic_rotate %71 by %c2047_i32_18 dim 1 : vector<8x2048xf32>, i32 -> vector<8x2048xf32>
    %102 = vector.extract_strided_slice %1 {offsets = [5, 0], sizes = [1, 2048], strides = [1, 1]} : vector<9x2048xf32> to vector<1x2048xf32>
    %103 = vector.shape_cast %102 : vector<1x2048xf32> to vector<2048xf32>
    %104 = vector.shape_cast %103 : vector<2048xf32> to vector<1x2048xf32>
    %105 = vector.broadcast %104 : vector<1x2048xf32> to vector<8x2048xf32>
    %106 = arith.mulf %101, %105 : vector<8x2048xf32>
    %c2033_i32_19 = arith.constant 2033 : i32
    %107 = tpu.dynamic_rotate %71 by %c2033_i32_19 dim 1 : vector<8x2048xf32>, i32 -> vector<8x2048xf32>
    %108 = vector.extract_strided_slice %1 {offsets = [6, 0], sizes = [1, 2048], strides = [1, 1]} : vector<9x2048xf32> to vector<1x2048xf32>
    %109 = vector.shape_cast %108 : vector<1x2048xf32> to vector<2048xf32>
    %110 = vector.shape_cast %109 : vector<2048xf32> to vector<1x2048xf32>
    %111 = vector.broadcast %110 : vector<1x2048xf32> to vector<8x2048xf32>
    %112 = arith.mulf %107, %111 : vector<8x2048xf32>
    %c2032_i32_20 = arith.constant 2032 : i32
    %113 = tpu.dynamic_rotate %71 by %c2032_i32_20 dim 1 : vector<8x2048xf32>, i32 -> vector<8x2048xf32>
    %114 = vector.extract_strided_slice %1 {offsets = [7, 0], sizes = [1, 2048], strides = [1, 1]} : vector<9x2048xf32> to vector<1x2048xf32>
    %115 = vector.shape_cast %114 : vector<1x2048xf32> to vector<2048xf32>
    %116 = vector.shape_cast %115 : vector<2048xf32> to vector<1x2048xf32>
    %117 = vector.broadcast %116 : vector<1x2048xf32> to vector<8x2048xf32>
    %118 = arith.mulf %113, %117 : vector<8x2048xf32>
    %c2031_i32_21 = arith.constant 2031 : i32
    %119 = tpu.dynamic_rotate %71 by %c2031_i32_21 dim 1 : vector<8x2048xf32>, i32 -> vector<8x2048xf32>
    %120 = vector.extract_strided_slice %1 {offsets = [8, 0], sizes = [1, 2048], strides = [1, 1]} : vector<9x2048xf32> to vector<1x2048xf32>
    %121 = vector.shape_cast %120 : vector<1x2048xf32> to vector<2048xf32>
    %122 = vector.shape_cast %121 : vector<2048xf32> to vector<1x2048xf32>
    %123 = vector.broadcast %122 : vector<1x2048xf32> to vector<8x2048xf32>
    %124 = arith.mulf %119, %123 : vector<8x2048xf32>
    %125 = tpu.concatenate %77, %83, %89, %95, %100, %106, %112, %118, %124 in 0 : vector<8x2048xf32>, vector<8x2048xf32>, vector<8x2048xf32>, vector<8x2048xf32>, vector<8x2048xf32>, vector<8x2048xf32>, vector<8x2048xf32>, vector<8x2048xf32>, vector<8x2048xf32> -> vector<72x2048xf32>
    %126 = arith.truncf %125 : vector<72x2048xf32> to vector<72x2048xbf16>
    %c0_22 = arith.constant 0 : index
    %c0_23 = arith.constant 0 : index
    %127 = vector.load %arg7[%c0_22, %c0_23] : memref<8x72xbf16, #tpu.memory_space<vmem>>, vector<8x72xbf16>
    %cst_24 = arith.constant dense<0.000000e+00> : vector<8x2048xf32>
    %128 = tpu.matmul %127, %126, %cst_24 {dimension_numbers = #tpu.dot_dimension_numbers<[1], [0], [0], [1], [0, 0, 1, 1], [], []>} : vector<8x72xbf16>, vector<72x2048xbf16>, vector<8x2048xf32> -> vector<8x2048xf32>
    %c0_25 = arith.constant 0 : index
    %c0_26 = arith.constant 0 : index
    %129 = vector.load %arg8[%c0_25, %c0_26] : memref<8x1xf32, #tpu.memory_space<vmem>>, vector<8x1xf32>
    %130 = vector.broadcast %129 : vector<8x1xf32> to vector<8x2048xf32>
    %131 = arith.addf %128, %130 : vector<8x2048xf32>
    %cst_27 = arith.constant 0.000000e+00 : f32
    %132 = vector.broadcast %cst_27 : f32 to vector<8x2048xf32>
    %133 = arith.maximumf %131, %132 : vector<8x2048xf32>
    %c0_28 = arith.constant 0 : index
    %c0_29 = arith.constant 0 : index
    %134 = vector.load %arg9[%c0_28, %c0_29] : memref<16x8xbf16, #tpu.memory_space<vmem>>, vector<16x8xbf16>
    %135 = arith.truncf %133 : vector<8x2048xf32> to vector<8x2048xbf16>
    %cst_30 = arith.constant dense<0.000000e+00> : vector<16x2048xf32>
    %136 = tpu.matmul %134, %135, %cst_30 {dimension_numbers = #tpu.dot_dimension_numbers<[1], [0], [0], [1], [0, 0, 1, 1], [], []>} : vector<16x8xbf16>, vector<8x2048xbf16>, vector<16x2048xf32> -> vector<16x2048xf32>
    %c0_31 = arith.constant 0 : index
    %c0_32 = arith.constant 0 : index
    %137 = vector.load %arg10[%c0_31, %c0_32] : memref<16x1xf32, #tpu.memory_space<vmem>>, vector<16x1xf32>
    %138 = vector.broadcast %137 : vector<16x1xf32> to vector<16x2048xf32>
    %139 = arith.addf %136, %138 : vector<16x2048xf32>
    %140 = arith.addf %139, %63 : vector<16x2048xf32>
    %cst_33 = arith.constant 0.000000e+00 : f32
    %141 = vector.broadcast %cst_33 : f32 to vector<16x2048xf32>
    %142 = arith.maximumf %140, %141 : vector<16x2048xf32>
    %143 = vector.shape_cast %142 : vector<16x2048xf32> to vector<16x8x256xf32>
    %cst_34 = arith.constant dense<0.000000e+00> : vector<16x8xf32>
    %144 = vector.multi_reduction <add>, %143, %cst_34 [2] : vector<16x8x256xf32> to vector<16x8xf32>
    %cst_35 = arith.constant 3.906250e-03 : f32
    %145 = vector.broadcast %cst_35 : f32 to vector<16x8xf32>
    %146 = arith.mulf %144, %145 : vector<16x8xf32>
    %147 = tpu.transpose %146, [1, 0] : vector<16x8xf32> -> vector<8x16xf32>
    %c0_36 = arith.constant 0 : index
    %c0_37 = arith.constant 0 : index
    %148 = vector.load %arg11[%c0_36, %c0_37] : memref<8x16xf32, #tpu.memory_space<vmem>>, vector<8x16xf32>
    tpu.vector_store %arg11[%c0_36, %c0_37], %147 {strides = array<i32>} : memref<8x16xf32, #tpu.memory_space<vmem>>, vector<8x16xf32>,
    return
  }
  func.func @transform_0(%arg0: i32) -> (i32, i32) {
    %c0_i32 = arith.constant 0 : i32
    %c0_i32_0 = arith.constant 0 : i32
    return %c0_i32, %arg0 : i32, i32
  }
  func.func @transform_1(%arg0: i32) -> (i32, i32) {
    %c0_i32 = arith.constant 0 : i32
    %c0_i32_0 = arith.constant 0 : i32
    %c0_i32_1 = arith.constant 0 : i32
    return %c0_i32, %c0_i32_0 : i32, i32
  }
  func.func @transform_2(%arg0: i32) -> (i32, i32) {
    %c0_i32 = arith.constant 0 : i32
    %c0_i32_0 = arith.constant 0 : i32
    %c0_i32_1 = arith.constant 0 : i32
    return %c0_i32, %c0_i32_0 : i32, i32
  }
  func.func @transform_3(%arg0: i32) -> (i32, i32) {
    %c0_i32 = arith.constant 0 : i32
    %c0_i32_0 = arith.constant 0 : i32
    %c0_i32_1 = arith.constant 0 : i32
    return %c0_i32, %c0_i32_0 : i32, i32
  }
  func.func @transform_4(%arg0: i32) -> (i32, i32) {
    %c0_i32 = arith.constant 0 : i32
    %c0_i32_0 = arith.constant 0 : i32
    %c0_i32_1 = arith.constant 0 : i32
    return %c0_i32, %c0_i32_0 : i32, i32
  }
  func.func @transform_5(%arg0: i32) -> (i32, i32) {
    %c0_i32 = arith.constant 0 : i32
    %c0_i32_0 = arith.constant 0 : i32
    %c0_i32_1 = arith.constant 0 : i32
    return %c0_i32, %c0_i32_0 : i32, i32
  }
  func.func @transform_6(%arg0: i32) -> (i32, i32) {
    %c0_i32 = arith.constant 0 : i32
    %c0_i32_0 = arith.constant 0 : i32
    %c0_i32_1 = arith.constant 0 : i32
    return %c0_i32, %c0_i32_0 : i32, i32
  }
  func.func @transform_7(%arg0: i32) -> (i32, i32) {
    %c0_i32 = arith.constant 0 : i32
    %c0_i32_0 = arith.constant 0 : i32
    %c0_i32_1 = arith.constant 0 : i32
    return %c0_i32, %c0_i32_0 : i32, i32
  }
  func.func @transform_8(%arg0: i32) -> (i32, i32) {
    %c0_i32 = arith.constant 0 : i32
    %c0_i32_0 = arith.constant 0 : i32
    %c0_i32_1 = arith.constant 0 : i32
    return %c0_i32, %c0_i32_0 : i32, i32
  }
  func.func @transform_9(%arg0: i32) -> (i32, i32) {
    %c0_i32 = arith.constant 0 : i32
    %c0_i32_0 = arith.constant 0 : i32
    %c0_i32_1 = arith.constant 0 : i32
    return %c0_i32, %c0_i32_0 : i32, i32
  }
  func.func @transform_10(%arg0: i32) -> (i32, i32) {
    %c0_i32 = arith.constant 0 : i32
    %c0_i32_0 = arith.constant 0 : i32
    return %arg0, %c0_i32 : i32, i32
  }
}

</mosaic_0001>

<bundles_post_ra>
// kernel: backbone_forward.1
= control target key start
LH: loop header
LB: loop body
LE: loop exit
PB: predicated region body
PF: predicated region fallthrough
CT: control target
= control target key end

     0   :  { %s8736_s0 = inlined_call_operand.vmem [shape: f32[8,4096], index: 0, kind: input, shape index: {}]   ;;  %s8737_s1 = inlined_call_operand.vmem [shape: f32[9,2048], index: 1, kind: input, shape index: {}]   ;;  %s8738_s2 = inlined_call_operand.vmem [shape: bf16[16,72], index: 2, kind: input, shape index: {}]   ;;  %s8739_s3 = inlined_call_operand.vmem [shape: f32[16,1], index: 3, kind: input, shape index: {}]   ;;  %s8740_s4 = inlined_call_operand.vmem [shape: bf16[8,16], index: 4, kind: input, shape index: {}]   ;;  %s8741_s5 = inlined_call_operand.vmem [shape: f32[8,1], index: 5, kind: input, shape index: {}]   ;;  %s8742_s6 = inlined_call_operand.vmem [shape: bf16[8,72], index: 6, kind: input, shape index: {}]   ;;  %s8743_s7 = inlined_call_operand.vmem [shape: f32[8,1], index: 7, kind: input, shape index: {}]   ;;  %s8744_s8 = inlined_call_operand.vmem [shape: bf16[16,8], index: 8, kind: input, shape index: {}]   ;;  %s8745_s9 = inlined_call_operand.vmem [shape: f32[16,1], index: 9, kind: input, shape index: {}]   ;;  %s8746_s10 = inlined_call_operand.hbm [shape: f32[16,16], index: 10, kind: output, shape index: {}]  }
   0x1   :  { %8995 = sst [smem:[#allocation163_spill]] %s8736_s0 }
   0x2   :  { %15 = vsyncpa [#allocation3], 0 }
   0x3   :  { %17 = vsyncpa [#allocation3 + $0x1], 0  ;;  %s5040_s13 = smov 0   ;;  %s5042_s14 = smov 0  }
   0x4   :  { %s5044_s15 = smov 0   ;;  %s5046_s16 = smov 0  }
   0x5 LB: > { %s5061_s17 = sadd.s32 4294967295, %s4971_s16   ;;  %s4744_s18 = sadd.s32 4294967294, %s4971_s16   ;;  %s4971_s16 = sphi %s5046_s16, %s9448_s16   ;;  %s4967_s15 = sphi %s5044_s15, %s9447_s15   ;;  %s4963_s14 = sphi %s5042_s14, %s9446_s14   ;;  %s4959_s13 = sphi %s5040_s13, %s9445_s13  }
   0x6   : > { %s5065_s19 = sadd.s32 1, %s4971_s16   ;;  %s245_s20 = sadd.s32 1, %s4967_s15 }
   0x7   : > { %s242_s21 = ssub.s32 %s4971_s16, %s5065_s19  ;;  %p255_p0 = scmp.ne.s32.totalorder %s4967_s15, %s4963_s14 }
   0x8   : > { %p243_p1 = scmp.eq.s32.totalorder %s242_s21, 0  ;;  %p256_p2 = scmp.eq.s32.totalorder %s5061_s17, 1 }
   0x9   : > { %p261_p3 = scmp.ne.s32.totalorder %s4963_s14, %s4959_s13  ;;  %p262_p4 = scmp.eq.s32.totalorder %s4744_s18, 1 }
   0xa   : > { %s5076_s22 = scalar_select %p243_p1, %s4967_s15, %s245_s20  }
   0xb   : > { %p5078_p5 = por %p256_p2, %p255_p0  ;;  %p5082_p6 = por %p262_p4, %p261_p3 }
   0xc   : > { %p4747_p7 = scmp.ge.s32.totalorder %s4971_s16, 1  ;;  %p316_p8 = scmp.lt.s32.totalorder %s4971_s16, 3 }
   0xe   : > { %p317_p9 = pnand %p4747_p7, %p316_p8 }
  0x10   : > { %320 = sbr.rel (%p317_p9) target bundleno = 1932 (0x78c), region = 60 }
  0x17   : > { %s4749_s25 = sshll.u32 %s5061_s17, 4  ;;  %s8998_s0 = sld [smem:[#allocation163_spill]]  ;;  %v8751_v4 = vmov 0   ;;  %v441_v12 = vlaneseq  ;;  %v5260_v17 = vld [vmem:[%s8737_s1 + $0x18] sm:$0xff]  ;;  %v5279_v22 = vld [vmem:[%s8737_s1 + $0x10] sm:$0xff]  ;;  %vm1626_vm8 = vcmask 1043456  }
  0x18   : > { %p355_p10 = scmp.lt.s32.totalorder %s4749_s25, 31  ;;  %s8788_s30 = smov 16   ;;  %1750 = vmatprep.mubr.bf16.mxu1 %v8751_v4  ;;  %4881 = vset.pattern.permute.xlu1 %v8751_v4  ;;  %vm1622_vm9 = vcmask 588800   ;;  %vm2074_vm10 = vcmask 130048   ;;  %vm3467_vm11 = vcmask 64512   ;;  %vm4615_vm12 = vcmask 1041409  }
  0x19   : > { %s8786_s11 = smov 17   ;;  %s8747_s12 = smov 15   ;;  %4880 = vset.pattern.permute.xlu0 %v8751_v4  ;;  %1707 = vmatprep.mubr.bf16.mxu0 %v8751_v4  ;;  %v5243_v13 = vshrl.u32 %v441_v12, 7  ;;  %v5249_v14 = vand.u32 127, %v441_v12  ;;  %vm4617_vm13 = vcmask 1042434   ;;  %vm4619_vm14 = vcmask 1043459  }
  0x1a   : > { %s9450_s25 = smov (!%p355_p10, %s4749_s25), 31  ;;  %s8749_s18 = smov 1   ;;  %vm4621_vm15 = vcmask 1044484  }
  0x1b   : > { %s4750_s26 = sshll.u32 %s9450_s25, 3  ;;  %s8818_s20 = smov 127   ;;  %8999 = vst [vmem:[#allocation5_spill] sm:$0xff] %v5243_v13  ;;  %v5252_v15 = vsub.s32 0, %v5243_v13  ;;  %v5255_v16 = vsub.s32 1, %v5243_v13  ;;  %vm572_vm0 = vcmp.lt.s32.totalorder %v5249_v14, 16 }
  0x1c   : > { %s8816_s21 = smov 113   ;;  %s8856_s25 = smov 112   ;;  %vm443_vm1 = vcmp.lt.s32.totalorder %v5249_v14, 17  ;;  %v5324_v38 = vsub.s32 2, %v5243_v13  ;;  %v5329_v41 = vsub.s32 3, %v5243_v13  ;;  %vm701_vm2 = vcmp.lt.s32.totalorder %v5249_v14, 15 }
  0x1d   : > { %s5092_s29 = scalar_lea.vmem %s8998_s0, %s4750_s26  ;;  %s8858_s26 = smov 111   ;;  %v5270_v20 = vrot.slane %v5260_v17, %v5252_v15  ;;  %v5274_v21 = vrot.slane %v5260_v17, %v5255_v16  ;;  %v5296_v28 = vrot.slane %v5279_v22, %v5252_v15  ;;  %v5306_v31 = vrot.slane %v5279_v22, %v5255_v16 }
  0x1e   : > { %v5095_v0 = vld [vmem:[%s5092_s29 + $0x10] sm:$0xff]  ;;  %v5102_v1 = vld [vmem:[%s5092_s29 + $0x18] sm:$0xff]  ;;  %v5109_v2 = vld [vmem:[%s5092_s29 + $0x8] sm:$0xff]  ;;  %vm830_vm3 = vcmp.lt.s32.totalorder %v5249_v14, 1  ;;  %v5342_v46 = vrot.slane %v5260_v17, %v5324_v38  ;;  %v5348_v47 = vrot.slane %v5260_v17, %v5329_v41  ;;  %v5358_v51 = vsub.s32 4, %v5243_v13  ;;  %s9025_s27 = smov 1  }
  0x1f   : > { %544 = vrot.lane.b32.xlu1 %v5095_v0, %s8788_s30  ;;  %413 = vrot.lane.b32.xlu0 %v5095_v0, %s8786_s11  ;;  %v5128_v3 = vld [vmem:[%s5092_s29 + $0x20] sm:$0xff]  ;;  %v5159_v5 = vld [vmem:[%s5092_s29 + $0x38] sm:$0xff]  ;;  %9000 = vst [vmem:[#allocation6_spill] sm:$0xff] %v5270_v20  ;;  %9001 = vst [vmem:[#allocation7_spill] sm:$0xff] %v5274_v21  ;;  %v5365_v53 = vrot.slane %v5279_v22, %v5329_v41  ;;  %v5373_v56 = vrot.slane %v5279_v22, %v5324_v38  ;;  %v5376_v57 = vsub.s32 5, %v5243_v13  ;;  %s9028_s28 = smov 15  }
  0x20   : > { %v5162_v6 = vld [vmem:[%s5092_s29 + $0x30] sm:$0xff]  ;;  %v5173_v7 = vld [vmem:[%s5092_s29 + $0x28] sm:$0xff]  ;;  %v5192_v8 = vld [vmem:[%s5092_s29 + $0x40] sm:$0xff]  ;;  %9002 = vst [vmem:[#allocation8_spill] sm:$0xff] %v5296_v28  ;;  %v5386_v61 = vrot.slane %v5260_v17, %v5358_v51  ;;  %vm1039_vm4 = vcmp.lt.s32.totalorder %v5249_v14, 127  ;;  %vm1168_vm5 = vcmp.lt.s32.totalorder %v5249_v14, 113 }
  0x21   : > { %v5219_v9 = vld [vmem:[%s5092_s29 + $0x58] sm:$0xff]  ;;  %v5222_v10 = vld [vmem:[%s5092_s29 + $0x50] sm:$0xff]  ;;  %v5233_v11 = vld [vmem:[%s5092_s29 + $0x48] sm:$0xff]  ;;  %9003 = vst [vmem:[#allocation9_spill] sm:$0xff] %v5306_v31  ;;  %vm1297_vm6 = vcmp.lt.s32.totalorder %v5249_v14, 112  ;;  %vm1426_vm7 = vcmp.lt.s32.totalorder %v5249_v14, 111 }
  0x22   : > { %v5282_v23 = vld [vmem:[%s5092_s29] sm:$0xff]  ;;  %v5334_v42 = vld [vmem:[%s5092_s29 + $0x78] sm:$0xff]  ;;  %9004 = vst [vmem:[#allocation10_spill] sm:$0xff] %v5342_v46  ;;  %9005 = vst [vmem:[#allocation11_spill] sm:$0xff] %v5348_v47 }
  0x23   : > { %546 = vrot.lane.b32.xlu1 %v5102_v1, %s8788_s30  ;;  %415 = vrot.lane.b32.xlu0 %v5102_v1, %s8786_s11  ;;  %v5309_v32 = vld [vmem:[%s5092_s29 + $0x60] sm:$0xff]  ;;  %9006 = vst [vmem:[#allocation12_spill] sm:$0xff] %v5365_v53  ;;  %9007 = vst [vmem:[#allocation13_spill] sm:$0xff] %v5373_v56 }
  0x24   : > { %9008 = vst [vmem:[#allocation14_spill] sm:$0xff] %v5386_v61 }
  0x27   : > { %542 = vrot.lane.b32.xlu1 %v5109_v2, %s8788_s30  ;;  %411 = vrot.lane.b32.xlu0 %v5109_v2, %s8786_s11 }
  0x2b   : > { %675 = vrot.lane.b32.xlu1 %v5102_v1, %s8747_s12  ;;  %673 = vrot.lane.b32.xlu0 %v5095_v0, %s8747_s12 }
  0x2f   : > { %804 = vrot.lane.b32.xlu1 %v5102_v1, %s8749_s18  ;;  %802 = vrot.lane.b32.xlu0 %v5095_v0, %s8749_s18 }
  0x33   : > { %800 = vrot.lane.b32.xlu1 %v5109_v2, %s8749_s18  ;;  %671 = vrot.lane.b32.xlu0 %v5109_v2, %s8747_s12 }
  0x37   : > { %1015 = vrot.lane.b32.xlu1 %v5128_v3, %s8818_s20  ;;  %1013 = vrot.lane.b32.xlu0 %v5102_v1, %s8818_s20 }
  0x3b   : > { %1142 = vrot.lane.b32.xlu1 %v5102_v1, %s8816_s21  ;;  %1011 = vrot.lane.b32.xlu0 %v5095_v0, %s8818_s20 }
  0x3f   : > { %1271 = vrot.lane.b32.xlu1 %v5102_v1, %s8856_s25  ;;  %1144 = vrot.lane.b32.xlu0 %v5128_v3, %s8816_s21 }
  0x43   : > { %1140 = vrot.lane.b32.xlu1 %v5095_v0, %s8816_s21  ;;  %1273 = vrot.lane.b32.xlu0 %v5128_v3, %s8856_s25 }
  0x47   : > { %1398 = vrot.lane.b32.xlu1 %v5095_v0, %s8858_s26  ;;  %1269 = vrot.lane.b32.xlu0 %v5095_v0, %s8856_s25 }
  0x4b   : > { %1402 = vrot.lane.b32.xlu1 %v5128_v3, %s8858_s26  ;;  %1400 = vrot.lane.b32.xlu0 %v5102_v1, %s8858_s26 }
  0x4f   : > { %423 = vrot.lane.b32.xlu1 %v5159_v5, %s8786_s11  ;;  %421 = vrot.lane.b32.xlu0 %v5162_v6, %s8786_s11 }
  0x53   : > { %554 = vrot.lane.b32.xlu1 %v5159_v5, %s8788_s30  ;;  %552 = vrot.lane.b32.xlu0 %v5162_v6, %s8788_s30 }
  0x57   : > { %550 = vrot.lane.b32.xlu1 %v5173_v7, %s8788_s30  ;;  %419 = vrot.lane.b32.xlu0 %v5173_v7, %s8786_s11 }
  0x5b   : > { %683 = vrot.lane.b32.xlu1 %v5159_v5, %s8747_s12  ;;  %681 = vrot.lane.b32.xlu0 %v5162_v6, %s8747_s12 }
  0x5f   : > { %812 = vrot.lane.b32.xlu1 %v5159_v5, %s8749_s18  ;;  %810 = vrot.lane.b32.xlu0 %v5162_v6, %s8749_s18 }
  0x63   : > { %808 = vrot.lane.b32.xlu1 %v5173_v7, %s8749_s18  ;;  %679 = vrot.lane.b32.xlu0 %v5173_v7, %s8747_s12 }
  0x67   : > { %1023 = vrot.lane.b32.xlu1 %v5192_v8, %s8818_s20  ;;  %1021 = vrot.lane.b32.xlu0 %v5159_v5, %s8818_s20 }
  0x6b   : > { %1150 = vrot.lane.b32.xlu1 %v5159_v5, %s8816_s21  ;;  %1019 = vrot.lane.b32.xlu0 %v5162_v6, %s8818_s20 }
  0x6f   : > { %1279 = vrot.lane.b32.xlu1 %v5159_v5, %s8856_s25  ;;  %1152 = vrot.lane.b32.xlu0 %v5192_v8, %s8816_s21 }
  0x73   : > { %1148 = vrot.lane.b32.xlu1 %v5162_v6, %s8816_s21  ;;  %1281 = vrot.lane.b32.xlu0 %v5192_v8, %s8856_s25 }
  0x77   : > { %1406 = vrot.lane.b32.xlu1 %v5162_v6, %s8858_s26  ;;  %1277 = vrot.lane.b32.xlu0 %v5162_v6, %s8856_s25 }
  0x7b   : > { %1410 = vrot.lane.b32.xlu1 %v5192_v8, %s8858_s26  ;;  %1408 = vrot.lane.b32.xlu0 %v5159_v5, %s8858_s26 }
  0x7f   : > { %431 = vrot.lane.b32.xlu1 %v5219_v9, %s8786_s11  ;;  %429 = vrot.lane.b32.xlu0 %v5222_v10, %s8786_s11 }
  0x83   : > { %562 = vrot.lane.b32.xlu1 %v5219_v9, %s8788_s30  ;;  %560 = vrot.lane.b32.xlu0 %v5222_v10, %s8788_s30 }
  0x87   : > { %558 = vrot.lane.b32.xlu1 %v5233_v11, %s8788_s30  ;;  %427 = vrot.lane.b32.xlu0 %v5233_v11, %s8786_s11 }
  0x8b   : > { %691 = vrot.lane.b32.xlu1 %v5219_v9, %s8747_s12  ;;  %689 = vrot.lane.b32.xlu0 %v5222_v10, %s8747_s12 }
  0x8f   : > { %820 = vrot.lane.b32.xlu1 %v5219_v9, %s8749_s18  ;;  %818 = vrot.lane.b32.xlu0 %v5222_v10, %s8749_s18 }
  0x91   : > { %v545_v18 = vpop.permute.xlu1 %544  ;;  %v414_v19 = vpop.permute.xlu0 %413 }
  0x93   : > { %816 = vrot.lane.b32.xlu1 %v5233_v11, %s8749_s18  ;;  %687 = vrot.lane.b32.xlu0 %v5233_v11, %s8747_s12 }
  0x95   : > { %v5284_v24 = vpop.permute.xlu1 %546  ;;  %v5286_v25 = vpop.permute.xlu0 %415 }
  0x96   : > { %v456_v26 = vsel %vm443_vm1, %v414_v19, %v5286_v25  ;;  %v585_v27 = vsel %vm572_vm0, %v545_v18, %v5284_v24 }
  0x97   : > { %540 = vrot.lane.b32.xlu1 %v5282_v23, %s8788_s30  ;;  %409 = vrot.lane.b32.xlu0 %v5282_v23, %s8786_s11  ;;  %v527_v29 = vmul.f32 %v5270_v20, %v456_v26  ;;  %v656_v30 = vmul.f32 %v5274_v21, %v585_v27 }
  0x99   : > { %v5311_v33 = vpop.permute.xlu1 %542  ;;  %v5313_v34 = vpop.permute.xlu0 %411  ;;  %v1526_v35 = vpack.c.bf16 %v656_v30, %v527_v29  ;;  %v994_v30 = vmul.f32 %v5386_v61, %v5102_v1  ;;  %v5577_v61 = vld [vmem:[%s5092_s29 + $0x68] sm:$0xff] }
  0x9a   : > { %v586_v36 = vsel %vm572_vm0, %v5311_v33, %v545_v18  ;;  %v457_v37 = vsel %vm443_vm1, %v5313_v34, %v414_v19  ;;  %v5401_v19 = vrot.slane %v5260_v17, %v5376_v57 }
  0x9b   : > { %1718 = vmatprep.subr.bf16.mxu1 %v1526_v35  ;;  %1031 = vrot.lane.b32.xlu1 %v5309_v32, %s8818_s20  ;;  %v526_v39 = vmul.f32 %v5296_v28, %v457_v37  ;;  %v655_v40 = vmul.f32 %v5306_v31, %v586_v36  ;;  %v5411_v35 = vrot.slane %v5279_v22, %v5358_v51 }
  0x9c   : > { %1029 = vrot.lane.b32.xlu0 %v5219_v9, %s8818_s20  ;;  %9009 = vst [vmem:[#allocation15_spill] sm:$0xff] %v5401_v19 }
  0x9d   : > { %v5337_v43 = vpop.permute.xlu1 %675  ;;  %v674_v44 = vpop.permute.xlu0 %673  ;;  %v1525_v45 = vpack.c.bf16 %v655_v40, %v526_v39  ;;  %9010 = vst [vmem:[#allocation16_spill] sm:$0xff] %v5411_v35  ;;  %v5421_v39 = vrot.slane %v5279_v22, %v5376_v57 }
  0x9e   : > { %v714_v48 = vsel %vm701_vm2, %v674_v44, %v5337_v43 }
  0x9f   : > { %1719 = vmatpush1.bf16.msra.mxu1 %v1525_v45  ;;  %570 = vrot.lane.b32.xlu1 %v5334_v42, %s8788_s30  ;;  %v785_v54 = vmul.f32 %v5342_v46, %v714_v48  ;;  %9011 = vst [vmem:[#allocation17_spill] sm:$0xff] %v5421_v39  ;;  %v993_v45 = vmul.f32 %v5411_v35, %v5095_v0 }
  0xa0   : > { %439 = vrot.lane.b32.xlu0 %v5334_v42, %s8786_s11 }
  0xa1   : > { %v5355_v49 = vpop.permute.xlu1 %804  ;;  %v803_v50 = vpop.permute.xlu0 %802 }
  0xa2   : > { %v843_v52 = vsel %vm830_vm3, %v803_v50, %v5355_v49 }
  0xa3   : > { %v914_v55 = vmul.f32 %v5348_v47, %v843_v52  ;;  %669 = vrot.lane.b32.xlu1 %v5282_v23, %s8747_s12  ;;  %v5436_v52 = vsub.s32 6, %v5243_v13 }
  0xa4   : > { %1027 = vrot.lane.b32.xlu0 %v5222_v10, %s8818_s20 }
  0xa5   : > { %v5380_v58 = vpop.permute.xlu1 %800  ;;  %v5382_v59 = vpop.permute.xlu0 %671  ;;  %v1542_v60 = vpack.c.bf16 %v914_v55, %v785_v54  ;;  %v5439_v54 = vsub.s32 7, %v5243_v13 }
  0xa6   : > { %v844_v62 = vsel %vm830_vm3, %v5380_v58, %v803_v50  ;;  %v715_v63 = vsel %vm701_vm2, %v5382_v59, %v674_v44 }
  0xa7   : > { %v913_v12 = vmul.f32 %v5365_v53, %v844_v62  ;;  %v784_v18 = vmul.f32 %v5373_v56, %v715_v63  ;;  %1720 = vmatprep.subr.bf16.mxu1 %v1542_v60  ;;  %1158 = vrot.lane.b32.xlu1 %v5219_v9, %s8816_s21  ;;  %v5449_v62 = vrot.slane %v5260_v17, %v5436_v52 }
  0xa8   : > { %798 = vrot.lane.b32.xlu0 %v5282_v23, %s8749_s18  ;;  %v5455_v63 = vrot.slane %v5260_v17, %v5439_v54  ;;  %v5472_v17 = vrot.slane %v5279_v22, %v5436_v52 }
  0xa9   : > { %v5405_v26 = vpop.permute.xlu1 %1015  ;;  %v1014_v27 = vpop.permute.xlu0 %1013  ;;  %v1541_v29 = vpack.c.bf16 %v913_v12, %v784_v18  ;;  %9012 = vst [vmem:[#allocation18_spill] sm:$0xff] %v5449_v62 }
  0xaa   : > { %v1051_v36 = vsel %vm1039_vm4, %v1014_v27, %v5405_v26  ;;  %9013 = vst [vmem:[#allocation19_spill] sm:$0xff] %v5455_v63  ;;  %9014 = vst [vmem:[#allocation20_spill] sm:$0xff] %v5472_v17 }
  0xab   : > { %v1123_v37 = vmul.f32 %v5401_v19, %v1051_v36  ;;  %1721 = vmatpush1.bf16.msra.mxu1 %v1541_v29  ;;  %1287 = vrot.lane.b32.xlu1 %v5219_v9, %s8856_s25  ;;  %v9020_v19 = vmov 0  }
  0xac   : > { %1160 = vrot.lane.b32.xlu0 %v5309_v32, %s8816_s21 }
  0xad   : > { %v1143_v1 = vpop.permute.xlu1 %1142  ;;  %v5425_v40 = vpop.permute.xlu0 %1011  ;;  %v1558_v44 = vpack.c.bf16 %v1123_v37, %v994_v30  ;;  %v5479_v37 = vrot.slane %v5279_v22, %v5439_v54 }
  0xae   : > { %v1052_v48 = vsel %vm1039_vm4, %v5425_v40, %v1014_v27 }
  0xaf   : > { %v1122_v50 = vmul.f32 %v5421_v39, %v1052_v48  ;;  %1722 = vmatprep.subr.bf16.mxu1 %v1558_v44  ;;  %699 = vrot.lane.b32.xlu1 %v5334_v42, %s8747_s12  ;;  %9015 = vst [vmem:[#allocation21_spill] sm:$0xff] %v5479_v37 }
  0xb0   : > { %1289 = vrot.lane.b32.xlu0 %v5309_v32, %s8856_s25 }
  0xb1   : > { %v1272_v0 = vpop.permute.xlu1 %1271  ;;  %v5444_v55 = vpop.permute.xlu0 %1144  ;;  %v1557_v60 = vpack.c.bf16 %v1122_v50, %v993_v45 }
  0xb2   : > { %v1180_v12 = vsel %vm1168_vm5, %v1143_v1, %v5444_v55 }
  0xb3   : > { %1723 = vmatpush1.bf16.msra.mxu1 %v1557_v60  ;;  %1156 = vrot.lane.b32.xlu1 %v5222_v10, %s8816_s21  ;;  %v1252_v30 = vmul.f32 %v5449_v62, %v1180_v12 }
  0xb4   : > { %828 = vrot.lane.b32.xlu0 %v5334_v42, %s8749_s18 }
  0xb5   : > { %v5462_v18 = vpop.permute.xlu1 %1140  ;;  %v5464_v27 = vpop.permute.xlu0 %1273 }
  0xb6   : > { %v1309_v29 = vsel %vm1297_vm6, %v1272_v0, %v5464_v27  ;;  %v1181_v44 = vsel %vm1168_vm5, %v5462_v18, %v1143_v1  ;;  %v4754_v1 = vld [vmem:[%s8737_s1 + $0x98] ss:$0 sm:$0xff] }
  0xb7   : > { %v1381_v36 = vmul.f32 %v5455_v63, %v1309_v29  ;;  %1009 = vrot.lane.b32.xlu1 %v5109_v2, %s8818_s20  ;;  %v1251_v22 = vmul.f32 %v5472_v17, %v1181_v44 }
  0xb8   : > { %1285 = vrot.lane.b32.xlu0 %v5222_v10, %s8856_s25 }
  0xb9   : > { %v5486_v45 = vpop.permute.xlu1 %1398  ;;  %v5488_v48 = vpop.permute.xlu0 %1269  ;;  %v1574_v50 = vpack.c.bf16 %v1381_v36, %v1252_v30 }
  0xba   : > { %v1310_v60 = vsel %vm1297_vm6, %v5488_v48, %v1272_v0  ;;  %v4753_v0 = vld [vmem:[%s8737_s1 + $0x90] ss:$0 sm:$0xff] }
  0xbb   : > { %v1380_v12 = vmul.f32 %v5479_v37, %v1310_v60  ;;  %1724 = vmatprep.subr.bf16.mxu1 %v1574_v50  ;;  %1416 = vrot.lane.b32.xlu1 %v5219_v9, %s8858_s26 }
  0xbc   : > { %1414 = vrot.lane.b32.xlu0 %v5222_v10, %s8858_s26 }
  0xbd   : > { %v5506_v29 = vpop.permute.xlu1 %1402  ;;  %v1401_v30 = vpop.permute.xlu0 %1400  ;;  %v1573_v36 = vpack.c.bf16 %v1380_v12, %v1251_v22  ;;  %v5521_v22 = vld [vmem:[%s8737_s1 + $0x38] sm:$0xff]  ;;  %v5524_v12 = vld [vmem:[%s5092_s29 + $0x70] sm:$0xff] }
  0xbe   : > { %v1438_v44 = vsel %vm1426_vm7, %v1401_v30, %v5506_v29  ;;  %v1439_v50 = vsel %vm1426_vm7, %v5486_v45, %v1401_v30 }
  0xbf   : > { %v1510_v60 = vmul.f32 %v4754_v1, %v1438_v44  ;;  %1725 = vmatpush1.bf16.msra.mxu1 %v1573_v36  ;;  %1007 = vrot.lane.b32.xlu1 %v5282_v23, %s8818_s20  ;;  %v1509_v4 = vmul.f32 %v4753_v0, %v1439_v50  ;;  %v5530_v36 = vrot.slane %v5521_v22, %v5252_v15  ;;  %v5543_v50 = vld [vmem:[%s8738_s2] sm:$0xff]  }
  0xc0   : > { %1418 = vrot.lane.b32.xlu0 %v5309_v32, %s8858_s26  ;;  %v5538_v44 = vrot.slane %v5521_v22, %v5255_v16 }
  0xc1   : > { %v1590_v13 = vpack.c.bf16 %v1510_v60, %v1510_v60  ;;  %v5526_v17 = vpop.permute.xlu1 %423  ;;  %v422_v1 = vpop.permute.xlu0 %421  ;;  %v1589_v30 = vpack.c.bf16 %v1509_v4, %v1509_v4  ;;  %9016 = vst [vmem:[#allocation22_spill] sm:$0xff] %v5530_v36  ;;  %v5548_v4 = vld [vmem:[%s8737_s1 + $0x30] sm:$0xff] }
  0xc2   : > { %9017 = vst [vmem:[#allocation23_spill] sm:$0xff] %v5538_v44  ;;  %v5562_v62 = vrot.slane %v5548_v4, %v5255_v16 }
  0xc3   : > { %4770 = vmatprep.subr.msk.bf16.mxu1 %vm1626_vm8, %v1590_v13  ;;  %568 = vrot.lane.b32.xlu1 %v5524_v12, %s8788_s30  ;;  %v1634_v0 = vsel %vm1626_vm8, %v1589_v30, 0  ;;  %v452_v13 = vsel %vm443_vm1, %v422_v1, %v5526_v17 }
  0xc4   : > { %437 = vrot.lane.b32.xlu0 %v5524_v12, %s8786_s11  ;;  %1727 = vmatpush1.bf16.msra.mxu1 %v1634_v0  ;;  %9018 = vst [vmem:[#allocation24_spill] sm:$0xff] %v5562_v62  ;;  %v531_v37 = vmul.f32 %v5530_v36, %v452_v13  ;;  %v5572_v0 = vrot.slane %v5548_v4, %v5252_v15 }
  0xc5   : > { %v5555_v60 = vpop.permute.xlu1 %554  ;;  %v553_v30 = vpop.permute.xlu0 %552 }
  0xc6   : > { %v581_v63 = vsel %vm572_vm0, %v553_v30, %v5555_v60  ;;  %9019 = vst [vmem:[#allocation25_spill] sm:$0xff] %v5572_v0 }
  0xc7   : > { %v660_v35 = vmul.f32 %v5538_v44, %v581_v63  ;;  %1267 = vrot.lane.b32.xlu1 %v5109_v2, %s8856_s25  ;;  %4771 = vmatmul.mubr.msk.bf16.vlgmr.msra.gmra.mrb[0].mxu1 %vm1622_vm9, %v5543_v50 }
  0xc8   : > { %1138 = vrot.lane.b32.xlu0 %v5109_v2, %s8816_s21  ;;  %1836 = vmatprep.mubr.bf16.mxu1 %v9020_v19 }
  0xc9   : > { %v5580_v13 = vpop.permute.xlu1 %550  ;;  %v5582_v63 = vpop.permute.xlu0 %419  ;;  %v1530_v44 = vpack.c.bf16 %v660_v35, %v531_v37 }
  0xca   : > { %v582_v36 = vsel %vm572_vm0, %v5580_v13, %v553_v30  ;;  %v453_v39 = vsel %vm443_vm1, %v5582_v63, %v422_v1  ;;  %v5600_v30 = vrot.slane %v5521_v22, %v5324_v38 }
  0xcb   : > { %v659_v56 = vmul.f32 %v5562_v62, %v582_v36  ;;  %v530_v47 = vmul.f32 %v5572_v0, %v453_v39  ;;  %1804 = vmatprep.subr.bf16.mxu1 %v1530_v44  ;;  %566 = vrot.lane.b32.xlu1 %v5577_v61, %s8788_s30  ;;  %v5606_v39 = vrot.slane %v5521_v22, %v5329_v41 }
  0xcc   : > { %435 = vrot.lane.b32.xlu0 %v5577_v61, %s8786_s11  ;;  %9022 = vst [vmem:[#allocation27_spill] sm:$0xff] %v5600_v30  ;;  %v5624_v0 = vrot.slane %v5548_v4, %v5329_v41  ;;  %v5628_v62 = vrot.slane %v5548_v4, %v5324_v38 }
  0xcd   : > { %v1529_v35 = vpack.c.bf16 %v659_v56, %v530_v47  ;;  %v5596_v37 = vpop.permute.xlu1 %683  ;;  %v682_v53 = vpop.permute.xlu0 %681  ;;  %9023 = vst [vmem:[#allocation28_spill] sm:$0xff] %v5606_v39 }
  0xce   : > { %9021 = vst [vmem:[#allocation26_spill] sm:$0xff] %v5596_v37  ;;  %v710_v1 = vsel %vm701_vm2, %v682_v53, %v5596_v37  ;;  %9026 = vst [vmem:[#allocation30_spill] sm:$0xff] %v5624_v0 }
  0xcf   : > { %1805 = vmatpush1.bf16.msra.mxu1 %v1529_v35  ;;  %1265 = vrot.lane.b32.xlu1 %v5282_v23, %s8856_s25  ;;  %v789_v44 = vmul.f32 %v5600_v30, %v710_v1  ;;  %9027 = vst [vmem:[#allocation31_spill] sm:$0xff] %v5628_v62 }
  0xd0   : > { %1136 = vrot.lane.b32.xlu0 %v5282_v23, %s8816_s21 }
  0xd1   : > { %v5613_v47 = vpop.permute.xlu1 %812  ;;  %v811_v56 = vpop.permute.xlu0 %810 }
  0xd2   : > { %9024 = vst [vmem:[#allocation29_spill] sm:$0xff] %v5613_v47  ;;  %v839_v36 = vsel %vm830_vm3, %v811_v56, %v5613_v47 }
  0xd3   : > { %v918_v35 = vmul.f32 %v5606_v39, %v839_v36  ;;  %826 = vrot.lane.b32.xlu1 %v5524_v12, %s9025_s27  ;;  %v5638_v36 = vrot.slane %v5521_v22, %v5358_v51 }
  0xd4   : > { %697 = vrot.lane.b32.xlu0 %v5524_v12, %s9028_s28 }
  0xd5   : > { %v5632_v46 = vpop.permute.xlu1 %808  ;;  %v5634_v28 = vpop.permute.xlu0 %679  ;;  %v1546_v1 = vpack.c.bf16 %v918_v35, %v789_v44  ;;  %9029 = vst [vmem:[#allocation32_spill] sm:$0xff] %v5638_v36  ;;  %v5652_v44 = vrot.slane %v5521_v22, %v5376_v57 }
  0xd6   : > { %v840_v39 = vsel %vm830_vm3, %v5632_v46, %v811_v56  ;;  %v711_v30 = vsel %vm701_vm2, %v5634_v28, %v682_v53  ;;  %v5660_v53 = vrot.slane %v5548_v4, %v5358_v51 }
  0xd7   : > { %v917_v21 = vmul.f32 %v5624_v0, %v840_v39  ;;  %v788_v31 = vmul.f32 %v5628_v62, %v711_v30  ;;  %1806 = vmatprep.subr.bf16.mxu1 %v1546_v1  ;;  %1396 = vrot.lane.b32.xlu1 %v5109_v2, %s8858_s26  ;;  %9030 = vst [vmem:[#allocation33_spill] sm:$0xff] %v5652_v44 }
  0xd8   : > { %1394 = vrot.lane.b32.xlu0 %v5282_v23, %s8858_s26  ;;  %9032 = vst [vmem:[#allocation35_spill] sm:$0xff] %v5660_v53  ;;  %v998_v30 = vmul.f32 %v5638_v36, %v5159_v5  ;;  %v997_v5 = vmul.f32 %v5660_v53, %v5162_v6  ;;  %v5692_v6 = vrot.slane %v5521_v22, %v5436_v52 }
  0xd9   : > { %v1545_v56 = vpack.c.bf16 %v917_v21, %v788_v31  ;;  %v5656_v35 = vpop.permute.xlu1 %1023  ;;  %v1022_v20 = vpop.permute.xlu0 %1021  ;;  %v5672_v21 = vrot.slane %v5548_v4, %v5376_v57 }
  0xda   : > { %9031 = vst [vmem:[#allocation34_spill] sm:$0xff] %v5656_v35  ;;  %v1047_v39 = vsel %vm1039_vm4, %v1022_v20, %v5656_v35  ;;  %9035 = vst [vmem:[#allocation38_spill] sm:$0xff] %v5692_v6 }
  0xdb   : > { %v1127_v1 = vmul.f32 %v5652_v44, %v1047_v39  ;;  %1807 = vmatpush1.bf16.msra.mxu1 %v1545_v56  ;;  %824 = vrot.lane.b32.xlu1 %v5577_v61, %s9025_s27  ;;  %9033 = vst [vmem:[#allocation36_spill] sm:$0xff] %v5672_v21 }
  0xdc   : > { %695 = vrot.lane.b32.xlu0 %v5577_v61, %s9028_s28 }
  0xdd   : > { %v1151_v31 = vpop.permute.xlu1 %1150  ;;  %v5678_v36 = vpop.permute.xlu0 %1019  ;;  %v1562_v62 = vpack.c.bf16 %v1127_v1, %v998_v30 }
  0xde   : > { %v1048_v56 = vsel %vm1039_vm4, %v5678_v36, %v1022_v20  ;;  %v5698_v20 = vrot.slane %v5521_v22, %v5439_v54  ;;  %v5715_v22 = vrot.slane %v5548_v4, %v5436_v52 }
  0xdf   : > { %v1126_v39 = vmul.f32 %v5672_v21, %v1048_v56  ;;  %1808 = vmatprep.subr.bf16.mxu1 %v1562_v62  ;;  %548 = vrot.lane.b32.xlu1 %v5128_v3, %s8788_s30  ;;  %s9049_s30 = smov 16  }
  0xe0   : > { %417 = vrot.lane.b32.xlu0 %v5128_v3, %s8786_s11  ;;  %9036 = vst [vmem:[#allocation39_spill] sm:$0xff] %v5698_v20  ;;  %9038 = vst [vmem:[#allocation41_spill] sm:$0xff] %v5715_v22  ;;  %s9051_s11 = smov 17  }
  0xe1   : > { %v1561_v44 = vpack.c.bf16 %v1126_v39, %v997_v5  ;;  %v1280_v0 = vpop.permute.xlu1 %1279  ;;  %v5688_v35 = vpop.permute.xlu0 %1152  ;;  %v5722_v39 = vrot.slane %v5548_v4, %v5439_v54 }
  0xe2   : > { %9034 = vst [vmem:[#allocation37_spill] sm:$0xff] %v5688_v35  ;;  %v1176_v62 = vsel %vm1168_vm5, %v1151_v31, %v5688_v35 }
  0xe3   : > { %1809 = vmatpush1.bf16.msra.mxu1 %v1561_v44  ;;  %1035 = vrot.lane.b32.xlu1 %v5524_v12, %s8818_s20  ;;  %v1256_v5 = vmul.f32 %v5692_v6, %v1176_v62  ;;  %9039 = vst [vmem:[#allocation42_spill] sm:$0xff] %v5722_v39 }
  0xe4   : > { %1037 = vrot.lane.b32.xlu0 %v5334_v42, %s8818_s20 }
  0xe5   : > { %v5705_v30 = vpop.permute.xlu1 %1148  ;;  %v5707_v1 = vpop.permute.xlu0 %1281 }
  0xe6   : > { %9037 = vst [vmem:[#allocation40_spill] sm:$0xff] %v5707_v1  ;;  %v1305_v44 = vsel %vm1297_vm6, %v1280_v0, %v5707_v1  ;;  %v1177_v53 = vsel %vm1168_vm5, %v5705_v30, %v1151_v31  ;;  %v4758_v31 = vld [vmem:[%s8737_s1 + $0xb8] ss:$0 sm:$0xff] }
  0xe7   : > { %v1385_v56 = vmul.f32 %v5698_v20, %v1305_v44  ;;  %806 = vrot.lane.b32.xlu1 %v5128_v3, %s9025_s27  ;;  %v1255_v20 = vmul.f32 %v5715_v22, %v1177_v53 }
  0xe8   : > { %677 = vrot.lane.b32.xlu0 %v5128_v3, %s9028_s28  ;;  %v4757_v3 = vld [vmem:[%s8737_s1 + $0xb0] ss:$0 sm:$0xff] }
  0xe9   : > { %v5729_v62 = vpop.permute.xlu1 %1406  ;;  %v5731_v6 = vpop.permute.xlu0 %1277  ;;  %v1578_v21 = vpack.c.bf16 %v1385_v56, %v1256_v5 }
  0xea   : > { %v1306_v44 = vsel %vm1297_vm6, %v5731_v6, %v1280_v0 }
  0xeb   : > { %v1384_v4 = vmul.f32 %v5722_v39, %v1306_v44  ;;  %1810 = vmatprep.subr.bf16.mxu1 %v1578_v21  ;;  %1295 = vrot.lane.b32.xlu1 %v5334_v42, %s8856_s25 }
  0xec   : > { %1166 = vrot.lane.b32.xlu0 %v5334_v42, %s8816_s21 }
  0xed   : > { %v1577_v0 = vpack.c.bf16 %v1384_v4, %v1255_v20  ;;  %v5748_v5 = vpop.permute.xlu1 %1410  ;;  %v1409_v53 = vpop.permute.xlu0 %1408  ;;  %v5763_v20 = vld [vmem:[%s8737_s1 + $0x58] sm:$0xff] }
  0xee   : > { %9040 = vst [vmem:[#allocation43_spill] sm:$0xff] %v5748_v5  ;;  %v1434_v21 = vsel %vm1426_vm7, %v1409_v53, %v5748_v5  ;;  %v1435_v56 = vsel %vm1426_vm7, %v5729_v62, %v1409_v53 }
  0xef   : > { %v1513_v44 = vmul.f32 %v4757_v3, %v1435_v56  ;;  %v1514_v39 = vmul.f32 %v4758_v31, %v1434_v21  ;;  %1811 = vmatpush1.bf16.msra.mxu1 %v1577_v0  ;;  %1293 = vrot.lane.b32.xlu1 %v5524_v12, %s8856_s25  ;;  %v5769_v3 = vrot.slane %v5763_v20, %v5252_v15 }
  0xf0   : > { %1164 = vrot.lane.b32.xlu0 %v5524_v12, %s8816_s21  ;;  %v5777_v0 = vrot.slane %v5763_v20, %v5255_v16 }
  0xf1   : > { %v1593_v4 = vpack.c.bf16 %v1513_v44, %v1513_v44  ;;  %v1594_v22 = vpack.c.bf16 %v1514_v39, %v1514_v39  ;;  %v5765_v35 = vpop.permute.xlu1 %431  ;;  %v430_v1 = vpop.permute.xlu0 %429  ;;  %9042 = vst [vmem:[#allocation45_spill] sm:$0xff] %v5769_v3  ;;  %v5782_v39 = vld [vmem:[%s8737_s1 + $0x50] sm:$0xff] }
  0xf2   : > { %9041 = vst [vmem:[#allocation44_spill] sm:$0xff] %v5765_v35  ;;  %9043 = vst [vmem:[#allocation46_spill] sm:$0xff] %v5777_v0  ;;  %v448_v53 = vsel %vm443_vm1, %v430_v1, %v5765_v35  ;;  %v5796_v44 = vrot.slane %v5782_v39, %v5255_v16 }
  0xf3   : > { %4774 = vmatprep.subr.msk.bf16.mxu1 %vm1626_vm8, %v1594_v22  ;;  %1422 = vrot.lane.b32.xlu1 %v5524_v12, %s8858_s26  ;;  %v1646_v31 = vsel %vm1626_vm8, %v1593_v4, 0  ;;  %v535_v4 = vmul.f32 %v5769_v3, %v448_v53 }
  0xf4   : > { %1017 = vrot.lane.b32.xlu0 %v5173_v7, %s8818_s20  ;;  %1813 = vmatpush1.bf16.msra.mxu1 %v1646_v31  ;;  %9045 = vst [vmem:[#allocation48_spill] sm:$0xff] %v5796_v44  ;;  %v5806_v31 = vrot.slane %v5782_v39, %v5252_v15 }
  0xf5   : > { %v5789_v22 = vpop.permute.xlu1 %562  ;;  %v561_v21 = vpop.permute.xlu0 %560 }
  0xf6   : > { %9044 = vst [vmem:[#allocation47_spill] sm:$0xff] %v5789_v22  ;;  %v577_v56 = vsel %vm572_vm0, %v561_v21, %v5789_v22  ;;  %9046 = vst [vmem:[#allocation49_spill] sm:$0xff] %v5806_v31 }
  0xf7   : > { %v664_v5 = vmul.f32 %v5777_v0, %v577_v56  ;;  %4775 = vmatmul.mubr.msk.bf16.vlgmr.msra.gmra.mrb[4].mxu1 %vm1622_vm9, %v5543_v50  ;;  %1146 = vrot.lane.b32.xlu1 %v5173_v7, %s8816_s21 }
  0xf8   : > { %1424 = vrot.lane.b32.xlu0 %v5334_v42, %s8858_s26  ;;  %1922 = vmatprep.mubr.bf16.mxu1 %v9020_v19 }
  0xf9   : > { %v5811_v35 = vpop.permute.xlu1 %558  ;;  %v5813_v53 = vpop.permute.xlu0 %427  ;;  %v1534_v56 = vpack.c.bf16 %v664_v5, %v535_v4 }
  0xfa   : > { %v578_v0 = vsel %vm572_vm0, %v5811_v35, %v561_v21  ;;  %v449_v3 = vsel %vm443_vm1, %v5813_v53, %v430_v1  ;;  %v5831_v21 = vrot.slane %v5763_v20, %v5324_v38  ;;  %v5837_v1 = vrot.slane %v5763_v20, %v5329_v41 }
  0xfb   : > { %v663_v22 = vmul.f32 %v5796_v44, %v578_v0  ;;  %v534_v37 = vmul.f32 %v5806_v31, %v449_v3  ;;  %1890 = vmatprep.subr.bf16.mxu1 %v1534_v56  ;;  %1404 = vrot.lane.b32.xlu1 %v5173_v7, %s8858_s26  ;;  %v5859_v44 = vrot.slane %v5782_v39, %v5324_v38  ;;  %v5864_v31 = vld [vmem:[%s8737_s1 + $0x8] sm:$0xff] }
  0xfc   : > { %1275 = vrot.lane.b32.xlu0 %v5173_v7, %s8856_s25  ;;  %9048 = vst [vmem:[#allocation51_spill] sm:$0xff] %v5831_v21  ;;  %9050 = vst [vmem:[#allocation52_spill] sm:$0xff] %v5837_v1 }
  0xfd   : > { %v1533_v42 = vpack.c.bf16 %v663_v22, %v534_v37  ;;  %v5827_v5 = vpop.permute.xlu1 %691  ;;  %v690_v4 = vpop.permute.xlu0 %689  ;;  %9054 = vst [vmem:[#allocation55_spill] sm:$0xff] %v5859_v44 }
  0xfe   : > { %9047 = vst [vmem:[#allocation50_spill] sm:$0xff] %v5827_v5  ;;  %v706_v7 = vsel %vm701_vm2, %v690_v4, %v5827_v5 }
  0xff   : > { %1891 = vmatpush1.bf16.msra.mxu1 %v1533_v42  ;;  %556 = vrot.lane.b32.xlu1 %v5192_v8, %s9049_s30  ;;  %v793_v22 = vmul.f32 %v5831_v21, %v706_v7  ;;  %v5855_v42 = vrot.slane %v5782_v39, %v5329_v41 }
 0x100   : > { %425 = vrot.lane.b32.xlu0 %v5192_v8, %s9051_s11 }
 0x101   : > { %v5844_v37 = vpop.permute.xlu1 %820  ;;  %v819_v3 = vpop.permute.xlu0 %818  ;;  %9053 = vst [vmem:[#allocation54_spill] sm:$0xff] %v5855_v42 }
 0x102   : > { %9052 = vst [vmem:[#allocation53_spill] sm:$0xff] %v5844_v37  ;;  %v835_v0 = vsel %vm830_vm3, %v819_v3, %v5844_v37  ;;  %v5880_v37 = vrot.slane %v5864_v31, %v5252_v15 }
 0x103   : > { %v922_v56 = vmul.f32 %v5837_v1, %v835_v0  ;;  %814 = vrot.lane.b32.xlu1 %v5192_v8, %s9025_s27 }
 0x104   : > { %685 = vrot.lane.b32.xlu0 %v5192_v8, %s9028_s28  ;;  %9056 = vst [vmem:[#allocation57_spill] sm:$0xff] %v5880_v37 }
 0x105   : > { %v5868_v7 = vpop.permute.xlu1 %816  ;;  %v5870_v0 = vpop.permute.xlu0 %687  ;;  %v1550_v1 = vpack.c.bf16 %v922_v56, %v793_v22  ;;  %v5888_v22 = vrot.slane %v5864_v31, %v5255_v16 }
 0x106   : > { %9055 = vst [vmem:[#allocation56_spill] sm:$0xff] %v5870_v0  ;;  %v836_v21 = vsel %vm830_vm3, %v5868_v7, %v819_v3  ;;  %v707_v5 = vsel %vm701_vm2, %v5870_v0, %v690_v4 }
 0x107   : > { %v921_v47 = vmul.f32 %v5855_v42, %v836_v21  ;;  %v792_v8 = vmul.f32 %v5859_v44, %v707_v5  ;;  %1892 = vmatprep.subr.bf16.mxu1 %v1550_v1  ;;  %1154 = vrot.lane.b32.xlu1 %v5233_v11, %s8816_s21  ;;  %9057 = vst [vmem:[#allocation58_spill] sm:$0xff] %v5888_v22 }
 0x108   : > { %1025 = vrot.lane.b32.xlu0 %v5233_v11, %s8818_s20  ;;  %v5900_v1 = vrot.slane %v5763_v20, %v5358_v51 }
 0x109   : > { %v1549_v4 = vpack.c.bf16 %v921_v47, %v792_v8  ;;  %v541_v3 = vpop.permute.xlu1 %540  ;;  %v410_v56 = vpop.permute.xlu0 %409 }
 0x10a   : > { %v458_v21 = vsel %vm443_vm1, %v410_v56, %v5313_v34  ;;  %v587_v5 = vsel %vm572_vm0, %v541_v3, %v5311_v33  ;;  %9058 = vst [vmem:[#allocation59_spill] sm:$0xff] %v5900_v1  ;;  %v5910_v34 = vrot.slane %v5763_v20, %v5376_v57  ;;  %v5915_v33 = vld [vmem:[%s8737_s1] sm:$0xff] }
 0x10b   : > { %1893 = vmatpush1.bf16.msra.mxu1 %v1549_v4  ;;  %1412 = vrot.lane.b32.xlu1 %v5233_v11, %s8858_s26  ;;  %v525_v47 = vmul.f32 %v5880_v37, %v458_v21  ;;  %v654_v8 = vmul.f32 %v5888_v22, %v587_v5  ;;  %v1002_v21 = vmul.f32 %v5900_v1, %v5219_v9 }
 0x10c   : > { %1283 = vrot.lane.b32.xlu0 %v5233_v11, %s8856_s25  ;;  %9059 = vst [vmem:[#allocation60_spill] sm:$0xff] %v5910_v34  ;;  %v5928_v5 = vrot.slane %v5915_v33, %v5255_v16  ;;  %v5935_v9 = vrot.slane %v5915_v33, %v5252_v15  ;;  %v5946_v37 = vrot.slane %v5782_v39, %v5358_v51 }
 0x10d   : > { %v5917_v4 = vpop.permute.xlu1 %1031  ;;  %v1524_v42 = vpack.c.bf16 %v654_v8, %v525_v47 }
 0x10e   : > { %9060 = vst [vmem:[#allocation61_spill] sm:$0xff] %v5917_v4  ;;  %v1030_v44 = vpop.permute.xlu0 %1029  ;;  %9061 = vst [vmem:[#allocation62_spill] sm:$0xff] %v5928_v5 }
 0x10f   : > { %v1043_v11 = vsel %vm1039_vm4, %v1030_v44, %v5917_v4  ;;  %564 = vrot.lane.b32.xlu1 %v5309_v32, %s9049_s30  ;;  %1675 = vmatprep.subr.bf16.mxu0 %v1524_v42  ;;  %9062 = vst [vmem:[#allocation63_spill] sm:$0xff] %v5935_v9  ;;  %9063 = vst [vmem:[#allocation64_spill] sm:$0xff] %v5946_v37  ;;  %v1001_v4 = vmul.f32 %v5946_v37, %v5222_v10 }
 0x110   : > { %v1131_v22 = vmul.f32 %v5910_v34, %v1043_v11  ;;  %433 = vrot.lane.b32.xlu0 %v5309_v32, %s9051_s11  ;;  %v5979_v10 = vrot.slane %v5864_v31, %v5329_v41 }
 0x111   : > { %v5937_v47 = vpop.permute.xlu1 %570 }
 0x112   : > { %v588_v8 = vsel %vm572_vm0, %v5937_v47, %v541_v3  ;;  %v5942_v42 = vpop.permute.xlu0 %439  ;;  %v1566_v1 = vpack.c.bf16 %v1131_v22, %v1002_v21  ;;  %v5958_v22 = vrot.slane %v5782_v39, %v5376_v57  ;;  %9066 = vst [vmem:[#allocation67_spill] sm:$0xff] %v5979_v10 }
 0x113   : > { %v459_v11 = vsel %vm443_vm1, %v5942_v42, %v410_v56  ;;  %822 = vrot.lane.b32.xlu1 %v5309_v32, %s9025_s27  ;;  %v653_v34 = vmul.f32 %v5928_v5, %v588_v8 }
 0x114   : > { %693 = vrot.lane.b32.xlu0 %v5309_v32, %s9028_s28  ;;  %1894 = vmatprep.subr.bf16.mxu1 %v1566_v1  ;;  %9064 = vst [vmem:[#allocation65_spill] sm:$0xff] %v5958_v22  ;;  %v524_v3 = vmul.f32 %v5935_v9, %v459_v11  ;;  %v5972_v32 = vrot.slane %v5864_v31, %v5324_v38 }
 0x115   : > { %v670_v21 = vpop.permute.xlu1 %669 }
 0x116   : > { %v5963_v56 = vpop.permute.xlu0 %1027  ;;  %v1523_v0 = vpack.c.bf16 %v653_v34, %v524_v3  ;;  %9065 = vst [vmem:[#allocation66_spill] sm:$0xff] %v5972_v32 }
 0x117   : > { %v1044_v8 = vsel %vm1039_vm4, %v5963_v56, %v1030_v44  ;;  %1162 = vrot.lane.b32.xlu1 %v5577_v61, %s8816_s21  ;;  %v716_v44 = vsel %vm701_vm2, %v670_v21, %v5382_v59  ;;  %v1606_v59 = vld [vmem:[%s8739_s3 + $0x8] sm:$0xff]  ;;  %s9188_s21 = smov 112  }
 0x118   : > { %v1130_v1 = vmul.f32 %v5958_v22, %v1044_v8  ;;  %1033 = vrot.lane.b32.xlu0 %v5577_v61, %s8818_s20  ;;  %1676 = vmatpush1.bf16.msra.mxu0 %v1523_v0  ;;  %v783_v0 = vmul.f32 %v5972_v32, %v716_v44  ;;  %v6036_v22 = vrot.slane %v5864_v31, %v5358_v51  ;;  %s9186_s20 = smov 111  }
 0x119   : > { %v1159_v34 = vpop.permute.xlu1 %1158 }
 0x11a   : > { %v1565_v11 = vpack.c.bf16 %v1130_v1, %v1001_v4  ;;  %v799_v3 = vpop.permute.xlu0 %798  ;;  %9073 = vst [vmem:[#allocation74_spill] sm:$0xff] %v6036_v22 }
 0x11b   : > { %v845_v9 = vsel %vm830_vm3, %v799_v3, %v5380_v58  ;;  %1420 = vrot.lane.b32.xlu1 %v5577_v61, %s8858_s26  ;;  %v1605_v58 = vld [vmem:[%s8739_s3] sm:$0xff]  ;;  %s9183_s26 = smov 127  }
 0x11c   : > { %v912_v8 = vmul.f32 %v5979_v10, %v845_v9  ;;  %1291 = vrot.lane.b32.xlu0 %v5577_v61, %s8856_s25  ;;  %1895 = vmatpush1.bf16.msra.mxu1 %v1565_v11  ;;  %v6003_v9 = vrot.slane %v5763_v20, %v5436_v52  ;;  %v6007_v61 = vrot.slane %v5763_v20, %v5439_v54 }
 0x11d   : > { %v1288_v4 = vpop.permute.xlu1 %1287 }
 0x11e   : > { %v5999_v1 = vpop.permute.xlu0 %1160  ;;  %v1540_v5 = vpack.c.bf16 %v912_v8, %v783_v0  ;;  %9068 = vst [vmem:[#allocation69_spill] sm:$0xff] %v6003_v9  ;;  %9069 = vst [vmem:[#allocation70_spill] sm:$0xff] %v6007_v61 }
 0x11f   : > { %9067 = vst [vmem:[#allocation68_spill] sm:$0xff] %v5999_v1  ;;  %1614 = vperm.xlu1 %4881, %v1606_v59   ;;  %v1172_v44 = vsel %vm1168_vm5, %v1159_v34, %v5999_v1  ;;  %v6027_v59 = vrot.slane %v5915_v33, %v5329_v41 }
 0x120   : > { %1609 = vperm.xlu0 %4880, %v1605_v58   ;;  %1677 = vmatprep.subr.bf16.mxu0 %v1540_v5  ;;  %v1260_v8 = vmul.f32 %v6003_v9, %v1172_v44  ;;  %v6022_v5 = vrot.slane %v5915_v33, %v5324_v38 }
 0x121   : > { %v6012_v11 = vpop.permute.xlu1 %699  ;;  %9072 = vst [vmem:[#allocation73_spill] sm:$0xff] %v6027_v59 }
 0x122   : > { %v6014_v32 = vpop.permute.xlu0 %1289  ;;  %9071 = vst [vmem:[#allocation72_spill] sm:$0xff] %v6022_v5  ;;  %v717_v58 = vsel %vm701_vm2, %v6012_v11, %v670_v21  ;;  %v6050_v21 = vrot.slane %v5782_v39, %v5436_v52 }
 0x123   : > { %9070 = vst [vmem:[#allocation71_spill] sm:$0xff] %v6014_v32  ;;  %v1301_v0 = vsel %vm1297_vm6, %v1288_v4, %v6014_v32  ;;  %v782_v37 = vmul.f32 %v6022_v5, %v717_v58  ;;  %v992_v32 = vmul.f32 %v6036_v22, %v5109_v2 }
 0x124   : > { %v1389_v20 = vmul.f32 %v6007_v61, %v1301_v0  ;;  %v6045_v61 = vrot.slane %v5864_v31, %v5376_v57  ;;  %9075 = vst [vmem:[#allocation76_spill] sm:$0xff] %v6050_v21 }
 0x125   : > { %v6032_v10 = vpop.permute.xlu1 %1156 }
 0x126   : > { %v6038_v44 = vpop.permute.xlu0 %828  ;;  %v1582_v9 = vpack.c.bf16 %v1389_v20, %v1260_v8  ;;  %9074 = vst [vmem:[#allocation75_spill] sm:$0xff] %v6045_v61  ;;  %v6055_v8 = vrot.slane %v5782_v39, %v5439_v54  ;;  %v2068_v39 = vld [vmem:[%s8741_s5] sm:$0xff] }
 0x127   : > { %v846_v0 = vsel %vm830_vm3, %v6038_v44, %v799_v3  ;;  %v1173_v3 = vsel %vm1168_vm5, %v6032_v10, %v1159_v34  ;;  %2071 = vperm.xlu1 %4881, %v2068_v39  }
 0x128   : > { %v911_v1 = vmul.f32 %v6027_v59, %v846_v0  ;;  %1896 = vmatprep.subr.bf16.mxu1 %v1582_v9  ;;  %9076 = vst [vmem:[#allocation77_spill] sm:$0xff] %v6055_v8  ;;  %v1259_v2 = vmul.f32 %v6050_v21, %v1173_v3  ;;  %v6081_v59 = vrot.slane %v5915_v33, %v5358_v51 }
 0x129   : > { %v1010_v20 = vpop.permute.xlu1 %1009  ;;  %v6090_v3 = vrot.slane %v5915_v33, %v5376_v57 }
 0x12a   : > { %v1053_v58 = vsel %vm1039_vm4, %v1010_v20, %v5425_v40  ;;  %v6065_v5 = vpop.permute.xlu0 %1285  ;;  %v1539_v0 = vpack.c.bf16 %v911_v1, %v782_v37  ;;  %v4761_v37 = vld [vmem:[%s8737_s1 + $0xd0] ss:$0 sm:$0xff]  ;;  %9077 = vst [vmem:[#allocation78_spill] sm:$0xff] %v6081_v59 }
 0x12b   : > { %v1121_v9 = vmul.f32 %v6045_v61, %v1053_v58  ;;  %v1302_v34 = vsel %vm1297_vm6, %v6065_v5, %v1288_v4  ;;  %9078 = vst [vmem:[#allocation79_spill] sm:$0xff] %v6090_v3 }
 0x12c   : > { %v1388_v22 = vmul.f32 %v6055_v8, %v1302_v34  ;;  %1678 = vmatpush1.bf16.msra.mxu0 %v1539_v0 }
 0x12d   : > { %v1417_v40 = vpop.permute.xlu1 %1416  ;;  %v1556_v1 = vpack.c.bf16 %v1121_v9, %v992_v32  ;;  %v6095_v32 = vld [vmem:[%s8737_s1 + $0x78] sm:$0xff]  ;;  %v991_v9 = vmul.f32 %v6081_v59, %v5282_v23 }
 0x12e   : > { %v1581_v58 = vpack.c.bf16 %v1388_v22, %v1259_v2  ;;  %v6083_v61 = vpop.permute.xlu0 %1414  ;;  %v4762_v22 = vld [vmem:[%s8737_s1 + $0xd8] ss:$0 sm:$0xff]  ;;  %v6119_v23 = vrot.slane %v6095_v32, %v5252_v15 }
 0x12f   : > { %v1431_v4 = vsel %vm1426_vm7, %v6083_v61, %v1417_v40  ;;  %1679 = vmatprep.subr.bf16.mxu0 %v1556_v1 }
 0x130   : > { %v1517_v0 = vmul.f32 %v4761_v37, %v1431_v4  ;;  %1897 = vmatpush1.bf16.msra.mxu1 %v1581_v58  ;;  %v6115_v58 = vrot.slane %v6095_v32, %v5255_v16  ;;  %9081 = vst [vmem:[#allocation82_spill] sm:$0xff] %v6119_v23 }
 0x131   : > { %v6097_v39 = vpop.permute.xlu1 %1007 }
 0x132   : > { %v1054_v34 = vsel %vm1039_vm4, %v6097_v39, %v1010_v20  ;;  %v6107_v2 = vpop.permute.xlu0 %1418  ;;  %9080 = vst [vmem:[#allocation81_spill] sm:$0xff] %v6115_v58  ;;  %v1597_v4 = vpack.c.bf16 %v1517_v0, %v1517_v0  ;;  %v6130_v0 = vrot.slane %v5864_v31, %v5439_v54 }
 0x133   : > { %9079 = vst [vmem:[#allocation80_spill] sm:$0xff] %v6107_v2  ;;  %v1120_v37 = vmul.f32 %v6090_v3, %v1054_v34  ;;  %v1430_v1 = vsel %vm1426_vm7, %v1417_v40, %v6107_v2 }
 0x134   : > { %v1518_v8 = vmul.f32 %v4762_v22, %v1430_v1  ;;  %9082 = vst [vmem:[#allocation83_spill] sm:$0xff] %v6130_v0 }
 0x135   : > { %v569_v21 = vpop.permute.xlu1 %568  ;;  %v1555_v20 = vpack.c.bf16 %v1120_v37, %v991_v9  ;;  %v6142_v9 = vld [vmem:[%s8737_s1 + $0x70] sm:$0xff] }
 0x136   : > { %v1598_v59 = vpack.c.bf16 %v1518_v8, %v1518_v8  ;;  %v573_v34 = vsel %vm572_vm0, %v569_v21, %v5937_v47  ;;  %v438_v3 = vpop.permute.xlu0 %437  ;;  %v1658_v8 = vsel %vm1626_vm8, %v1597_v4, 0  ;;  %v6137_v47 = vrot.slane %v5864_v31, %v5436_v52 }
 0x137   : > { %v668_v40 = vmul.f32 %v6115_v58, %v573_v34  ;;  %v444_v2 = vsel %vm443_vm1, %v438_v3, %v5942_v42  ;;  %1680 = vmatpush1.bf16.msra.mxu0 %v1555_v20  ;;  %v6153_v4 = vrot.slane %v6142_v9, %v5255_v16 }
 0x138   : > { %v539_v22 = vmul.f32 %v6119_v23, %v444_v2  ;;  %4778 = vmatprep.subr.msk.bf16.mxu1 %vm1626_vm8, %v1598_v59  ;;  %9083 = vst [vmem:[#allocation84_spill] sm:$0xff] %v6137_v47  ;;  %v6181_v23 = vrot.slane %v5915_v33, %v5436_v52 }
 0x139   : > { %1899 = vmatpush1.bf16.msra.mxu1 %v1658_v8  ;;  %v1268_v42 = vpop.permute.xlu1 %1267  ;;  %9084 = vst [vmem:[#allocation85_spill] sm:$0xff] %v6153_v4 }
 0x13a   : > { %v1311_v37 = vsel %vm1297_vm6, %v1268_v42, %v5488_v48  ;;  %v1139_v2 = vpop.permute.xlu0 %1138  ;;  %v1538_v1 = vpack.c.bf16 %v668_v40, %v539_v22  ;;  %v6160_v48 = vrot.slane %v6142_v9, %v5252_v15  ;;  %9087 = vst [vmem:[#allocation88_spill] sm:$0xff] %v6181_v23 }
 0x13b   : > { %v1379_v59 = vmul.f32 %v6130_v0, %v1311_v37  ;;  %v1182_v31 = vsel %vm1168_vm5, %v1139_v2, %v5462_v18 }
 0x13c   : > { %v1250_v20 = vmul.f32 %v6137_v47, %v1182_v31  ;;  %4779 = vmatmul.mubr.msk.bf16.vlgmr.msra.gmra.mrb[8].mxu1 %vm1622_vm9, %v5543_v50  ;;  %1976 = vmatprep.subr.bf16.mxu1 %v1538_v1  ;;  %9085 = vst [vmem:[#allocation86_spill] sm:$0xff] %v6160_v48  ;;  %v6176_v1 = vrot.slane %v5915_v33, %v5439_v54 }
 0x13d   : > { %v6162_v34 = vpop.permute.xlu1 %566  ;;  %2008 = vmatprep.mubr.bf16.mxu1 %v9020_v19 }
 0x13e   : > { %v574_v18 = vsel %vm572_vm0, %v6162_v34, %v569_v21  ;;  %v6168_v40 = vpop.permute.xlu0 %435  ;;  %v1572_v22 = vpack.c.bf16 %v1379_v59, %v1250_v20  ;;  %9086 = vst [vmem:[#allocation87_spill] sm:$0xff] %v6176_v1 }
 0x13f   : > { %v667_v8 = vmul.f32 %v6153_v4, %v574_v18  ;;  %v445_v37 = vsel %vm443_vm1, %v6168_v40, %v438_v3 }
 0x140   : > { %v538_v31 = vmul.f32 %v6160_v48, %v445_v37  ;;  %1681 = vmatprep.subr.bf16.mxu0 %v1572_v22  ;;  %v6196_v22 = vrot.slane %v6095_v32, %v5329_v41 }
 0x141   : > { %v6183_v21 = vpop.permute.xlu1 %1265 }
 0x142   : > { %v1537_v59 = vpack.c.bf16 %v667_v8, %v538_v31  ;;  %v1312_v20 = vsel %vm1297_vm6, %v6183_v21, %v1268_v42  ;;  %v6188_v18 = vpop.permute.xlu0 %1136  ;;  %9088 = vst [vmem:[#allocation89_spill] sm:$0xff] %v6196_v22  ;;  %v6201_v8 = vrot.slane %v6095_v32, %v5324_v38 }
 0x143   : > { %v1378_v3 = vmul.f32 %v6176_v1, %v1312_v20  ;;  %v1183_v37 = vsel %vm1168_vm5, %v6188_v18, %v1139_v2  ;;  %v6279_v1 = vrot.slane %v6142_v9, %v5376_v57 }
 0x144   : > { %v1249_v33 = vmul.f32 %v6181_v23, %v1183_v37  ;;  %1977 = vmatpush1.bf16.msra.mxu1 %v1537_v59  ;;  %9089 = vst [vmem:[#allocation90_spill] sm:$0xff] %v6201_v8  ;;  %v4752_v59 = vld [vmem:[%s8737_s1 + $0x88] ss:$0 sm:$0xff] }
 0x145   : > { %v827_v42 = vpop.permute.xlu1 %826  ;;  %9098 = vst [vmem:[#allocation99_spill] sm:$0xff] %v6279_v1 }
 0x146   : > { %v831_v31 = vsel %vm830_vm3, %v827_v42, %v6038_v44  ;;  %v698_v20 = vpop.permute.xlu0 %697  ;;  %v1571_v4 = vpack.c.bf16 %v1378_v3, %v1249_v33  ;;  %v4751_v44 = vld [vmem:[%s8737_s1 + $0x80] ss:$0 sm:$0xff] }
 0x147   : > { %v926_v2 = vmul.f32 %v6196_v22, %v831_v31  ;;  %v702_v48 = vsel %vm701_vm2, %v698_v20, %v6012_v11  ;;  %v6231_v22 = vrot.slane %v6142_v9, %v5324_v38 }
 0x148   : > { %v797_v37 = vmul.f32 %v6201_v8, %v702_v48  ;;  %1682 = vmatpush1.bf16.msra.mxu0 %v1571_v4  ;;  %v6227_v48 = vrot.slane %v6142_v9, %v5329_v41 }
 0x149   : > { %v1397_v58 = vpop.permute.xlu1 %1396  ;;  %9091 = vst [vmem:[#allocation92_spill] sm:$0xff] %v6231_v22 }
 0x14a   : > { %v1440_v3 = vsel %vm1426_vm7, %v1397_v58, %v5486_v45  ;;  %v6220_v33 = vpop.permute.xlu0 %1394  ;;  %v1554_v31 = vpack.c.bf16 %v926_v2, %v797_v37  ;;  %9090 = vst [vmem:[#allocation91_spill] sm:$0xff] %v6227_v48  ;;  %v6236_v45 = vld [vmem:[%s8737_s1 + $0x20] sm:$0xff]  ;;  %v6241_v2 = vld [vmem:[%s8737_s1 + $0x28] sm:$0xff] }
 0x14b   : > { %v1508_v11 = vmul.f32 %v4752_v59, %v1440_v3  ;;  %v1441_v4 = vsel %vm1426_vm7, %v6220_v33, %v1397_v58  ;;  %v6261_v23 = vrot.slane %v6241_v2, %v5255_v16 }
 0x14c   : > { %1978 = vmatprep.subr.bf16.mxu1 %v1554_v31  ;;  %v1507_v8 = vmul.f32 %v4751_v44, %v1441_v4 }
 0x14d   : > { %v1588_v58 = vpack.c.bf16 %v1508_v11, %v1508_v11  ;;  %v6243_v37 = vpop.permute.xlu1 %824  ;;  %v6257_v11 = vrot.slane %v6236_v45, %v5255_v16  ;;  %9094 = vst [vmem:[#allocation95_spill] sm:$0xff] %v6261_v23 }
 0x14e   : > { %v832_v59 = vsel %vm830_vm3, %v6243_v37, %v827_v42  ;;  %v6248_v3 = vpop.permute.xlu0 %695  ;;  %v1587_v44 = vpack.c.bf16 %v1507_v8, %v1507_v8 }
 0x14f   : > { %9092 = vst [vmem:[#allocation93_spill] sm:$0xff] %v6248_v3  ;;  %v925_v31 = vmul.f32 %v6227_v48, %v832_v59  ;;  %v703_v4 = vsel %vm701_vm2, %v6248_v3, %v698_v20  ;;  %4768 = vmatprep.subr.msk.bf16.mxu0 %vm1626_vm8, %v1588_v58  ;;  %9093 = vst [vmem:[#allocation94_spill] sm:$0xff] %v6257_v11  ;;  %v6267_v59 = vrot.slane %v6236_v45, %v5252_v15 }
 0x150   : > { %v796_v42 = vmul.f32 %v6231_v22, %v703_v4  ;;  %v1628_v8 = vsel %vm1626_vm8, %v1587_v44, 0  ;;  %v6271_v20 = vrot.slane %v6241_v2, %v5252_v15  ;;  %v6275_v48 = vrot.slane %v6142_v9, %v5358_v51 }
 0x151   : > { %9095 = vst [vmem:[#allocation96_spill] sm:$0xff] %v6267_v59  ;;  %1684 = vmatpush1.bf16.msra.mxu0 %v1628_v8  ;;  %v549_v58 = vpop.permute.xlu1 %548  ;;  %v6289_v8 = vrot.slane %v6095_v32, %v5358_v51 }
 0x152   : > { %9096 = vst [vmem:[#allocation97_spill] sm:$0xff] %v6271_v20  ;;  %9097 = vst [vmem:[#allocation98_spill] sm:$0xff] %v6275_v48  ;;  %v1553_v4 = vpack.c.bf16 %v925_v31, %v796_v42  ;;  %v583_v44 = vsel %vm572_vm0, %v549_v58, %v5580_v13  ;;  %v584_v22 = vsel %vm572_vm0, %v5284_v24, %v549_v58  ;;  %v418_v47 = vpop.permute.xlu0 %417 }
 0x153   : > { %9099 = vst [vmem:[#allocation100_spill] sm:$0xff] %v6289_v8  ;;  %v657_v0 = vmul.f32 %v6257_v11, %v584_v22  ;;  %v658_v3 = vmul.f32 %v6261_v23, %v583_v44  ;;  %v454_v31 = vsel %vm443_vm1, %v418_v47, %v5582_v63  ;;  %v455_v13 = vsel %vm443_vm1, %v5286_v25, %v418_v47 }
 0x154   : > { %v528_v24 = vmul.f32 %v6267_v59, %v455_v13  ;;  %v529_v42 = vmul.f32 %v6271_v20, %v454_v31  ;;  %4769 = vmatmul.mubr.msk.bf16.vlgmr.msra.gmra.mrb[0].mxu0 %vm1622_vm9, %v5543_v50  ;;  %1979 = vmatpush1.bf16.msra.mxu1 %v1553_v4  ;;  %v6305_v22 = vrot.slane %v6095_v32, %v5376_v57  ;;  %v4884_v13 = vld [vmem:[%s5092_s29 + $0x78] sm:$0xff] }
 0x155   : > { %v6307_v58 = vpop.permute.xlu1 %1035  ;;  %1793 = vmatprep.mubr.bf16.mxu0 %v9020_v19  ;;  %v1005_v25 = vmul.f32 %v6275_v48, %v5524_v12  ;;  %v1006_v31 = vmul.f32 %v4884_v13, %v6289_v8  ;;  %v6322_v11 = vrot.slane %v6236_v45, %v5329_v41  ;;  %v6326_v12 = vrot.slane %v6241_v2, %v5329_v41 }
 0x156   : > { %9100 = vst [vmem:[#allocation101_spill] sm:$0xff] %v6305_v22  ;;  %v1527_v63 = vpack.c.bf16 %v657_v0, %v528_v24  ;;  %v1038_v47 = vpop.permute.xlu0 %1037  ;;  %v1528_v44 = vpack.c.bf16 %v658_v3, %v529_v42  ;;  %v6332_v24 = vrot.slane %v6236_v45, %v5324_v38 }
 0x157   : > { %v1040_v50 = vsel %vm1039_vm4, %v6307_v58, %v1038_v47  ;;  %v1055_v4 = vsel %vm1039_vm4, %v1038_v47, %v6097_v39  ;;  %9101 = vst [vmem:[#allocation102_spill] sm:$0xff] %v6322_v11  ;;  %v6336_v39 = vrot.slane %v6241_v2, %v5324_v38  ;;  %v6340_v47 = vrot.slane %v6095_v32, %v5439_v54 }
 0x158   : > { %v1134_v0 = vmul.f32 %v6279_v1, %v1040_v50  ;;  %v1135_v3 = vmul.f32 %v6305_v22, %v1055_v4  ;;  %1761 = vmatprep.subr.bf16.mxu0 %v1528_v44  ;;  %9102 = vst [vmem:[#allocation103_spill] sm:$0xff] %v6332_v24 }
 0x159   : > { %1762 = vmatpush1.bf16.msra.mxu0 %v1527_v63  ;;  %v807_v42 = vpop.permute.xlu1 %806  ;;  %9103 = vst [vmem:[#allocation104_spill] sm:$0xff] %v6340_v47 }
 0x15a   : > { %v1569_v13 = vpack.c.bf16 %v1134_v0, %v1005_v25  ;;  %v841_v50 = vsel %vm830_vm3, %v807_v42, %v5632_v46  ;;  %v842_v44 = vsel %vm830_vm3, %v5355_v49, %v807_v42  ;;  %v678_v4 = vpop.permute.xlu0 %677  ;;  %v1570_v8 = vpack.c.bf16 %v1135_v3, %v1006_v31 }
 0x15b   : > { %v915_v22 = vmul.f32 %v6322_v11, %v842_v44  ;;  %v916_v63 = vmul.f32 %v6326_v12, %v841_v50  ;;  %v712_v1 = vsel %vm701_vm2, %v678_v4, %v5634_v28  ;;  %v713_v25 = vsel %vm701_vm2, %v5337_v43, %v678_v4 }
 0x15c   : > { %v786_v46 = vmul.f32 %v6332_v24, %v713_v25  ;;  %v787_v0 = vmul.f32 %v6336_v39, %v712_v1  ;;  %1980 = vmatprep.subr.bf16.mxu1 %v1570_v8  ;;  %v6360_v49 = vrot.slane %v6095_v32, %v5436_v52  ;;  %v6371_v8 = vrot.slane %v6142_v9, %v5439_v54 }
 0x15d   : > { %v1296_v31 = vpop.permute.xlu1 %1295  ;;  %1981 = vmatpush1.bf16.msra.mxu1 %v1569_v13  ;;  %v6387_v4 = vrot.slane %v6236_v45, %v5358_v51 }
 0x15e   : > { %9104 = vst [vmem:[#allocation105_spill] sm:$0xff] %v6360_v49  ;;  %v1543_v3 = vpack.c.bf16 %v915_v22, %v786_v46  ;;  %v1313_v28 = vsel %vm1297_vm6, %v1296_v31, %v6183_v21  ;;  %v1167_v42 = vpop.permute.xlu0 %1166  ;;  %v1544_v50 = vpack.c.bf16 %v916_v63, %v787_v0  ;;  %9105 = vst [vmem:[#allocation106_spill] sm:$0xff] %v6371_v8 }
 0x15f   : > { %v1393_v43 = vmul.f32 %v6340_v47, %v1313_v28  ;;  %v1184_v1 = vsel %vm1168_vm5, %v1167_v42, %v6188_v18  ;;  %v6376_v22 = vrot.slane %v6142_v9, %v5436_v52  ;;  %v6391_v9 = vrot.slane %v6241_v2, %v5358_v51 }
 0x160   : > { %v1264_v32 = vmul.f32 %v6360_v49, %v1184_v1  ;;  %1763 = vmatprep.subr.bf16.mxu0 %v1544_v50  ;;  %v6400_v0 = vrot.slane %v6236_v45, %v5376_v57  ;;  %v4885_v50 = vld [vmem:[%s5092_s29 + $0x20] sm:$0xff]  ;;  %v6456_v49 = vrot.slane %v6236_v45, %v5439_v54 }
 0x161   : > { %9106 = vst [vmem:[#allocation107_spill] sm:$0xff] %v6376_v22  ;;  %1764 = vmatpush1.bf16.msra.mxu0 %v1543_v3  ;;  %v6378_v21 = vpop.permute.xlu1 %1293  ;;  %9107 = vst [vmem:[#allocation108_spill] sm:$0xff] %v6391_v9 }
 0x162   : > { %v1298_v13 = vsel %vm1297_vm6, %v6378_v21, %v1296_v31  ;;  %v6383_v18 = vpop.permute.xlu0 %1164  ;;  %v1586_v44 = vpack.c.bf16 %v1393_v43, %v1264_v32  ;;  %v6404_v31 = vrot.slane %v6241_v2, %v5376_v57  ;;  %v995_v43 = vmul.f32 %v4885_v50, %v6387_v4  ;;  %v4886_v32 = vld [vmem:[%s5092_s29 + $0x28] sm:$0xff]  ;;  %v4765_v50 = vld [vmem:[%s8737_s1 + $0xf0] ss:$0 sm:$0xff] }
 0x163   : > { %v1392_v63 = vmul.f32 %v6371_v8, %v1298_v13  ;;  %v1169_v25 = vsel %vm1168_vm5, %v6383_v18, %v1167_v42  ;;  %v996_v42 = vmul.f32 %v4886_v32, %v6391_v9 }
 0x164   : > { %v1263_v46 = vmul.f32 %v6376_v22, %v1169_v25  ;;  %1982 = vmatprep.subr.bf16.mxu1 %v1586_v44  ;;  %9108 = vst [vmem:[#allocation109_spill] sm:$0xff] %v6404_v31  ;;  %v6460_v22 = vrot.slane %v6241_v2, %v5439_v54 }
 0x165   : > { %v6406_v3 = vpop.permute.xlu1 %1422 }
 0x166   : > { %v1585_v28 = vpack.c.bf16 %v1392_v63, %v1263_v46  ;;  %v1018_v1 = vpop.permute.xlu0 %1017  ;;  %v6422_v63 = vrot.slane %v6236_v45, %v5436_v52 }
 0x167   : > { %v1049_v13 = vsel %vm1039_vm4, %v1018_v1, %v5678_v36  ;;  %v1050_v44 = vsel %vm1039_vm4, %v5405_v26, %v1018_v1  ;;  %v4766_v36 = vld [vmem:[%s8737_s1 + $0xf8] ss:$0 sm:$0xff] }
 0x168   : > { %v1124_v25 = vmul.f32 %v6400_v0, %v1050_v44  ;;  %v1125_v47 = vmul.f32 %v6404_v31, %v1049_v13  ;;  %1983 = vmatpush1.bf16.msra.mxu1 %v1585_v28  ;;  %v6436_v13 = vld [vmem:[%s8737_s1 + $0x48] sm:$0xff]  ;;  %v6440_v44 = vrot.slane %v6241_v2, %v5436_v52 }
 0x169   : > { %v1147_v46 = vpop.permute.xlu1 %1146  ;;  %v6472_v45 = vrot.slane %v6436_v13, %v5252_v15 }
 0x16a   : > { %v1559_v32 = vpack.c.bf16 %v1124_v25, %v995_v43  ;;  %v1179_v26 = vsel %vm1168_vm5, %v5444_v55, %v1147_v46  ;;  %v1425_v1 = vpop.permute.xlu0 %1424  ;;  %v1560_v28 = vpack.c.bf16 %v1125_v47, %v996_v42  ;;  %v4755_v47 = vld [vmem:[%s8737_s1 + $0xa0] ss:$0 sm:$0xff]  ;;  %v4756_v42 = vld [vmem:[%s8737_s1 + $0xa8] ss:$0 sm:$0xff] }
 0x16b   : > { %v1427_v8 = vsel %vm1426_vm7, %v6406_v3, %v1425_v1  ;;  %v1442_v43 = vsel %vm1426_vm7, %v1425_v1, %v6220_v33  ;;  %v1178_v33 = vsel %vm1168_vm5, %v1147_v46, %v5705_v30 }
 0x16c   : > { %v1521_v55 = vmul.f32 %v4765_v50, %v1427_v8  ;;  %v1522_v25 = vmul.f32 %v4766_v36, %v1442_v43  ;;  %1765 = vmatprep.subr.bf16.mxu0 %v1560_v28  ;;  %v1253_v8 = vmul.f32 %v6422_v63, %v1179_v26  ;;  %v6468_v36 = vrot.slane %v6436_v13, %v5255_v16 }
 0x16d   : > { %1766 = vmatpush1.bf16.msra.mxu0 %v1559_v32  ;;  %v1405_v50 = vpop.permute.xlu1 %1404  ;;  %v6483_v32 = vld [vmem:[%s8737_s1 + $0x40] sm:$0xff] }
 0x16e   : > { %v1601_v1 = vpack.c.bf16 %v1521_v55, %v1521_v55  ;;  %v1602_v28 = vpack.c.bf16 %v1522_v25, %v1522_v25  ;;  %v1436_v2 = vsel %vm1426_vm7, %v1405_v50, %v5729_v62  ;;  %v1437_v30 = vsel %vm1426_vm7, %v5506_v29, %v1405_v50  ;;  %v1276_v46 = vpop.permute.xlu0 %1275 }
 0x16f   : > { %v1511_v26 = vmul.f32 %v4755_v47, %v1437_v30  ;;  %v1512_v43 = vmul.f32 %v4756_v42, %v1436_v2  ;;  %v1307_v55 = vsel %vm1297_vm6, %v1276_v46, %v5731_v6  ;;  %v1308_v62 = vsel %vm1297_vm6, %v5464_v27, %v1276_v46 }
 0x170   : > { %v1254_v25 = vmul.f32 %v6440_v44, %v1178_v33  ;;  %v1382_v29 = vmul.f32 %v6456_v49, %v1308_v62  ;;  %v1383_v50 = vmul.f32 %v6460_v22, %v1307_v55  ;;  %4782 = vmatprep.subr.msk.bf16.mxu1 %vm1626_vm8, %v1602_v28  ;;  %v1670_v48 = vsel %vm1626_vm8, %v1601_v1, 0 }
 0x171   : > { %1985 = vmatpush1.bf16.msra.mxu1 %v1670_v48  ;;  %v6498_v47 = vrot.slane %v6483_v32, %v5255_v16  ;;  %v557_v6 = vpop.permute.xlu1 %556  ;;  %v6502_v42 = vrot.slane %v6483_v32, %v5252_v15  ;;  %v6506_v27 = vrot.slane %v6436_v13, %v5329_v41  ;;  %v6513_v2 = vrot.slane %v6436_v13, %v5324_v38 }
 0x172   : > { %v1575_v33 = vpack.c.bf16 %v1382_v29, %v1253_v8  ;;  %v579_v28 = vsel %vm572_vm0, %v557_v6, %v5811_v35  ;;  %v426_v1 = vpop.permute.xlu0 %425  ;;  %v1576_v48 = vpack.c.bf16 %v1383_v50, %v1254_v25  ;;  %v1591_v30 = vpack.c.bf16 %v1511_v26, %v1511_v26  ;;  %v6529_v26 = vld [vmem:[%s8738_s2] sm:$0xff]  }
 0x173   : > { %9109 = vst [vmem:[#allocation110_spill] sm:$0xff] %v6506_v27  ;;  %9110 = vst [vmem:[#allocation111_spill] sm:$0xff] %v6513_v2  ;;  %v1592_v46 = vpack.c.bf16 %v1512_v43, %v1512_v43  ;;  %v580_v55 = vsel %vm572_vm0, %v5555_v60, %v557_v6  ;;  %v450_v8 = vsel %vm443_vm1, %v426_v1, %v5813_v53 }
 0x174   : > { %v662_v62 = vmul.f32 %v6468_v36, %v579_v28  ;;  %v451_v35 = vsel %vm443_vm1, %v5526_v17, %v426_v1  ;;  %v533_v25 = vmul.f32 %v6472_v45, %v450_v8  ;;  %1767 = vmatprep.subr.bf16.mxu0 %v1576_v48  ;;  %4783 = vmatmul.mubr.msk.bf16.vlgmr.msra.gmra.mrb[12].mxu1 %vm1622_vm9, %v6529_v26  ;;  %v9113_v1 = vld [vmem:[#allocation29_spill] sm:$0xff]  ;;  %v9115_v8 = vld [vmem:[#allocation26_spill] sm:$0xff]  ;;  %v1640_v31 = vsel %vm1626_vm8, %v1591_v30, 0 }
 0x175   : > { %1768 = vmatpush1.bf16.msra.mxu0 %v1575_v33  ;;  %v6535_v60 = vrot.slane %v6483_v32, %v5329_v41  ;;  %v815_v53 = vpop.permute.xlu1 %814  ;;  %v6539_v17 = vrot.slane %v6483_v32, %v5324_v38  ;;  %2151 = vmatprep.mubr.bf16.mxu1 %v9020_v19  ;;  %v661_v43 = vmul.f32 %v6498_v47, %v580_v55  ;;  %v9114_v55 = vld [vmem:[#allocation56_spill] sm:$0xff] }
 0x176   : > { %v837_v29 = vsel %vm830_vm3, %v815_v53, %v5868_v7  ;;  %v686_v50 = vpop.permute.xlu0 %685  ;;  %4772 = vmatprep.subr.msk.bf16.mxu0 %vm1626_vm8, %v1592_v46  ;;  %v6549_v6 = vrot.slane %v6436_v13, %v5376_v57  ;;  %v6553_v33 = vrot.slane %v6436_v13, %v5358_v51  ;;  %v532_v28 = vmul.f32 %v6502_v42, %v451_v35 }
 0x177   : > { %v838_v48 = vsel %vm830_vm3, %v9113_v1, %v815_v53  ;;  %v708_v7 = vsel %vm701_vm2, %v686_v50, %v9114_v55  ;;  %v709_v46 = vsel %vm701_vm2, %v9115_v8, %v686_v50  ;;  %v920_v9 = vmul.f32 %v6506_v27, %v837_v29 }
 0x178   : > { %9111 = vst [vmem:[#allocation112_spill] sm:$0xff] %v6549_v6  ;;  %9112 = vst [vmem:[#allocation113_spill] sm:$0xff] %v6553_v33  ;;  %v791_v24 = vmul.f32 %v6513_v2, %v708_v7  ;;  %v1532_v11 = vpack.c.bf16 %v662_v62, %v533_v25  ;;  %v919_v53 = vmul.f32 %v6535_v60, %v838_v48  ;;  %v9119_v62 = vld [vmem:[#allocation34_spill] sm:$0xff]  ;;  %v9200_v2 = vld [vmem:[#allocation9_spill] sm:$0xff] }
 0x179   : > { %1770 = vmatpush1.bf16.msra.mxu0 %v1640_v31  ;;  %v1155_v35 = vpop.permute.xlu1 %1154  ;;  %v790_v1 = vmul.f32 %v6539_v17, %v709_v46  ;;  %v6572_v55 = vrot.slane %v6483_v32, %v5358_v51  ;;  %v1531_v29 = vpack.c.bf16 %v661_v43, %v532_v28  ;;  %v6576_v50 = vrot.slane %v6483_v32, %v5376_v57  ;;  %v4888_v28 = vld [vmem:[%s5092_s29 + $0x48] sm:$0xff]  ;;  %v4889_v46 = vld [vmem:[%s5092_s29 + $0x40] sm:$0xff] }
 0x17a   : > { %v1026_v59 = vpop.permute.xlu0 %1025  ;;  %1847 = vmatprep.subr.bf16.mxu0 %v1532_v11  ;;  %v6583_v30 = vrot.slane %v6436_v13, %v5439_v54  ;;  %v1548_v43 = vpack.c.bf16 %v920_v9, %v791_v24  ;;  %v1000_v48 = vmul.f32 %v4888_v28, %v6553_v33  ;;  %v6596_v8 = vrot.slane %v6436_v13, %v5436_v52 }
 0x17b   : > { %9116 = vst [vmem:[#allocation29_spill] sm:$0xff] %v6572_v55  ;;  %9117 = vst [vmem:[#allocation56_spill] sm:$0xff] %v6576_v50  ;;  %v1045_v31 = vsel %vm1039_vm4, %v1026_v59, %v5963_v56  ;;  %v1046_v25 = vsel %vm1039_vm4, %v9119_v62, %v1026_v59  ;;  %v1547_v56 = vpack.c.bf16 %v919_v53, %v790_v1  ;;  %v4759_v1 = vld [vmem:[%s8737_s1 + $0xc0] ss:$0 sm:$0xff]  ;;  %v4760_v62 = vld [vmem:[%s8737_s1 + $0xc8] ss:$0 sm:$0xff] }
 0x17c   : > { %9118 = vst [vmem:[#allocation26_spill] sm:$0xff] %v6583_v30  ;;  %v1129_v11 = vmul.f32 %v6549_v6, %v1045_v31  ;;  %4773 = vmatmul.mubr.msk.bf16.vlgmr.msra.gmra.mrb[4].mxu0 %vm1622_vm9, %v6529_v26  ;;  %9120 = vst [vmem:[#allocation34_spill] sm:$0xff] %v6596_v8  ;;  %v999_v59 = vmul.f32 %v4889_v46, %v6572_v55  ;;  %v6602_v31 = vrot.slane %v6483_v32, %v5439_v54  ;;  %v6634_v55 = vld [vmem:[%s8737_s1 + $0x68] sm:$0xff] }
 0x17d   : > { %1848 = vmatpush1.bf16.msra.mxu0 %v1531_v29  ;;  %v1413_v7 = vpop.permute.xlu1 %1412  ;;  %1879 = vmatprep.mubr.bf16.mxu0 %v9020_v19  ;;  %v1174_v9 = vsel %vm1168_vm5, %v1155_v35, %v6032_v10  ;;  %v1128_v29 = vmul.f32 %v6576_v50, %v1046_v25  ;;  %v9123_v25 = vld [vmem:[#allocation40_spill] sm:$0xff]  ;;  %v9125_v50 = vld [vmem:[#allocation37_spill] sm:$0xff] }
 0x17e   : > { %9121 = vst [vmem:[#allocation114_spill] sm:$0xff] %v6602_v31  ;;  %v1284_v24 = vpop.permute.xlu0 %1283  ;;  %1849 = vmatprep.subr.bf16.mxu0 %v1548_v43  ;;  %v1432_v13 = vsel %vm1426_vm7, %v1413_v7, %v6083_v61  ;;  %v9122_v43 = vld [vmem:[#allocation43_spill] sm:$0xff]  ;;  %v1564_v46 = vpack.c.bf16 %v1129_v11, %v1000_v48 }
 0x17f   : > { %v1303_v53 = vsel %vm1297_vm6, %v1284_v24, %v6065_v5  ;;  %v1433_v10 = vsel %vm1426_vm7, %v9122_v43, %v1413_v7  ;;  %v1304_v61 = vsel %vm1297_vm6, %v9123_v25, %v1284_v24  ;;  %v6629_v5 = vrot.slane %v6483_v32, %v5436_v52 }
 0x180   : > { %v1387_v28 = vmul.f32 %v6583_v30, %v1303_v53  ;;  %v1175_v7 = vsel %vm1168_vm5, %v9125_v50, %v1155_v35  ;;  %v1258_v24 = vmul.f32 %v6596_v8, %v1174_v9  ;;  %v1563_v11 = vpack.c.bf16 %v1128_v29, %v999_v59  ;;  %v9199_v30 = vld [vmem:[#allocation6_spill] sm:$0xff] }
 0x181   : > { %9124 = vst [vmem:[#allocation43_spill] sm:$0xff] %v6629_v5  ;;  %1850 = vmatpush1.bf16.msra.mxu0 %v1547_v56  ;;  %v565_v33 = vpop.permute.xlu1 %564  ;;  %v1515_v48 = vmul.f32 %v4759_v1, %v1433_v10  ;;  %v1516_v53 = vmul.f32 %v4760_v62, %v1432_v13  ;;  %v1386_v32 = vmul.f32 %v6602_v31, %v1304_v61  ;;  %v6644_v56 = vld [vmem:[%s8737_s1 + $0x60] sm:$0xff] }
 0x182   : > { %v434_v43 = vpop.permute.xlu0 %433  ;;  %1851 = vmatprep.subr.bf16.mxu0 %v1564_v46  ;;  %v6648_v25 = vrot.slane %v6634_v55, %v5255_v16  ;;  %v6652_v35 = vrot.slane %v6634_v55, %v5252_v15  ;;  %v1580_v50 = vpack.c.bf16 %v1387_v28, %v1258_v24  ;;  %v1257_v59 = vmul.f32 %v6629_v5, %v1175_v7  ;;  %v9133_v24 = vld [vmem:[#allocation44_spill] sm:$0xff] }
 0x183   : > { %v575_v9 = vsel %vm572_vm0, %v565_v33, %v6162_v34  ;;  %v446_v29 = vsel %vm443_vm1, %v434_v43, %v6168_v40  ;;  %v6663_v13 = vrot.slane %v6644_v56, %v5255_v16  ;;  %v6667_v1 = vrot.slane %v6644_v56, %v5252_v15  ;;  %v9132_v16 = vld [vmem:[#allocation47_spill] sm:$0xff] }
 0x184   : > { %9126 = vst [vmem:[#allocation40_spill] sm:$0xff] %v6648_v25  ;;  %9127 = vst [vmem:[#allocation37_spill] sm:$0xff] %v6652_v35  ;;  %v6671_v62 = vrot.slane %v6634_v55, %v5329_v41  ;;  %v1595_v34 = vpack.c.bf16 %v1515_v48, %v1515_v48  ;;  %v1596_v28 = vpack.c.bf16 %v1516_v53, %v1516_v53  ;;  %v9134_v53 = vld [vmem:[#allocation93_spill] sm:$0xff] }
 0x185   : > { %1852 = vmatpush1.bf16.msra.mxu0 %v1563_v11  ;;  %9128 = vst [vmem:[#allocation115_spill] sm:$0xff] %v6663_v13  ;;  %9129 = vst [vmem:[#allocation116_spill] sm:$0xff] %v6667_v1  ;;  %v823_v10 = vpop.permute.xlu1 %822  ;;  %v1579_v46 = vpack.c.bf16 %v1386_v32, %v1257_v59  ;;  %v6675_v40 = vrot.slane %v6634_v55, %v5324_v38  ;;  %v576_v7 = vsel %vm572_vm0, %v9132_v16, %v565_v33 }
 0x186   : > { %9130 = vst [vmem:[#allocation117_spill] sm:$0xff] %v6671_v62  ;;  %v694_v61 = vpop.permute.xlu0 %693  ;;  %1853 = vmatprep.subr.bf16.mxu0 %v1580_v50  ;;  %v666_v15 = vmul.f32 %v6648_v25, %v575_v9  ;;  %v447_v11 = vsel %vm443_vm1, %v9133_v24, %v434_v43  ;;  %v537_v5 = vmul.f32 %v6652_v35, %v446_v29  ;;  %v9139_v29 = vld [vmem:[#allocation53_spill] sm:$0xff]  ;;  %v9140_v24 = vld [vmem:[#allocation50_spill] sm:$0xff] }
 0x187   : > { %9131 = vst [vmem:[#allocation118_spill] sm:$0xff] %v6675_v40  ;;  %v833_v48 = vsel %vm830_vm3, %v823_v10, %v6243_v37  ;;  %v704_v32 = vsel %vm701_vm2, %v694_v61, %v9134_v53  ;;  %v6693_v33 = vrot.slane %v6644_v56, %v5329_v41  ;;  %v6697_v50 = vrot.slane %v6644_v56, %v5324_v38 }
 0x188   : > { %v6701_v43 = vrot.slane %v6634_v55, %v5376_v57  ;;  %v6706_v37 = vrot.slane %v6634_v55, %v5358_v51  ;;  %v665_v9 = vmul.f32 %v6663_v13, %v576_v7  ;;  %v536_v41 = vmul.f32 %v6667_v1, %v447_v11  ;;  %v9196_v13 = vld [vmem:[#allocation57_spill] sm:$0xff] }
 0x189   : > { %1854 = vmatpush1.bf16.msra.mxu0 %v1579_v46  ;;  %9135 = vst [vmem:[#allocation47_spill] sm:$0xff] %v6693_v33  ;;  %9136 = vst [vmem:[#allocation44_spill] sm:$0xff] %v6697_v50  ;;  %v834_v38 = vsel %vm830_vm3, %v9139_v29, %v823_v10  ;;  %v1652_v46 = vsel %vm1626_vm8, %v1595_v34, 0  ;;  %v924_v16 = vmul.f32 %v6671_v62, %v833_v48  ;;  %v1163_v25 = vpop.permute.xlu1 %1162 }
 0x18a   : > { %9137 = vst [vmem:[#allocation93_spill] sm:$0xff] %v6701_v43  ;;  %v1034_v59 = vpop.permute.xlu0 %1033  ;;  %4776 = vmatprep.subr.msk.bf16.mxu0 %vm1626_vm8, %v1596_v28  ;;  %9138 = vst [vmem:[#allocation119_spill] sm:$0xff] %v6706_v37  ;;  %v705_v28 = vsel %vm701_vm2, %v9140_v24, %v694_v61  ;;  %v795_v53 = vmul.f32 %v6675_v40, %v704_v32  ;;  %v1536_v35 = vpack.c.bf16 %v666_v15, %v537_v5  ;;  %v9144_v15 = vld [vmem:[#allocation61_spill] sm:$0xff]  ;;  %v9197_v40 = vld [vmem:[#allocation58_spill] sm:$0xff] }
 0x18b   : > { %v1041_v7 = vsel %vm1039_vm4, %v1034_v59, %v6307_v58  ;;  %v6724_v10 = vrot.slane %v6644_v56, %v5358_v51  ;;  %v6728_v34 = vrot.slane %v6644_v56, %v5376_v57  ;;  %v1535_v61 = vpack.c.bf16 %v665_v9, %v536_v41 }
 0x18c   : > { %v923_v48 = vmul.f32 %v6693_v33, %v834_v38  ;;  %v794_v5 = vmul.f32 %v6697_v50, %v705_v28  ;;  %v6734_v58 = vrot.slane %v6634_v55, %v5439_v54  ;;  %v1042_v51 = vsel %vm1039_vm4, %v9144_v15, %v1034_v59  ;;  %v4891_v59 = vld [vmem:[%s5092_s29 + $0x60] sm:$0xff] }
 0x18d   : > { %1856 = vmatpush1.bf16.msra.mxu0 %v1652_v46  ;;  %9141 = vst [vmem:[#allocation53_spill] sm:$0xff] %v6724_v10  ;;  %9142 = vst [vmem:[#allocation50_spill] sm:$0xff] %v6728_v34  ;;  %v1133_v32 = vmul.f32 %v6701_v43, %v1041_v7  ;;  %v1552_v57 = vpack.c.bf16 %v924_v16, %v795_v53  ;;  %v6750_v29 = vrot.slane %v6634_v55, %v5436_v52  ;;  %v1421_v46 = vpop.permute.xlu1 %1420  ;;  %v9147_v53 = vld [vmem:[#allocation71_spill] sm:$0xff] }
 0x18e   : > { %v1292_v11 = vpop.permute.xlu0 %1291  ;;  %1933 = vmatprep.subr.bf16.mxu0 %v1536_v35  ;;  %9143 = vst [vmem:[#allocation120_spill] sm:$0xff] %v6734_v58  ;;  %v4890_v35 = vld [vmem:[%s5092_s29 + $0x68] sm:$0xff]  ;;  %v1003_v38 = vmul.f32 %v4891_v59, %v6724_v10  ;;  %v1551_v16 = vpack.c.bf16 %v923_v48, %v794_v5  ;;  %v1170_v24 = vsel %vm1168_vm5, %v1163_v25, %v6383_v18  ;;  %v4763_v18 = vld [vmem:[%s8737_s1 + $0xe0] ss:$0 sm:$0xff]  ;;  %s9185_s29 = smov 113  }
 0x18f   : > { %v1004_v9 = vmul.f32 %v4890_v35, %v6706_v37  ;;  %v1299_v41 = vsel %vm1297_vm6, %v1292_v11, %v6378_v21  ;;  %9145 = vst [vmem:[#allocation61_spill] sm:$0xff] %v6750_v29  ;;  %v1132_v28 = vmul.f32 %v6728_v34, %v1042_v51  ;;  %v6760_v21 = vrot.slane %v6644_v56, %v5439_v54  ;;  %v4764_v54 = vld [vmem:[%s8737_s1 + $0xe8] ss:$0 sm:$0xff]  ;;  %v9201_v33 = vld [vmem:[#allocation7_spill] sm:$0xff] }
 0x190   : > { %4777 = vmatmul.mubr.msk.bf16.vlgmr.msra.gmra.mrb[8].mxu0 %vm1622_vm9, %v6529_v26  ;;  %v1300_v55 = vsel %vm1297_vm6, %v9147_v53, %v1292_v11  ;;  %v1391_v7 = vmul.f32 %v6734_v58, %v1299_v41  ;;  %v6768_v48 = vrot.slane %v6644_v56, %v5436_v52  ;;  %v1428_v5 = vsel %vm1426_vm7, %v1421_v46, %v6406_v3  ;;  %v9149_v11 = vld [vmem:[#allocation80_spill] sm:$0xff] }
 0x191   : > { %1934 = vmatpush1.bf16.msra.mxu0 %v1535_v61  ;;  %1965 = vmatprep.mubr.bf16.mxu0 %v9020_v19  ;;  %9146 = vst [vmem:[#allocation121_spill] sm:$0xff] %v6760_v21  ;;  %v1568_v61 = vpack.c.bf16 %v1133_v32, %v1004_v9  ;;  %v1429_v15 = vsel %vm1426_vm7, %v9149_v11, %v1421_v46  ;;  %v9150_v51 = vld [vmem:[#allocation68_spill] sm:$0xff] }
 0x192   : > { %1935 = vmatprep.subr.bf16.mxu0 %v1552_v57  ;;  %9148 = vst [vmem:[#allocation71_spill] sm:$0xff] %v6768_v48  ;;  %v1171_v52 = vsel %vm1168_vm5, %v9150_v51, %v1163_v25  ;;  %v1262_v56 = vmul.f32 %v6750_v29, %v1170_v24  ;;  %v1567_v32 = vpack.c.bf16 %v1132_v28, %v1003_v38 }
 0x193   : > { %v1390_v57 = vmul.f32 %v6760_v21, %v1300_v55  ;;  %v1519_v35 = vmul.f32 %v4763_v18, %v1429_v15  ;;  %v1520_v9 = vmul.f32 %v4764_v54, %v1428_v5  ;;  %v1261_v3 = vmul.f32 %v6768_v48, %v1171_v52 }
 0x194   : > { %v1584_v41 = vpack.c.bf16 %v1391_v7, %v1262_v56  ;;  %v6824_v56 = vld [vmem:[%s8740_s4] sm:$0xf] }
 0x195   : > { %1936 = vmatpush1.bf16.msra.mxu0 %v1551_v16  ;;  %v1583_v46 = vpack.c.bf16 %v1390_v57, %v1261_v3  ;;  %v1599_v53 = vpack.c.bf16 %v1519_v35, %v1519_v35  ;;  %v1600_v11 = vpack.c.bf16 %v1520_v9, %v1520_v9 }
 0x196   : > { %1937 = vmatprep.subr.bf16.mxu0 %v1568_v61 }
 0x197   : > { %v1664_v7 = vsel %vm1626_vm8, %v1599_v53, 0 }
 0x199   : > { %1938 = vmatpush1.bf16.msra.mxu0 %v1567_v32 }
 0x19a   : > { %1939 = vmatprep.subr.bf16.mxu0 %v1584_v41  ;;  %v1752_v59 = vpop.f32.mrb[0].mxu1 }
 0x19b   : > { %v1754_v16 = vpop.f32.mrb[1].mxu1 }
 0x19c   : > { %v1756_v58 = vpop.f32.mrb[2].mxu1 }
 0x19d   : > { %1940 = vmatpush1.bf16.msra.mxu0 %v1583_v46  ;;  %v1758_v25 = vpop.f32.mrb[3].mxu1 }
 0x19e   : > { %4780 = vmatprep.subr.msk.bf16.mxu0 %vm1626_vm8, %v1600_v11  ;;  %v6789_v38 = vpop.permute.xlu1 %1614 }
 0x19f   : > { %v6791_v24 = vpop.permute.xlu0 %1609  ;;  %v6794_v28 = vadd.f32 %v1758_v25, %v6789_v38  ;;  %v6797_v55 = vadd.f32 %v1756_v58, %v6789_v38 }
 0x1a0   : > { %v6801_v61 = vadd.f32 %v1754_v16, %v6791_v24  ;;  %v6804_v18 = vadd.f32 %v1752_v59, %v6791_v24 }
 0x1a1   : > { %9151 = vst [vmem:[#allocation80_spill] sm:$0xff] %v6794_v28  ;;  %9152 = vst [vmem:[#allocation68_spill] sm:$0xff] %v6797_v55  ;;  %1942 = vmatpush1.bf16.msra.mxu0 %v1664_v7  ;;  %v8879_v54 = vmax.f32 %v6794_v28, 0.0  ;;  %v8881_v5 = vmax.f32 %v6797_v55, 0.0 }
 0x1a2   : > { %9153 = vst [vmem:[#allocation122_spill] sm:$0xff] %v6801_v61  ;;  %9154 = vst [vmem:[#allocation123_spill] sm:$0xff] %v6804_v18  ;;  %v8886_v15 = vmax.f32 %v6801_v61, 0.0  ;;  %v8887_v51 = vmax.f32 %v6804_v18, 0.0 }
 0x1a4   : > { %4781 = vmatmul.mubr.msk.bf16.vlgmr.msra.gmra.mrb[12].mxu0 %vm1622_vm9, %v6529_v26  ;;  %v2055_v58 = vpack.c.bf16 %v8879_v54, %v8886_v15  ;;  %v2054_v52 = vpack.c.bf16 %v8881_v5, %v8887_v51 }
 0x1a5   : > { %2110 = vmatprep.mubr.bf16.mxu0 %v9020_v19 }
 0x1a6   : > { %2119 = vmatprep.subr.bf16.mxu1 %v2055_v58 }
 0x1a7   : > { %2120 = vmatpush1.bf16.msra.mxu1 %v2054_v52 }
 0x1aa   : > { %4785 = vmatmul.mubr.msk.bf16.vlgmr.msra.gmra.mrb[16].mxu1 %vm2074_vm10, %v6824_v56 }
 0x1ab   : > { %2233 = vmatprep.mubr.bf16.mxu1 %v9020_v19 }
 0x1ca   : > { %v1838_v26 = vpop.f32.mrb[4].mxu1 }
 0x1cb   : > { %v6830_v32 = vadd.f32 %v1838_v26, %v6791_v24  ;;  %v1840_v57 = vpop.f32.mrb[5].mxu1 }
 0x1cc   : > { %v6833_v35 = vadd.f32 %v1840_v57, %v6791_v24  ;;  %v1842_v9 = vpop.f32.mrb[6].mxu1 }
 0x1cd   : > { %9155 = vst [vmem:[#allocation124_spill] sm:$0xff] %v6830_v32  ;;  %v8880_v41 = vmax.f32 %v6830_v32, 0.0  ;;  %v6837_v3 = vadd.f32 %v1842_v9, %v6789_v38  ;;  %v1844_v59 = vpop.f32.mrb[7].mxu1 }
 0x1ce   : > { %9156 = vst [vmem:[#allocation125_spill] sm:$0xff] %v6833_v35  ;;  %v8878_v46 = vmax.f32 %v6833_v35, 0.0  ;;  %v6841_v16 = vadd.f32 %v1844_v59, %v6789_v38 }
 0x1cf   : > { %9157 = vst [vmem:[#allocation126_spill] sm:$0xff] %v6837_v3  ;;  %v8877_v53 = vmax.f32 %v6837_v3, 0.0 }
 0x1d0   : > { %9158 = vst [vmem:[#allocation127_spill] sm:$0xff] %v6841_v16  ;;  %v8876_v11 = vmax.f32 %v6841_v16, 0.0 }
 0x1d1   : > { %v2058_v25 = vpack.c.bf16 %v8877_v53, %v8880_v41 }
 0x1d2   : > { %v2059_v7 = vpack.c.bf16 %v8876_v11, %v8878_v46 }
 0x1d4   : > { %2201 = vmatprep.subr.bf16.mxu1 %v2059_v7 }
 0x1d5   : > { %2202 = vmatpush1.bf16.msra.mxu1 %v2058_v25 }
 0x1d8   : > { %4787 = vmatmul.mubr.msk.bf16.vlgmr.msra.gmra.mrb[20].mxu1 %vm2074_vm10, %v6824_v56 }
 0x1d9   : > { %2315 = vmatprep.mubr.bf16.mxu1 %v9020_v19 }
 0x20f   : > { %v1924_v58 = vpop.f32.mrb[8].mxu1 }
 0x210   : > { %v6857_v52 = vadd.f32 %v1924_v58, %v6791_v24  ;;  %v1926_v26 = vpop.f32.mrb[9].mxu1 }
 0x211   : > { %v6860_v57 = vadd.f32 %v1926_v26, %v6791_v24  ;;  %v1928_v9 = vpop.f32.mrb[10].mxu1 }
 0x212   : > { %9159 = vst [vmem:[#allocation128_spill] sm:$0xff] %v6857_v52  ;;  %v8883_v59 = vmax.f32 %v6857_v52, 0.0  ;;  %v6864_v11 = vadd.f32 %v1928_v9, %v6789_v38  ;;  %v1930_v25 = vpop.f32.mrb[11].mxu1 }
 0x213   : > { %9160 = vst [vmem:[#allocation129_spill] sm:$0xff] %v6860_v57  ;;  %v8885_v7 = vmax.f32 %v6860_v57, 0.0  ;;  %v6868_v53 = vadd.f32 %v1930_v25, %v6789_v38 }
 0x214   : > { %9161 = vst [vmem:[#allocation130_spill] sm:$0xff] %v6864_v11  ;;  %v8882_v46 = vmax.f32 %v6864_v11, 0.0 }
 0x215   : > { %9162 = vst [vmem:[#allocation131_spill] sm:$0xff] %v6868_v53  ;;  %v8884_v58 = vmax.f32 %v6868_v53, 0.0 }
 0x216   : > { %v2062_v26 = vpack.c.bf16 %v8882_v46, %v8883_v59 }
 0x217   : > { %v2063_v9 = vpack.c.bf16 %v8884_v58, %v8885_v7 }
 0x219   : > { %2283 = vmatprep.subr.bf16.mxu1 %v2063_v9 }
 0x21a   : > { %2284 = vmatpush1.bf16.msra.mxu1 %v2062_v26 }
 0x21d   : > { %4789 = vmatmul.mubr.msk.bf16.vlgmr.msra.gmra.mrb[24].mxu1 %vm2074_vm10, %v6824_v56 }
 0x21e   : > { %2397 = vmatprep.mubr.bf16.mxu1 %v9020_v19 }
 0x227   : > { %v1709_v25 = vpop.f32.mrb[0].mxu0 }
 0x228   : > { %v1711_v54 = vpop.f32.mrb[1].mxu0  ;;  %v6887_v46 = vadd.f32 %v1709_v25, %v6791_v24 }
 0x229   : > { %v6884_v41 = vadd.f32 %v1711_v54, %v6791_v24  ;;  %v1713_v5 = vpop.f32.mrb[2].mxu0 }
 0x22a   : > { %9164 = vst [vmem:[#allocation133_spill] sm:$0xff] %v6887_v46  ;;  %v6890_v59 = vadd.f32 %v1713_v5, %v6789_v38  ;;  %v1715_v58 = vpop.f32.mrb[3].mxu0  ;;  %v8893_v54 = vmax.f32 %v6887_v46, 0.0 }
 0x22b   : > { %9163 = vst [vmem:[#allocation132_spill] sm:$0xff] %v6884_v41  ;;  %v6893_v26 = vadd.f32 %v1715_v58, %v6789_v38  ;;  %v8891_v7 = vmax.f32 %v6884_v41, 0.0 }
 0x22c   : > { %9165 = vst [vmem:[#allocation134_spill] sm:$0xff] %v6890_v59  ;;  %v8892_v9 = vmax.f32 %v6890_v59, 0.0 }
 0x22d   : > { %9166 = vst [vmem:[#allocation135_spill] sm:$0xff] %v6893_v26  ;;  %v8890_v15 = vmax.f32 %v6893_v26, 0.0 }
 0x22e   : > { %v2052_v5 = vpack.c.bf16 %v8892_v9, %v8893_v54 }
 0x22f   : > { %v2053_v25 = vpack.c.bf16 %v8890_v15, %v8891_v7 }
 0x231   : > { %2078 = vmatprep.subr.bf16.mxu0 %v2053_v25 }
 0x232   : > { %2079 = vmatpush1.bf16.msra.mxu0 %v2052_v5 }
 0x235   : > { %4784 = vmatmul.mubr.msk.bf16.vlgmr.msra.gmra.mrb[16].mxu0 %vm2074_vm10, %v6824_v56 }
 0x236   : > { %2192 = vmatprep.mubr.bf16.mxu0 %v9020_v19 }
 0x247   : > { %v2010_v58 = vpop.f32.mrb[12].mxu1 }
 0x248   : > { %v2012_v51 = vpop.f32.mrb[13].mxu1  ;;  %v6914_v15 = vadd.f32 %v2010_v58, %v6791_v24 }
 0x249   : > { %v6911_v53 = vadd.f32 %v2012_v51, %v6791_v24  ;;  %v2014_v11 = vpop.f32.mrb[14].mxu1 }
 0x24a   : > { %9168 = vst [vmem:[#allocation137_spill] sm:$0xff] %v6914_v15  ;;  %v6917_v7 = vadd.f32 %v2014_v11, %v6789_v38  ;;  %v2016_v9 = vpop.f32.mrb[15].mxu1  ;;  %v8904_v51 = vmax.f32 %v6914_v15, 0.0 }
 0x24b   : > { %9167 = vst [vmem:[#allocation136_spill] sm:$0xff] %v6911_v53  ;;  %v6920_v25 = vadd.f32 %v2016_v9, %v6789_v38  ;;  %v8902_v54 = vmax.f32 %v6911_v53, 0.0 }
 0x24c   : > { %9169 = vst [vmem:[#allocation138_spill] sm:$0xff] %v6917_v7  ;;  %v8903_v5 = vmax.f32 %v6917_v7, 0.0 }
 0x24d   : > { %9170 = vst [vmem:[#allocation139_spill] sm:$0xff] %v6920_v25  ;;  %v8901_v57 = vmax.f32 %v6920_v25, 0.0 }
 0x24e   : > { %v2066_v11 = vpack.c.bf16 %v8903_v5, %v8904_v51 }
 0x24f   : > { %v2067_v58 = vpack.c.bf16 %v8901_v57, %v8902_v54  ;;  %v1795_v52 = vpop.f32.mrb[4].mxu0 }
 0x250   : > { %v1797_v9 = vpop.f32.mrb[5].mxu0  ;;  %v6938_v41 = vadd.f32 %v1795_v52, %v6791_v24 }
 0x251   : > { %v6935_v26 = vadd.f32 %v1797_v9, %v6791_v24  ;;  %v1799_v59 = vpop.f32.mrb[6].mxu0  ;;  %2365 = vmatprep.subr.bf16.mxu1 %v2067_v58 }
 0x252   : > { %9172 = vst [vmem:[#allocation141_spill] sm:$0xff] %v6938_v41  ;;  %v6941_v53 = vadd.f32 %v1799_v59, %v6789_v38  ;;  %v1801_v25 = vpop.f32.mrb[7].mxu0  ;;  %2366 = vmatpush1.bf16.msra.mxu1 %v2066_v11  ;;  %v8909_v52 = vmax.f32 %v6938_v41, 0.0 }
 0x253   : > { %9171 = vst [vmem:[#allocation140_spill] sm:$0xff] %v6935_v26  ;;  %v6944_v57 = vadd.f32 %v1801_v25, %v6789_v38  ;;  %v8907_v5 = vmax.f32 %v6935_v26, 0.0 }
 0x254   : > { %9173 = vst [vmem:[#allocation142_spill] sm:$0xff] %v6941_v53  ;;  %v8908_v54 = vmax.f32 %v6941_v53, 0.0 }
 0x255   : > { %9174 = vst [vmem:[#allocation143_spill] sm:$0xff] %v6944_v57  ;;  %v8906_v9 = vmax.f32 %v6944_v57, 0.0  ;;  %4791 = vmatmul.mubr.msk.bf16.vlgmr.msra.gmra.mrb[28].mxu1 %vm2074_vm10, %v6824_v56 }
 0x256   : > { %3161 = vmatprep.mubr.bf16.mxu1 %v9020_v19  ;;  %v2056_v25 = vpack.c.bf16 %v8908_v54, %v8909_v52 }
 0x257   : > { %v2057_v59 = vpack.c.bf16 %v8906_v9, %v8907_v5 }
 0x259   : > { %2160 = vmatprep.subr.bf16.mxu0 %v2057_v59 }
 0x25a   : > { %2161 = vmatpush1.bf16.msra.mxu0 %v2056_v25 }
 0x25d   : > { %4786 = vmatmul.mubr.msk.bf16.vlgmr.msra.gmra.mrb[20].mxu0 %vm2074_vm10, %v6824_v56 }
 0x25e   : > { %2274 = vmatprep.mubr.bf16.mxu0 %v9020_v19 }
 0x263   : > { %v1881_v58 = vpop.f32.mrb[8].mxu0 }
 0x264   : > { %v1883_v11 = vpop.f32.mrb[9].mxu0  ;;  %v6968_v9 = vadd.f32 %v1881_v58, %v6791_v24 }
 0x265   : > { %v6965_v51 = vadd.f32 %v1883_v11, %v6791_v24  ;;  %v1885_v7 = vpop.f32.mrb[10].mxu0 }
 0x266   : > { %9176 = vst [vmem:[#allocation145_spill] sm:$0xff] %v6968_v9  ;;  %v6971_v5 = vadd.f32 %v1885_v7, %v6789_v38  ;;  %v1887_v54 = vpop.f32.mrb[11].mxu0  ;;  %v8917_v11 = vmax.f32 %v6968_v9, 0.0 }
 0x267   : > { %9175 = vst [vmem:[#allocation144_spill] sm:$0xff] %v6965_v51  ;;  %v6974_v59 = vadd.f32 %v1887_v54, %v6789_v38  ;;  %v8915_v52 = vmax.f32 %v6965_v51, 0.0 }
 0x268   : > { %9177 = vst [vmem:[#allocation146_spill] sm:$0xff] %v6971_v5  ;;  %v8916_v25 = vmax.f32 %v6971_v5, 0.0 }
 0x269   : > { %9178 = vst [vmem:[#allocation147_spill] sm:$0xff] %v6974_v59  ;;  %v8914_v15 = vmax.f32 %v6974_v59, 0.0 }
 0x26a   : > { %v2060_v7 = vpack.c.bf16 %v8916_v25, %v8917_v11  ;;  %v7004_v11 = vpop.permute.xlu1 %2071 }
 0x26b   : > { %v2061_v58 = vpack.c.bf16 %v8914_v15, %v8915_v52 }
 0x26d   : > { %2242 = vmatprep.subr.bf16.mxu0 %v2061_v58 }
 0x26e   : > { %2243 = vmatpush1.bf16.msra.mxu0 %v2060_v7 }
 0x271   : > { %4788 = vmatmul.mubr.msk.bf16.vlgmr.msra.gmra.mrb[24].mxu0 %vm2074_vm10, %v6824_v56 }
 0x272   : > { %2356 = vmatprep.mubr.bf16.mxu0 %v9020_v19 }
 0x277   : > { %v1967_v54 = vpop.f32.mrb[12].mxu0 }
 0x278   : > { %v1969_v57 = vpop.f32.mrb[13].mxu0  ;;  %v6995_v15 = vadd.f32 %v1967_v54, %v6791_v24 }
 0x279   : > { %v6992_v53 = vadd.f32 %v1969_v57, %v6791_v24  ;;  %v1971_v51 = vpop.f32.mrb[14].mxu0 }
 0x27a   : > { %9180 = vst [vmem:[#allocation149_spill] sm:$0xff] %v6995_v15  ;;  %v6998_v52 = vadd.f32 %v1971_v51, %v6789_v38  ;;  %v1973_v25 = vpop.f32.mrb[15].mxu0  ;;  %v8926_v9 = vmax.f32 %v6995_v15, 0.0 }
 0x27b   : > { %9179 = vst [vmem:[#allocation148_spill] sm:$0xff] %v6992_v53  ;;  %v7001_v58 = vadd.f32 %v1973_v25, %v6789_v38  ;;  %v8924_v59 = vmax.f32 %v6992_v53, 0.0 }
 0x27c   : > { %9181 = vst [vmem:[#allocation150_spill] sm:$0xff] %v6998_v52  ;;  %v8925_v7 = vmax.f32 %v6998_v52, 0.0 }
 0x27d   : > { %9182 = vst [vmem:[#allocation151_spill] sm:$0xff] %v7001_v58  ;;  %v8923_v57 = vmax.f32 %v7001_v58, 0.0  ;;  %v2153_v5 = vpop.f32.mrb[16].mxu1 }
 0x27e   : > { %v2154_v24 = vadd.f32 %v2153_v5, %v7004_v11  ;;  %v2155_v54 = vpop.f32.mrb[17].mxu1  ;;  %v2064_v25 = vpack.c.bf16 %v8925_v7, %v8926_v9 }
 0x27f   : > { %v2065_v38 = vpack.c.bf16 %v8923_v57, %v8924_v59  ;;  %v2157_v51 = vpop.f32.mrb[18].mxu1 }
 0x280   : > { %v7018_v26 = vmax.f32 %v2154_v24, 0.0  ;;  %v2158_v41 = vpop.f32.mrb[19].mxu1 }
 0x281   : > { %2324 = vmatprep.subr.bf16.mxu0 %v2065_v38 }
 0x282   : > { %2698 = vrot.lane.b32.xlu1 %v7018_v26, %s9183_s26  ;;  %2325 = vmatpush1.bf16.msra.mxu0 %v2064_v25 }
 0x285   : > { %4790 = vmatmul.mubr.msk.bf16.vlgmr.msra.gmra.mrb[28].mxu0 %vm2074_vm10, %v6824_v56 }
 0x286   : > { %3120 = vmatprep.mubr.bf16.mxu0 %v9020_v19 }
 0x2ab   : > { %v7025_v5 = vpop.f32.mrb[20].mxu1 }
 0x2ac   : > { %v7027_v51 = vpop.f32.mrb[21].mxu1 }
 0x2ad   : > { %v2239_v57 = vpop.f32.mrb[22].mxu1  ;;  %v2238_v3 = vadd.f32 %v7027_v51, %v7004_v11 }
 0x2ae   : > { %v2240_v59 = vpop.f32.mrb[23].mxu1 }
 0x2f0   : > { %v7029_v7 = vpop.f32.mrb[24].mxu1 }
 0x2f1   : > { %v7031_v24 = vpop.f32.mrb[25].mxu1  ;;  %v2318_v55 = vadd.f32 %v7029_v7, %v7004_v11 }
 0x2f2   : > { %v2321_v41 = vpop.f32.mrb[26].mxu1 }
 0x2f3   : > { %v2322_v38 = vpop.f32.mrb[27].mxu1  ;;  %v7215_v21 = vmax.f32 %v2318_v55, 0.0  ;;  %v2320_v55 = vadd.f32 %v7031_v24, %v7004_v11 }
 0x2f5   : > { %v7248_v31 = vmax.f32 %v2320_v55, 0.0 }
 0x308   : > { %v2112_v9 = vpop.f32.mrb[16].mxu0 }
 0x309   : > { %v2113_v25 = vadd.f32 %v2112_v9, %v7004_v11  ;;  %v2114_v58 = vpop.f32.mrb[17].mxu0 }
 0x30a   : > { %v2116_v52 = vpop.f32.mrb[18].mxu0  ;;  %v2115_v59 = vadd.f32 %v2114_v58, %v7004_v11 }
 0x30b   : > { %v7034_v56 = vmax.f32 %v2113_v25, 0.0  ;;  %v2117_v53 = vpop.f32.mrb[19].mxu0 }
 0x30c   : > { %v2156_v53 = vadd.f32 %v2155_v54, %v7004_v11  ;;  %v7050_v9 = vmax.f32 %v2115_v59, 0.0 }
 0x30d   : > { %9184 = vst [vmem:[#allocation152_spill] sm:$0xff] %v7034_v56  ;;  %2758 = vrot.lane.b32.xlu1 %v7034_v56, %s9185_s29  ;;  %2422 = vrot.lane.b32.xlu0 %v7034_v56, %s9051_s11 }
 0x30e   : > { %9187 = vst [vmem:[#allocation153_spill] sm:$0xff] %v7050_v9  ;;  %v7056_v52 = vmax.f32 %v2156_v53, 0.0 }
 0x311   : > { %2886 = vrot.lane.b32.xlu1 %v7034_v56, %s9186_s20  ;;  %2426 = vrot.lane.b32.xlu0 %v7018_v26, %s9051_s11 }
 0x315   : > { %2890 = vrot.lane.b32.xlu1 %v7018_v26, %s9186_s20  ;;  %2486 = vrot.lane.b32.xlu0 %v7034_v56, %s9049_s30 }
 0x319   : > { %2424 = vrot.lane.b32.xlu1 %v7050_v9, %s9051_s11  ;;  %2490 = vrot.lane.b32.xlu0 %v7018_v26, %s9049_s30 }
 0x31d   : > { %2428 = vrot.lane.b32.xlu1 %v7056_v52, %s9051_s11  ;;  %2550 = vrot.lane.b32.xlu0 %v7034_v56, %s9028_s28 }
 0x321   : > { %2488 = vrot.lane.b32.xlu1 %v7050_v9, %s9049_s30  ;;  %2554 = vrot.lane.b32.xlu0 %v7018_v26, %s9028_s28 }
 0x325   : > { %2492 = vrot.lane.b32.xlu1 %v7056_v52, %s9049_s30  ;;  %2614 = vrot.lane.b32.xlu0 %v7034_v56, %s9025_s27 }
 0x328   : > { %v7070_v58 = vpop.f32.mrb[28].mxu1 }
 0x329   : > { %v7072_v57 = vpop.f32.mrb[29].mxu1  ;;  %2552 = vrot.lane.b32.xlu1 %v7050_v9, %s9028_s28  ;;  %2618 = vrot.lane.b32.xlu0 %v7018_v26, %s9025_s27 }
 0x32a   : > { %v2403_v54 = vpop.f32.mrb[30].mxu1 }
 0x32b   : > { %v2404_v41 = vpop.f32.mrb[31].mxu1 }
 0x32d   : > { %2556 = vrot.lane.b32.xlu1 %v7056_v52, %s9028_s28  ;;  %2694 = vrot.lane.b32.xlu0 %v7034_v56, %s9183_s26 }
 0x330   : > { %v2194_v38 = vpop.f32.mrb[20].mxu0 }
 0x331   : > { %v2196_v25 = vpop.f32.mrb[21].mxu0  ;;  %2616 = vrot.lane.b32.xlu1 %v7050_v9, %s9025_s27  ;;  %2762 = vrot.lane.b32.xlu0 %v7018_v26, %s9185_s29  ;;  %v2195_v54 = vadd.f32 %v2194_v38, %v7004_v11  ;;  %v2236_v38 = vadd.f32 %v7025_v5, %v7004_v11 }
 0x332   : > { %v2198_v59 = vpop.f32.mrb[22].mxu0 }
 0x333   : > { %v2199_v53 = vpop.f32.mrb[23].mxu0  ;;  %v7109_v15 = vmax.f32 %v2195_v54, 0.0  ;;  %v7121_v16 = vmax.f32 %v2236_v38, 0.0 }
 0x335   : > { %2620 = vrot.lane.b32.xlu1 %v7056_v52, %s9025_s27  ;;  %2826 = vrot.lane.b32.xlu0 %v7018_v26, %s9188_s21 }
 0x339   : > { %2760 = vrot.lane.b32.xlu1 %v7050_v9, %s9185_s29  ;;  %2822 = vrot.lane.b32.xlu0 %v7034_v56, %s9188_s21 }
 0x33d   : > { %2764 = vrot.lane.b32.xlu1 %v7056_v52, %s9185_s29  ;;  %2696 = vrot.lane.b32.xlu0 %v7050_v9, %s9183_s26 }
 0x341   : > { %2824 = vrot.lane.b32.xlu1 %v7050_v9, %s9188_s21  ;;  %2700 = vrot.lane.b32.xlu0 %v7056_v52, %s9183_s26 }
 0x344   : > { %v2276_v41 = vpop.f32.mrb[24].mxu0 }
 0x345   : > { %v7103_v59 = vpop.f32.mrb[25].mxu0  ;;  %2828 = vrot.lane.b32.xlu1 %v7056_v52, %s9188_s21  ;;  %2888 = vrot.lane.b32.xlu0 %v7050_v9, %s9186_s20  ;;  %v2277_v51 = vadd.f32 %v2276_v41, %v7004_v11 }
 0x346   : > { %v2280_v53 = vpop.f32.mrb[26].mxu0  ;;  %v2279_v48 = vadd.f32 %v7103_v59, %v7004_v11 }
 0x347   : > { %v2281_v46 = vpop.f32.mrb[27].mxu0  ;;  %v2197_v53 = vadd.f32 %v2196_v25, %v7004_v11  ;;  %v7185_v25 = vmax.f32 %v2277_v51, 0.0 }
 0x348   : > { %v7232_v37 = vmax.f32 %v2279_v48, 0.0 }
 0x349   : > { %2702 = vrot.lane.b32.xlu1 %v7109_v15, %s9183_s26  ;;  %2892 = vrot.lane.b32.xlu0 %v7056_v52, %s9186_s20  ;;  %v7146_v35 = vmax.f32 %v2197_v53, 0.0  ;;  %9190 = vst [vmem:[#allocation155_spill] sm:$0xff] %v7185_v25 }
 0x34a   : > { %9195 = vst [vmem:[#allocation160_spill] sm:$0xff] %v7232_v37 }
 0x34b   : > { %9189 = vst [vmem:[#allocation154_spill] sm:$0xff] %v7146_v35 }
 0x34d   : > { %2894 = vrot.lane.b32.xlu1 %v7109_v15, %s9186_s20  ;;  %2766 = vrot.lane.b32.xlu0 %v7109_v15, %s9185_s29 }
 0x351   : > { %2706 = vrot.lane.b32.xlu1 %v7121_v16, %s9183_s26  ;;  %2830 = vrot.lane.b32.xlu0 %v7109_v15, %s9188_s21 }
 0x355   : > { %2770 = vrot.lane.b32.xlu1 %v7121_v16, %s9185_s29  ;;  %2430 = vrot.lane.b32.xlu0 %v7109_v15, %s9051_s11 }
 0x358   : > { %v7131_v46 = vpop.f32.mrb[28].mxu0 }
 0x359   : > { %v7133_v5 = vpop.f32.mrb[29].mxu0  ;;  %2834 = vrot.lane.b32.xlu1 %v7121_v16, %s9188_s21  ;;  %2434 = vrot.lane.b32.xlu0 %v7121_v16, %s9051_s11 }
 0x35a   : > { %v2362_v54 = vpop.f32.mrb[30].mxu0 }
 0x35b   : > { %v2363_v38 = vpop.f32.mrb[31].mxu0  ;;  %v7152_v54 = vmax.f32 %v2238_v3, 0.0  ;;  %v7178_v3 = vpop.permute.xlu1 %2698 }
 0x35d   : > { %2898 = vrot.lane.b32.xlu1 %v7121_v16, %s9186_s20  ;;  %2494 = vrot.lane.b32.xlu0 %v7109_v15, %s9049_s30 }
 0x361   : > { %2432 = vrot.lane.b32.xlu1 %v7146_v35, %s9051_s11  ;;  %2498 = vrot.lane.b32.xlu0 %v7121_v16, %s9049_s30 }
 0x365   : > { %2436 = vrot.lane.b32.xlu1 %v7152_v54, %s9051_s11  ;;  %2558 = vrot.lane.b32.xlu0 %v7109_v15, %s9028_s28 }
 0x369   : > { %2496 = vrot.lane.b32.xlu1 %v7146_v35, %s9049_s30  ;;  %2562 = vrot.lane.b32.xlu0 %v7121_v16, %s9028_s28 }
 0x36d   : > { %2500 = vrot.lane.b32.xlu1 %v7152_v54, %s9049_s30  ;;  %2622 = vrot.lane.b32.xlu0 %v7109_v15, %s9025_s27 }
 0x371   : > { %2560 = vrot.lane.b32.xlu1 %v7146_v35, %s9028_s28  ;;  %2626 = vrot.lane.b32.xlu0 %v7121_v16, %s9025_s27 }
 0x375   : > { %2564 = vrot.lane.b32.xlu1 %v7152_v54, %s9028_s28  ;;  %2704 = vrot.lane.b32.xlu0 %v7146_v35, %s9183_s26 }
 0x379   : > { %2624 = vrot.lane.b32.xlu1 %v7146_v35, %s9025_s27  ;;  %2708 = vrot.lane.b32.xlu0 %v7152_v54, %s9183_s26 }
 0x37d   : > { %2628 = vrot.lane.b32.xlu1 %v7152_v54, %s9025_s27  ;;  %2768 = vrot.lane.b32.xlu0 %v7146_v35, %s9185_s29 }
 0x37f   : > { %v7187_v53 = vpop.permute.xlu1 %2758  ;;  %v7189_v38 = vpop.permute.xlu0 %2422 }
 0x380   : > { %9191 = vst [vmem:[#allocation156_spill] sm:$0xff] %v7187_v53 }
 0x381   : > { %2710 = vrot.lane.b32.xlu1 %v7185_v25, %s9183_s26  ;;  %2772 = vrot.lane.b32.xlu0 %v7152_v54, %s9185_s29 }
 0x383   : > { %v7195_v28 = vpop.permute.xlu1 %2886  ;;  %v2427_v41 = vpop.permute.xlu0 %2426 }
 0x384   : > { %9192 = vst [vmem:[#allocation157_spill] sm:$0xff] %v7195_v28 }
 0x385   : > { %2774 = vrot.lane.b32.xlu1 %v7185_v25, %s9185_s29  ;;  %2832 = vrot.lane.b32.xlu0 %v7146_v35, %s9188_s21 }
 0x387   : > { %v7201_v51 = vpop.permute.xlu1 %2890  ;;  %v7203_v32 = vpop.permute.xlu0 %2486 }
 0x388   : > { %9193 = vst [vmem:[#allocation158_spill] sm:$0xff] %v7201_v51 }
 0x389   : > { %2838 = vrot.lane.b32.xlu1 %v7185_v25, %s9188_s21  ;;  %2836 = vrot.lane.b32.xlu0 %v7152_v54, %s9188_s21 }
 0x38b   : > { %v2425_v61 = vpop.permute.xlu1 %2424  ;;  %v2491_v18 = vpop.permute.xlu0 %2490 }
 0x38c   : > { %v2468_v7 = vsel %vm443_vm1, %v7189_v38, %v2425_v61 }
 0x38d   : > { %2902 = vrot.lane.b32.xlu1 %v7185_v25, %s9186_s20  ;;  %2896 = vrot.lane.b32.xlu0 %v7146_v35, %s9186_s20  ;;  %v2471_v62 = vmul.f32 %v2468_v7, %v9196_v13  ;;  %v9211_v35 = vld [vmem:[#allocation13_spill] sm:$0xff] }
 0x38f   : > { %v7219_v29 = vpop.permute.xlu1 %2428  ;;  %v7221_v34 = vpop.permute.xlu0 %2550 }
 0x390   : > { %9194 = vst [vmem:[#allocation159_spill] sm:$0xff] %v7219_v29  ;;  %v2466_v48 = vsel %vm443_vm1, %v2427_v41, %v7219_v29  ;;  %v9221_v29 = vld [vmem:[#allocation16_spill] sm:$0xff] }
 0x391   : > { %2714 = vrot.lane.b32.xlu1 %v7215_v21, %s9183_s26  ;;  %2900 = vrot.lane.b32.xlu0 %v7152_v54, %s9186_s20  ;;  %v2473_v6 = vmul.f32 %v2466_v48, %v9199_v30  ;;  %v2680_v23 = vmul.f32 %v7018_v26, %v9221_v29 }
 0x393   : > { %v2489_v59 = vpop.permute.xlu1 %2488  ;;  %v2555_v10 = vpop.permute.xlu0 %2554 }
 0x394   : > { %v2532_v43 = vsel %vm572_vm0, %v7203_v32, %v2489_v59  ;;  %v2531_v24 = vsel %vm572_vm0, %v2489_v59, %v2491_v18 }
 0x395   : > { %v2535_v1 = vmul.f32 %v2532_v43, %v9197_v40  ;;  %2440 = vrot.lane.b32.xlu1 %v7232_v37, %s9051_s11  ;;  %2438 = vrot.lane.b32.xlu0 %v7185_v25, %s9051_s11  ;;  %v2467_v43 = vsel %vm443_vm1, %v2425_v61, %v2427_v41  ;;  %v2536_v50 = vmul.f32 %v2531_v24, %v9200_v2 }
 0x397   : > { %v7250_v8 = vpop.permute.xlu1 %2492  ;;  %v7252_v13 = vpop.permute.xlu0 %2614  ;;  %v2951_v40 = vpack.c.bf16 %v2535_v1, %v2471_v62  ;;  %v9202_v1 = vld [vmem:[#allocation8_spill] sm:$0xff] }
 0x398   : > { %9198 = vst [vmem:[#allocation57_spill] sm:$0xff] %v7250_v8  ;;  %v2530_v7 = vsel %vm572_vm0, %v2491_v18, %v7250_v8  ;;  %v2472_v62 = vmul.f32 %v2467_v43, %v9202_v1 }
 0x399   : > { %v2537_v59 = vmul.f32 %v2530_v7, %v9201_v33  ;;  %2444 = vrot.lane.b32.xlu1 %v7248_v31, %s9051_s11  ;;  %2442 = vrot.lane.b32.xlu0 %v7215_v21, %s9051_s11 }
 0x39a   : > { %3088 = vmatprep.subr.bf16.mxu0 %v2951_v40  ;;  %v2952_v18 = vpack.c.bf16 %v2536_v50, %v2472_v62  ;;  %v9209_v62 = vld [vmem:[#allocation12_spill] sm:$0xff] }
 0x39b   : > { %v7267_v61 = vpop.permute.xlu1 %2552  ;;  %v2619_v41 = vpop.permute.xlu0 %2618  ;;  %v2953_v55 = vpack.c.bf16 %v2537_v59, %v2473_v6  ;;  %v9208_v59 = vld [vmem:[#allocation10_spill] sm:$0xff] }
 0x39c   : > { %v2595_v43 = vsel %vm701_vm2, %v7267_v61, %v2555_v10 }
 0x39d   : > { %2504 = vrot.lane.b32.xlu1 %v7232_v37, %s9049_s30  ;;  %2502 = vrot.lane.b32.xlu0 %v7185_v25, %s9049_s30 }
 0x39e   : > { %3129 = vmatprep.subr.bf16.mxu1 %v2953_v55 }
 0x39f   : > { %3130 = vmatpush1.bf16.msra.mxu1 %v2952_v18  ;;  %v7273_v2 = vpop.permute.xlu1 %2556  ;;  %v7275_v30 = vpop.permute.xlu0 %2694  ;;  %v9210_v18 = vld [vmem:[#allocation11_spill] sm:$0xff] }
 0x3a0   : > { %9203 = vst [vmem:[#allocation58_spill] sm:$0xff] %v7273_v2  ;;  %9204 = vst [vmem:[#allocation6_spill] sm:$0xff] %v7275_v30  ;;  %v2594_v50 = vsel %vm701_vm2, %v2555_v10, %v7273_v2  ;;  %v2600_v2 = vmul.f32 %v2595_v43, %v9211_v35 }
 0x3a1   : > { %2508 = vrot.lane.b32.xlu1 %v7248_v31, %s9049_s30  ;;  %2506 = vrot.lane.b32.xlu0 %v7215_v21, %s9049_s30  ;;  %v2601_v1 = vmul.f32 %v2594_v50, %v9208_v59  ;;  %v2359_v50 = vadd.f32 %v7131_v46, %v7004_v11 }
 0x3a3   : > { %v7281_v6 = vpop.permute.xlu1 %2616  ;;  %v7283_v33 = vpop.permute.xlu0 %2762  ;;  %v7331_v35 = vmax.f32 %v2359_v50, 0.0  ;;  %v9219_v50 = vld [vmem:[#allocation15_spill] sm:$0xff] }
 0x3a4   : > { %9205 = vst [vmem:[#allocation9_spill] sm:$0xff] %v7283_v33  ;;  %v2659_v48 = vsel %vm830_vm3, %v7281_v6, %v2619_v41 }
 0x3a5   : > { %2568 = vrot.lane.b32.xlu1 %v7232_v37, %s9028_s28  ;;  %2566 = vrot.lane.b32.xlu0 %v7185_v25, %s9028_s28  ;;  %v2664_v55 = vmul.f32 %v2659_v48, %v9209_v62  ;;  %9214 = vst [vmem:[#allocation11_spill] sm:$0xff] %v7331_v35 }
 0x3a7   : > { %v7295_v24 = vpop.permute.xlu1 %2620  ;;  %v7297_v40 = vpop.permute.xlu0 %2826 }
 0x3a8   : > { %9206 = vst [vmem:[#allocation7_spill] sm:$0xff] %v7295_v24  ;;  %9207 = vst [vmem:[#allocation8_spill] sm:$0xff] %v7297_v40  ;;  %v2658_v7 = vsel %vm830_vm3, %v2619_v41, %v7295_v24  ;;  %v2968_v41 = vpack.c.bf16 %v2664_v55, %v2600_v2 }
 0x3a9   : > { %v2665_v27 = vmul.f32 %v2658_v7, %v9210_v18  ;;  %2572 = vrot.lane.b32.xlu1 %v7248_v31, %s9028_s28  ;;  %2570 = vrot.lane.b32.xlu0 %v7215_v21, %s9028_s28  ;;  %v9218_v18 = vld [vmem:[#allocation17_spill] sm:$0xff] }
 0x3ab   : > { %v7313_v20 = vpop.permute.xlu1 %2760  ;;  %v7315_v10 = vpop.permute.xlu0 %2822  ;;  %v2969_v8 = vpack.c.bf16 %v2665_v27, %v2601_v1  ;;  %v2402_v27 = vadd.f32 %v7072_v57, %v7004_v11 }
 0x3ac   : > { %9212 = vst [vmem:[#allocation10_spill] sm:$0xff] %v7313_v20  ;;  %9213 = vst [vmem:[#allocation12_spill] sm:$0xff] %v7315_v10  ;;  %v9233_v10 = vld [vmem:[#allocation24_spill] sm:$0xff] }
 0x3ad   : > { %2632 = vrot.lane.b32.xlu1 %v7232_v37, %s9025_s27  ;;  %2630 = vrot.lane.b32.xlu0 %v7185_v25, %s9025_s27  ;;  %v7339_v46 = vmax.f32 %v2402_v27, 0.0  ;;  %v9220_v25 = vld [vmem:[#allocation14_spill] sm:$0xff] }
 0x3ae   : > { %3131 = vmatprep.subr.bf16.mxu1 %v2969_v8  ;;  %v2681_v24 = vmul.f32 %v7056_v52, %v9220_v25 }
 0x3af   : > { %3132 = vmatpush1.bf16.msra.mxu1 %v2968_v41  ;;  %v2765_v48 = vpop.permute.xlu1 %2764  ;;  %v7323_v7 = vpop.permute.xlu0 %2696  ;;  %9216 = vst [vmem:[#allocation161_spill] sm:$0xff] %v7339_v46 }
 0x3b1   : > { %2636 = vrot.lane.b32.xlu1 %v7248_v31, %s9025_s27  ;;  %2634 = vrot.lane.b32.xlu0 %v7215_v21, %s9025_s27 }
 0x3b3   : > { %v7333_v2 = vpop.permute.xlu1 %2824  ;;  %v2701_v8 = vpop.permute.xlu0 %2700 }
 0x3b4   : > { %9215 = vst [vmem:[#allocation13_spill] sm:$0xff] %v7333_v2  ;;  %v2738_v57 = vsel %vm1039_vm4, %v7178_v3, %v2701_v8 }
 0x3b5   : > { %2718 = vrot.lane.b32.xlu1 %v7331_v35, %s9183_s26  ;;  %2712 = vrot.lane.b32.xlu0 %v7232_v37, %s9183_s26  ;;  %v2744_v41 = vmul.f32 %v2738_v57, %v9218_v18 }
 0x3b7   : > { %v2829_v43 = vpop.permute.xlu1 %2828  ;;  %v7341_v59 = vpop.permute.xlu0 %2888  ;;  %v2984_v57 = vpack.c.bf16 %v2744_v41, %v2680_v23  ;;  %v9223_v41 = vld [vmem:[#allocation21_spill] sm:$0xff] }
 0x3b8   : > { %9217 = vst [vmem:[#allocation162_spill] sm:$0xff] %v7341_v59 }
 0x3b9   : > { %2516 = vrot.lane.b32.xlu1 %v7339_v46, %s9049_s30  ;;  %2716 = vrot.lane.b32.xlu0 %v7248_v31, %s9183_s26 }
 0x3bb   : > { %v7350_v1 = vpop.permute.xlu1 %2702  ;;  %v2893_v62 = vpop.permute.xlu0 %2892 }
 0x3bc   : > { %v2737_v55 = vsel %vm1039_vm4, %v2701_v8, %v7350_v1  ;;  %v2930_v26 = vsel %vm1426_vm7, %v7201_v51, %v2893_v62  ;;  %v9225_v51 = vld [vmem:[#allocation19_spill] sm:$0xff] }
 0x3bd   : > { %v2745_v27 = vmul.f32 %v2737_v55, %v9219_v50  ;;  %2644 = vrot.lane.b32.xlu1 %v7339_v46, %s9025_s27  ;;  %2452 = vrot.lane.b32.xlu0 %v7339_v46, %s9051_s11  ;;  %v2866_v55 = vsel %vm1297_vm6, %v7297_v40, %v2829_v43 }
 0x3be   : > { %v2872_v50 = vmul.f32 %v2866_v55, %v9223_v41  ;;  %v9226_v55 = vld [vmem:[#allocation20_spill] sm:$0xff] }
 0x3bf   : > { %v7365_v53 = vpop.permute.xlu1 %2894  ;;  %v7367_v56 = vpop.permute.xlu0 %2766  ;;  %v2985_v8 = vpack.c.bf16 %v2745_v27, %v2681_v24  ;;  %v2802_v24 = vsel %vm1168_vm5, %v7283_v33, %v2765_v48  ;;  %v9224_v27 = vld [vmem:[#allocation18_spill] sm:$0xff]  ;;  %v9234_v33 = vld [vmem:[#allocation23_spill] sm:$0xff] }
 0x3c0   : > { %9222 = vst [vmem:[#allocation17_spill] sm:$0xff] %v7365_v53  ;;  %v2801_v29 = vsel %vm1168_vm5, %v2765_v48, %v7367_v56  ;;  %v2929_v23 = vsel %vm1426_vm7, %v2893_v62, %v7365_v53  ;;  %v4892_v48 = vld [vmem:[%s8737_s1 + $0x90] ss:$0 sm:$0xff] }
 0x3c1   : > { %2778 = vrot.lane.b32.xlu1 %v7215_v21, %s9185_s29  ;;  %2580 = vrot.lane.b32.xlu0 %v7339_v46, %s9028_s28  ;;  %v2936_v62 = vmul.f32 %v4892_v48, %v2930_v26 }
 0x3c2   : > { %3133 = vmatprep.subr.bf16.mxu1 %v2985_v8  ;;  %v2809_v8 = vmul.f32 %v2801_v29, %v9224_v27  ;;  %v2808_v29 = vmul.f32 %v2802_v24, %v9226_v55 }
 0x3c3   : > { %3134 = vmatpush1.bf16.msra.mxu1 %v2984_v57  ;;  %v7385_v52 = vpop.permute.xlu1 %2706  ;;  %v7387_v25 = vpop.permute.xlu0 %2830  ;;  %v3016_v26 = vpack.c.bf16 %v2936_v62, %v2936_v62 }
 0x3c4   : > { %v2865_v18 = vsel %vm1297_vm6, %v2829_v43, %v7387_v25  ;;  %v4893_v43 = vld [vmem:[%s8737_s1 + $0x98] ss:$0 sm:$0xff]  ;;  %v3000_v27 = vpack.c.bf16 %v2872_v50, %v2808_v29 }
 0x3c5   : > { %v2873_v28 = vmul.f32 %v2865_v18, %v9225_v51  ;;  %2782 = vrot.lane.b32.xlu1 %v7331_v35, %s9185_s29  ;;  %2776 = vrot.lane.b32.xlu0 %v7232_v37, %s9185_s29  ;;  %v2937_v57 = vmul.f32 %v4893_v43, %v2929_v23 }
 0x3c7   : > { %v7409_v41 = vpop.permute.xlu1 %2770  ;;  %v7411_v51 = vpop.permute.xlu0 %2430  ;;  %v3001_v18 = vpack.c.bf16 %v2873_v28, %v2809_v8  ;;  %v3017_v48 = vpack.c.bf16 %v2937_v57, %v2937_v57  ;;  %v3047_v28 = vsel %vm1626_vm8, %v3016_v26, 0  ;;  %v7432_v8 = vld [vmem:[%s8742_s6] sm:$0xf]  ;;  %v2400_v57 = vadd.f32 %v7070_v58, %v7004_v11 }
 0x3c8   : > { %9227 = vst [vmem:[#allocation15_spill] sm:$0xff] %v7411_v51 }
 0x3c9   : > { %2842 = vrot.lane.b32.xlu1 %v7215_v21, %s9188_s21  ;;  %2780 = vrot.lane.b32.xlu0 %v7248_v31, %s9185_s29 }
 0x3ca   : > { %3135 = vmatprep.subr.bf16.mxu1 %v3001_v18  ;;  %v7457_v18 = vmax.f32 %v2400_v57, 0.0 }
 0x3cb   : > { %3136 = vmatpush1.bf16.msra.mxu1 %v3000_v27  ;;  %v7417_v53 = vpop.permute.xlu1 %2834  ;;  %v2435_v23 = vpop.permute.xlu0 %2434 }
 0x3cc   : > { %4794 = vmatprep.subr.msk.bf16.mxu1 %vm1626_vm8, %v3017_v48  ;;  %9230 = vst [vmem:[#allocation21_spill] sm:$0xff] %v7457_v18 }
 0x3cd   : > { %2846 = vrot.lane.b32.xlu1 %v7331_v35, %s9188_s21  ;;  %2840 = vrot.lane.b32.xlu0 %v7232_v37, %s9188_s21 }
 0x3cf   : > { %3138 = vmatpush1.bf16.msra.mxu1 %v3047_v28  ;;  %v7425_v24 = vpop.permute.xlu1 %2898  ;;  %v7427_v50 = vpop.permute.xlu0 %2494 }
 0x3d0   : > { %9228 = vst [vmem:[#allocation14_spill] sm:$0xff] %v7427_v50  ;;  %v9232_v50 = vld [vmem:[#allocation22_spill] sm:$0xff] }
 0x3d1   : > { %2906 = vrot.lane.b32.xlu1 %v7215_v21, %s9186_s20  ;;  %2844 = vrot.lane.b32.xlu0 %v7248_v31, %s9188_s21 }
 0x3d2   : > { %4795 = vmatmul.mubr.msk.bf16.vlgmr.msra.gmra.mrb[32].mxu1 %vm1622_vm9, %v7432_v8 }
 0x3d3   : > { %v7440_v62 = vpop.permute.xlu1 %2432  ;;  %v2499_v43 = vpop.permute.xlu0 %2498  ;;  %3243 = vmatprep.mubr.bf16.mxu1 %v9020_v19 }
 0x3d4   : > { %9229 = vst [vmem:[#allocation16_spill] sm:$0xff] %v7440_v62 }
 0x3d5   : > { %2910 = vrot.lane.b32.xlu1 %v7331_v35, %s9186_s20  ;;  %2904 = vrot.lane.b32.xlu0 %v7232_v37, %s9186_s20  ;;  %v2463_v37 = vsel %vm443_vm1, %v7440_v62, %v2435_v23 }
 0x3d7   : > { %v7449_v55 = vpop.permute.xlu1 %2436  ;;  %v7451_v29 = vpop.permute.xlu0 %2558 }
 0x3d8   : > { %v2462_v58 = vsel %vm443_vm1, %v2435_v23, %v7449_v55 }
 0x3d9   : > { %2510 = vrot.lane.b32.xlu1 %v7331_v35, %s9049_s30  ;;  %2908 = vrot.lane.b32.xlu0 %v7248_v31, %s9186_s20  ;;  %v2477_v59 = vmul.f32 %v2462_v58, %v9232_v50 }
 0x3db   : > { %v7459_v27 = vpop.permute.xlu1 %2496  ;;  %v2563_v26 = vpop.permute.xlu0 %2562 }
 0x3dc   : > { %9231 = vst [vmem:[#allocation18_spill] sm:$0xff] %v7459_v27  ;;  %v2527_v48 = vsel %vm572_vm0, %v7459_v27, %v2499_v43  ;;  %v9235_v27 = vld [vmem:[#allocation25_spill] sm:$0xff] }
 0x3dd   : > { %2514 = vrot.lane.b32.xlu1 %v7457_v18, %s9049_s30  ;;  %2446 = vrot.lane.b32.xlu0 %v7331_v35, %s9051_s11  ;;  %v2540_v20 = vmul.f32 %v2527_v48, %v9233_v10  ;;  %v2476_v2 = vmul.f32 %v2463_v37, %v9235_v27  ;;  %v9238_v27 = vld [vmem:[#allocation30_spill] sm:$0xff] }
 0x3df   : > { %v7471_v28 = vpop.permute.xlu1 %2500  ;;  %v7473_v57 = vpop.permute.xlu0 %2622  ;;  %v2956_v30 = vpack.c.bf16 %v2540_v20, %v2476_v2  ;;  %v7503_v20 = vmul.f32 %v7109_v15, %v6387_v4  ;;  %v2361_v2 = vadd.f32 %v7133_v5, %v7004_v11 }
 0x3e0   : > { %v2526_v51 = vsel %vm572_vm0, %v2499_v43, %v7471_v28 }
 0x3e1   : > { %v2541_v9 = vmul.f32 %v2526_v51, %v9234_v33  ;;  %2638 = vrot.lane.b32.xlu1 %v7331_v35, %s9025_s27  ;;  %2450 = vrot.lane.b32.xlu0 %v7457_v18, %s9051_s11  ;;  %9236 = vst [vmem:[#allocation19_spill] sm:$0xff] %v7503_v20  ;;  %v7537_v5 = vmax.f32 %v2361_v2, 0.0 }
 0x3e3   : > { %v2561_v40 = vpop.permute.xlu1 %2560  ;;  %v2627_v23 = vpop.permute.xlu0 %2626  ;;  %v2957_v62 = vpack.c.bf16 %v2541_v9, %v2477_v59  ;;  %9237 = vst [vmem:[#allocation20_spill] sm:$0xff] %v7537_v5 }
 0x3e5   : > { %2642 = vrot.lane.b32.xlu1 %v7457_v18, %s9025_s27  ;;  %2574 = vrot.lane.b32.xlu0 %v7331_v35, %s9028_s28 }
 0x3e6   : > { %3211 = vmatprep.subr.bf16.mxu1 %v2957_v62 }
 0x3e7   : > { %3212 = vmatpush1.bf16.msra.mxu1 %v2956_v30  ;;  %v7493_v33 = vpop.permute.xlu1 %2564  ;;  %v7495_v10 = vpop.permute.xlu0 %2704  ;;  %v2592_v30 = vsel %vm701_vm2, %v7451_v29, %v2561_v40 }
 0x3e8   : > { %v2736_v37 = vsel %vm1039_vm4, %v7350_v1, %v7495_v10  ;;  %v7523_v1 = vmul.f32 %v2592_v30, %v6336_v39  ;;  %v2590_v11 = vsel %vm701_vm2, %v2563_v26, %v7493_v33  ;;  %v2591_v39 = vsel %vm701_vm2, %v2561_v40, %v2563_v26  ;;  %v9239_v30 = vld [vmem:[#allocation27_spill] sm:$0xff] }
 0x3e9   : > { %v7506_v9 = vmul.f32 %v2736_v37, %v6400_v0  ;;  %2722 = vrot.lane.b32.xlu1 %v7457_v18, %s9183_s26  ;;  %2578 = vrot.lane.b32.xlu0 %v7457_v18, %s9028_s28  ;;  %v2605_v2 = vmul.f32 %v2590_v11, %v9239_v30  ;;  %v9241_v26 = vld [vmem:[#allocation31_spill] sm:$0xff]  ;;  %v9244_v30 = vld [vmem:[#allocation32_spill] sm:$0xff] }
 0x3eb   : > { %v2625_v15 = vpop.permute.xlu1 %2624  ;;  %v2709_v59 = vpop.permute.xlu0 %2708 }
 0x3ec   : > { %v2656_v0 = vsel %vm830_vm3, %v7473_v57, %v2625_v15  ;;  %v2655_v51 = vsel %vm830_vm3, %v2625_v15, %v2627_v23  ;;  %v2734_v48 = vsel %vm1039_vm4, %v7385_v52, %v2709_v59  ;;  %v9240_v15 = vld [vmem:[#allocation28_spill] sm:$0xff] }
 0x3ed   : > { %v7528_v50 = vmul.f32 %v2656_v0, %v6326_v12  ;;  %2850 = vrot.lane.b32.xlu1 %v7457_v18, %s9188_s21  ;;  %2786 = vrot.lane.b32.xlu0 %v7457_v18, %s9185_s29  ;;  %v2668_v58 = vmul.f32 %v2655_v51, %v9238_v27  ;;  %v2604_v0 = vmul.f32 %v2591_v39, %v9241_v26  ;;  %v9242_v51 = vld [vmem:[#allocation36_spill] sm:$0xff] }
 0x3ee   : > { %v2748_v27 = vmul.f32 %v2734_v48, %v9242_v51  ;;  %v9246_v51 = vld [vmem:[#allocation41_spill] sm:$0xff] }
 0x3ef   : > { %v7541_v62 = vpop.permute.xlu1 %2628  ;;  %v2769_v43 = vpop.permute.xlu0 %2768  ;;  %v2972_v20 = vpack.c.bf16 %v2668_v58, %v2604_v0 }
 0x3f0   : > { %v2654_v37 = vsel %vm830_vm3, %v2627_v23, %v7541_v62  ;;  %v9243_v23 = vld [vmem:[#allocation35_spill] sm:$0xff]  ;;  %v2799_v39 = vsel %vm1168_vm5, %v2769_v43, %v7409_v41  ;;  %v2800_v48 = vsel %vm1168_vm5, %v7367_v56, %v2769_v43 }
 0x3f1   : > { %v2669_v40 = vmul.f32 %v2654_v37, %v9240_v15  ;;  %2448 = vrot.lane.b32.xlu1 %v7537_v5, %s9051_s11  ;;  %2512 = vrot.lane.b32.xlu0 %v7537_v5, %s9049_s30  ;;  %v2684_v11 = vmul.f32 %v7121_v16, %v9243_v23  ;;  %v2685_v15 = vmul.f32 %v7152_v54, %v9244_v30  ;;  %v9248_v30 = vld [vmem:[#allocation42_spill] sm:$0xff]  ;;  %s351_s30 = sand.u32 1, %s4963_s14  }
 0x3f2   : > { %v7583_v26 = vmul.f32 %v2800_v48, %v6422_v63  ;;  %v7586_v56 = vmul.f32 %v2799_v39, %v6440_v44  ;;  %v9249_v39 = vld [vmem:[#allocation39_spill] sm:$0xff]  ;;  %s4748_s11 = sshll.u32 %s351_s30, 3  ;;  %s4672_s0 = scalar_lea.sflag [#allocation3], %s351_s30 }
 0x3f3   : > { %v7560_v4 = vpop.permute.xlu1 %2710  ;;  %v2773_v12 = vpop.permute.xlu0 %2772  ;;  %v2973_v35 = vpack.c.bf16 %v2669_v40, %v2605_v2  ;;  %v9245_v2 = vld [vmem:[#allocation33_spill] sm:$0xff]  ;;  %v2988_v16 = vpack.c.bf16 %v2748_v27, %v2684_v11  ;;  %v9247_v11 = vld [vmem:[#allocation38_spill] sm:$0xff] }
 0x3f4   : > { %v2733_v37 = vsel %vm1039_vm4, %v2709_v59, %v7560_v4 }
 0x3f5   : > { %v2749_v58 = vmul.f32 %v2733_v37, %v9245_v2  ;;  %2576 = vrot.lane.b32.xlu1 %v7537_v5, %s9028_s28  ;;  %2640 = vrot.lane.b32.xlu0 %v7537_v5, %s9025_s27 }
 0x3f6   : > { %3213 = vmatprep.subr.bf16.mxu1 %v2973_v35 }
 0x3f7   : > { %3214 = vmatpush1.bf16.msra.mxu1 %v2972_v20  ;;  %v7580_v54 = vpop.permute.xlu1 %2774  ;;  %v2833_v59 = vpop.permute.xlu0 %2832  ;;  %v2989_v40 = vpack.c.bf16 %v2749_v58, %v2685_v15  ;;  %v2798_v20 = vsel %vm1168_vm5, %v7409_v41, %v2773_v12 }
 0x3f8   : > { %v2863_v43 = vsel %vm1297_vm6, %v2833_v59, %v7417_v53  ;;  %v2864_v35 = vsel %vm1297_vm6, %v7387_v25, %v2833_v59  ;;  %v2797_v44 = vsel %vm1168_vm5, %v2773_v12, %v7580_v54  ;;  %v2812_v27 = vmul.f32 %v2798_v20, %v9246_v51  ;;  %v4894_v20 = vld [vmem:[%s8737_s1 + $0xb0] ss:$0 sm:$0xff] }
 0x3f9   : > { %v7598_v0 = vmul.f32 %v2864_v35, %v6456_v49  ;;  %v7601_v63 = vmul.f32 %v2863_v43, %v6460_v22  ;;  %2784 = vrot.lane.b32.xlu1 %v7537_v5, %s9185_s29  ;;  %2720 = vrot.lane.b32.xlu0 %v7537_v5, %s9183_s26  ;;  %v2813_v37 = vmul.f32 %v2797_v44, %v9247_v11 }
 0x3fa   : > { %3215 = vmatprep.subr.bf16.mxu1 %v2989_v40 }
 0x3fb   : > { %3216 = vmatpush1.bf16.msra.mxu1 %v2988_v16  ;;  %v7612_v49 = vpop.permute.xlu1 %2838  ;;  %v2837_v41 = vpop.permute.xlu0 %2836 }
 0x3fc   : > { %v2861_v23 = vsel %vm1297_vm6, %v2837_v41, %v7612_v49  ;;  %v2862_v12 = vsel %vm1297_vm6, %v7417_v53, %v2837_v41  ;;  %v4895_v41 = vld [vmem:[%s8737_s1 + $0xb8] ss:$0 sm:$0xff] }
 0x3fd   : > { %v2876_v15 = vmul.f32 %v2862_v12, %v9248_v30  ;;  %v2877_v48 = vmul.f32 %v2861_v23, %v9249_v39  ;;  %2788 = vrot.lane.b32.xlu1 %v7339_v46, %s9185_s29  ;;  %2724 = vrot.lane.b32.xlu0 %v7339_v46, %s9183_s26  ;;  %v3031_v39 = vld [vmem:[%s8743_s7] sm:$0xff]  ;;  %s4826_s26 = sshll.u32 %s5061_s17, 7  ;;  %s353_s29 = scalar_lea.vmem [#allocation2], %s4748_s11 }
 0x3fe   : > { %s8693_s25 = scalar_lea.hbm %s8746_s10, %s4826_s26  ;;  %s4984_s17 = smov [#allocation2]  }
 0x3ff   : > { %v3004_v2 = vpack.c.bf16 %v2876_v15, %v2812_v27  ;;  %v7630_v58 = vpop.permute.xlu1 %2902  ;;  %v7632_v16 = vpop.permute.xlu0 %2896  ;;  %v3005_v59 = vpack.c.bf16 %v2877_v48, %v2813_v37  ;;  %v3450_v27 = vld [vmem:[%s8745_s9] sm:$0xff]  ;;  %s4913_s27 = sshll.u32 %s4984_s17, 4  ;;  %s4914_s27 = int_to_ptr.vmem [resolvable:$false] %s4913_s27 }
 0x400   : > { %s4915_s28 = scalar_lea.vmem %s4914_s27, 256 }
 0x401   : > { %2912 = vrot.lane.b32.xlu1 %v7537_v5, %s9186_s20  ;;  %2848 = vrot.lane.b32.xlu0 %v7537_v5, %s9188_s21 }
 0x402   : > { %3217 = vmatprep.subr.bf16.mxu1 %v3005_v59 }
 0x403   : > { %3218 = vmatpush1.bf16.msra.mxu1 %v3004_v2  ;;  %v7638_v53 = vpop.permute.xlu1 %2714  ;;  %v2901_v40 = vpop.permute.xlu0 %2900 }
 0x404   : > { %v2925_v43 = vsel %vm1426_vm7, %v2901_v40, %v7630_v58  ;;  %v2926_v35 = vsel %vm1426_vm7, %v7425_v24, %v2901_v40  ;;  %v3451_v40 = vld [vmem:[%s8745_s9 + $0x8] sm:$0xff] }
 0x405   : > { %v2940_v44 = vmul.f32 %v4894_v20, %v2926_v35  ;;  %v2941_v51 = vmul.f32 %v4895_v41, %v2925_v43  ;;  %2916 = vrot.lane.b32.xlu1 %v7339_v46, %s9186_s20  ;;  %2852 = vrot.lane.b32.xlu0 %v7339_v46, %s9188_s21  ;;  %s4685_s21 = sshll.u32 %s353_s29, 4  ;;  %s8695_s21 = int_to_ptr.vmem [resolvable:$true] %s4685_s21 }
 0x406   : > { %s4909_s12 = scalar_lea.vmem %s8695_s21, 128  ;;  %p4916_p0 = scmp.lt.s32.totalorder %s8695_s21, %s4914_s27 }
 0x407   : > { %v3020_v23 = vpack.c.bf16 %v2940_v44, %v2940_v44  ;;  %v3021_v12 = vpack.c.bf16 %v2941_v51, %v2941_v51  ;;  %v2441_v11 = vpop.permute.xlu1 %2440  ;;  %v2439_v37 = vpop.permute.xlu0 %2438  ;;  %p4910_p11 = scmp.ne.s32.totalorder %s8695_s21, %s4909_s12  ;;  %p4917_p1 = scmp.lt.s32.totalorder %s4915_s28, %s4909_s12 }
 0x408   : > { %v2460_v30 = vsel %vm443_vm1, %v2439_v37, %v2441_v11  ;;  %v2461_v59 = vsel %vm443_vm1, %v7449_v55, %v2439_v37 }
 0x409   : > { %3454 = vperm.xlu1 %4881, %v3450_v27   ;;  %2914 = vrot.lane.b32.xlu0 %v7457_v18, %s9186_s20  ;;  %v3059_v15 = vsel %vm1626_vm8, %v3020_v23, 0  ;;  %v7685_v55 = vmul.f32 %v2461_v59, %v6502_v42  ;;  %v7688_v41 = vmul.f32 %v2460_v30, %v6472_v45  ;;  %v9252_v30 = vld [vmem:[#allocation49_spill] sm:$0xff]  ;;  %p4911_p12 = pnand %p4910_p11, %p5078_p5  ;;  %p4918_p2 = por %p4917_p1, %p4916_p0 }
 0x40a   : > { %4798 = vmatprep.subr.msk.bf16.mxu1 %vm1626_vm8, %v3021_v12 }
 0x40b   : > { %3220 = vmatpush1.bf16.msra.mxu1 %v3059_v15  ;;  %v7668_v48 = vpop.permute.xlu1 %2444  ;;  %v2443_v2 = vpop.permute.xlu0 %2442  ;;  %p4912_p13 = pneg %p4911_p12 }
 0x40c   : > { %9250 = vst [vmem:[#allocation22_spill] sm:$0xff] %v7668_v48  ;;  %v2458_v23 = vsel %vm443_vm1, %v2443_v2, %v7668_v48 }
 0x40d   : > { %3034 = vperm.xlu0 %4880, %v3031_v39   ;;  %v9253_v39 = vld [vmem:[#allocation45_spill] sm:$0xff]  ;;  %p4919_p3 = pnand %p4918_p2, %p4912_p13 }
 0x40e   : > { %4799 = vmatmul.mubr.msk.bf16.vlgmr.msra.gmra.mrb[36].mxu1 %vm1622_vm9, %v7432_v8 }
 0x40f   : > { %v2505_v43 = vpop.permute.xlu1 %2504  ;;  %v2503_v35 = vpop.permute.xlu0 %2502  ;;  %3325 = vmatprep.mubr.bf16.mxu1 %v9020_v19 }
 0x410   : > { %v2524_v20 = vsel %vm572_vm0, %v2503_v35, %v2505_v43  ;;  %v2525_v44 = vsel %vm572_vm0, %v7471_v28, %v2503_v35  ;;  %v2459_v28 = vsel %vm443_vm1, %v2441_v11, %v2443_v2  ;;  %v2481_v11 = vmul.f32 %v2458_v23, %v9253_v39  ;;  %v9254_v2 = vld [vmem:[#allocation48_spill] sm:$0xff] }
 0x411   : > { %v7691_v51 = vmul.f32 %v2525_v44, %v6498_v47  ;;  %v7694_v27 = vmul.f32 %v2524_v20, %v6468_v36  ;;  %3459 = vperm.xlu0 %4880, %v3451_v40   ;;  %v2480_v15 = vmul.f32 %v2459_v28, %v9252_v30  ;;  %v9255_v40 = vld [vmem:[#allocation46_spill] sm:$0xff] }
 0x413   : > { %v7703_v12 = vpop.permute.xlu1 %2508  ;;  %v2507_v45 = vpop.permute.xlu0 %2506 }
 0x414   : > { %9251 = vst [vmem:[#allocation24_spill] sm:$0xff] %v7703_v12  ;;  %v2522_v36 = vsel %vm572_vm0, %v2507_v45, %v7703_v12  ;;  %v2523_v37 = vsel %vm572_vm0, %v2505_v43, %v2507_v45  ;;  %v9296_v12 = vld [vmem:[#allocation95_spill] sm:$0xff] }
 0x415   : > { %v2544_v59 = vmul.f32 %v2523_v37, %v9254_v2  ;;  %v2545_v35 = vmul.f32 %v2522_v36, %v9255_v40 }
 0x417   : > { %v2960_v20 = vpack.c.bf16 %v2544_v59, %v2480_v15  ;;  %v2569_v44 = vpop.permute.xlu1 %2568  ;;  %v2567_v42 = vpop.permute.xlu0 %2566  ;;  %v2961_v25 = vpack.c.bf16 %v2545_v35, %v2481_v11  ;;  %v9257_v59 = vld [vmem:[#allocation51_spill] sm:$0xff]  ;;  %v9258_v35 = vld [vmem:[#allocation54_spill] sm:$0xff] }
 0x418   : > { %v7718_v47 = vsel %vm701_vm2, %v2567_v42, %v2569_v44  ;;  %v2589_v43 = vsel %vm701_vm2, %v7493_v33, %v2567_v42 }
 0x419   : > { %3293 = vmatprep.subr.bf16.mxu1 %v2961_v25  ;;  %v7734_v30 = vmul.f32 %v2589_v43, %v6539_v17 }
 0x41a   : > { %3294 = vmatpush1.bf16.msra.mxu1 %v2960_v20 }
 0x41b   : > { %v7723_v28 = vpop.permute.xlu1 %2572  ;;  %v2571_v23 = vpop.permute.xlu0 %2570 }
 0x41c   : > { %v2586_v33 = vsel %vm701_vm2, %v2571_v23, %v7723_v28  ;;  %v2587_v25 = vsel %vm701_vm2, %v2569_v44, %v2571_v23  ;;  %v9259_v44 = vld [vmem:[#allocation52_spill] sm:$0xff] }
 0x41d   : > { %v2609_v40 = vmul.f32 %v2586_v33, %v9257_v59 }
 0x41f   : > { %v7725_v45 = vpop.permute.xlu1 %2632  ;;  %v7727_v36 = vpop.permute.xlu0 %2630 }
 0x420   : > { %v2653_v37 = vsel %vm830_vm3, %v7541_v62, %v7727_v36  ;;  %v9256_v62 = vld [vmem:[#allocation55_spill] sm:$0xff] }
 0x421   : > { %v7737_v15 = vmul.f32 %v2653_v37, %v6535_v60  ;;  %v2608_v2 = vmul.f32 %v2587_v25, %v9256_v62 }
 0x423   : > { %v7746_v39 = vpop.permute.xlu1 %2636  ;;  %v2635_v11 = vpop.permute.xlu0 %2634 }
 0x424   : > { %v2650_v17 = vsel %vm830_vm3, %v2635_v11, %v7746_v39  ;;  %v2651_v60 = vsel %vm830_vm3, %v7725_v45, %v2635_v11  ;;  %v9261_v11 = vld [vmem:[#allocation64_spill] sm:$0xff] }
 0x425   : > { %v2672_v20 = vmul.f32 %v2651_v60, %v9258_v35  ;;  %v2673_v43 = vmul.f32 %v2650_v17, %v9259_v44  ;;  %v2688_v25 = vmul.f32 %v7215_v21, %v9261_v11  ;;  %v9262_v60 = vld [vmem:[#allocation65_spill] sm:$0xff] }
 0x427   : > { %v2976_v23 = vpack.c.bf16 %v2672_v20, %v2608_v2  ;;  %v7758_v37 = vpop.permute.xlu1 %2718  ;;  %v7760_v42 = vpop.permute.xlu0 %2712  ;;  %v2977_v22 = vpack.c.bf16 %v2673_v43, %v2609_v40  ;;  %v9263_v2 = vld [vmem:[#allocation60_spill] sm:$0xff]  ;;  %v9264_v40 = vld [vmem:[#allocation59_spill] sm:$0xff] }
 0x428   : > { %9260 = vst [vmem:[#allocation23_spill] sm:$0xff] %v7758_v37  ;;  %v2689_v21 = vmul.f32 %v7248_v31, %v9264_v40 }
 0x429   : > { %3295 = vmatprep.subr.bf16.mxu1 %v2977_v22  ;;  %v2660_v22 = vsel %vm830_vm3, %v7252_v13, %v7281_v6 }
 0x42a   : > { %3296 = vmatpush1.bf16.msra.mxu1 %v2976_v23  ;;  %v9266_v23 = vld [vmem:[#allocation67_spill] sm:$0xff] }
 0x42b   : > { %v7762_v5 = vpop.permute.xlu1 %2516  ;;  %v2717_v46 = vpop.permute.xlu0 %2716  ;;  %v2663_v11 = vmul.f32 %v2660_v22, %v9266_v23 }
 0x42c   : > { %v2729_v33 = vsel %vm1039_vm4, %v2717_v46, %v7758_v37  ;;  %v2730_v17 = vsel %vm1039_vm4, %v7638_v53, %v2717_v46  ;;  %v2533_v35 = vsel %vm572_vm0, %v7762_v5, %v7203_v32  ;;  %v2596_v46 = vsel %vm701_vm2, %v7221_v34, %v7267_v61  ;;  %v9288_v37 = vld [vmem:[#allocation156_spill] sm:$0xff] }
 0x42d   : > { %v2752_v62 = vmul.f32 %v2730_v17, %v9262_v60  ;;  %v2753_v59 = vmul.f32 %v2729_v33, %v9263_v2  ;;  %v2739_v32 = vsel %vm1039_vm4, %v7323_v7, %v7178_v3  ;;  %v9267_v33 = vld [vmem:[#allocation62_spill] sm:$0xff] }
 0x42e   : > { %v2534_v61 = vmul.f32 %v2533_v35, %v9267_v33  ;;  %v9269_v60 = vld [vmem:[#allocation66_spill] sm:$0xff] }
 0x42f   : > { %v2992_v20 = vpack.c.bf16 %v2752_v62, %v2688_v25  ;;  %v7788_v44 = vpop.permute.xlu1 %2644  ;;  %v7790_v6 = vpop.permute.xlu0 %2452  ;;  %v2993_v43 = vpack.c.bf16 %v2753_v59, %v2689_v21  ;;  %v9268_v25 = vld [vmem:[#allocation63_spill] sm:$0xff]  ;;  %v2599_v62 = vmul.f32 %v2596_v46, %v9269_v60  ;;  %v9270_v3 = vld [vmem:[#allocation6_spill] sm:$0xff]  ;;  %v9278_v60 = vld [vmem:[#allocation9_spill] sm:$0xff] }
 0x430   : > { %9265 = vst [vmem:[#allocation25_spill] sm:$0xff] %v7788_v44  ;;  %v2469_v31 = vsel %vm443_vm1, %v7790_v6, %v7189_v38  ;;  %v2661_v22 = vsel %vm830_vm3, %v7788_v44, %v7252_v13  ;;  %v2740_v40 = vsel %vm1039_vm4, %v9270_v3, %v7323_v7  ;;  %v9271_v21 = vld [vmem:[#allocation75_spill] sm:$0xff]  ;;  %v9272_v13 = vld [vmem:[#allocation8_spill] sm:$0xff]  ;;  %v9276_v7 = vld [vmem:[#allocation74_spill] sm:$0xff] }
 0x431   : > { %v2470_v17 = vmul.f32 %v2469_v31, %v9268_v25  ;;  %3297 = vmatprep.subr.bf16.mxu1 %v2993_v43  ;;  %v2743_v35 = vmul.f32 %v2739_v32, %v9271_v21  ;;  %v2967_v43 = vpack.c.bf16 %v2663_v11, %v2599_v62  ;;  %v9274_v31 = vld [vmem:[#allocation73_spill] sm:$0xff]  ;;  %v9279_v21 = vld [vmem:[#allocation10_spill] sm:$0xff]  ;;  %v9280_v11 = vld [vmem:[#allocation79_spill] sm:$0xff] }
 0x432   : > { %3298 = vmatpush1.bf16.msra.mxu1 %v2992_v20  ;;  %v9273_v20 = vld [vmem:[#allocation13_spill] sm:$0xff]  ;;  %v2662_v33 = vmul.f32 %v2661_v22, %v9274_v31  ;;  %v2742_v62 = vmul.f32 %v2740_v40, %v9280_v11  ;;  %v9281_v22 = vld [vmem:[#allocation12_spill] sm:$0xff]  ;;  %v9283_v31 = vld [vmem:[#allocation162_spill] sm:$0xff] }
 0x433   : > { %v2950_v2 = vpack.c.bf16 %v2534_v61, %v2470_v17  ;;  %v7808_v38 = vpop.permute.xlu1 %2778  ;;  %v7810_v59 = vpop.permute.xlu0 %2580  ;;  %v2867_v23 = vsel %vm1297_vm6, %v9273_v20, %v9272_v13  ;;  %v9275_v61 = vld [vmem:[#allocation72_spill] sm:$0xff]  ;;  %v9277_v17 = vld [vmem:[#allocation153_spill] sm:$0xff] }
 0x434   : > { %v2597_v46 = vsel %vm701_vm2, %v7810_v59, %v7221_v34  ;;  %v2679_v32 = vmul.f32 %v9277_v17, %v9276_v7  ;;  %v2803_v34 = vsel %vm1168_vm5, %v9279_v21, %v9278_v60  ;;  %v9285_v60 = vld [vmem:[#allocation78_spill] sm:$0xff]  ;;  %v9286_v40 = vld [vmem:[#allocation152_spill] sm:$0xff] }
 0x435   : > { %v2598_v25 = vmul.f32 %v2597_v46, %v9275_v61  ;;  %3089 = vmatpush1.bf16.msra.mxu0 %v2950_v2  ;;  %v2868_v2 = vsel %vm1297_vm6, %v9281_v22, %v9273_v20  ;;  %v9282_v46 = vld [vmem:[#allocation83_spill] sm:$0xff]  ;;  %v9284_v61 = vld [vmem:[#allocation157_spill] sm:$0xff]  ;;  %v2804_v20 = vsel %vm1168_vm5, %v9288_v37, %v9279_v21  ;;  %v9291_v21 = vld [vmem:[#allocation18_spill] sm:$0xff] }
 0x436   : > { %3090 = vmatprep.subr.bf16.mxu0 %v2967_v43  ;;  %v2871_v43 = vmul.f32 %v2867_v23, %v9282_v46  ;;  %v2932_v7 = vsel %vm1426_vm7, %v9284_v61, %v9283_v31  ;;  %v2983_v17 = vpack.c.bf16 %v2743_v35, %v2679_v32  ;;  %v9289_v23 = vld [vmem:[#allocation84_spill] sm:$0xff]  ;;  %v9290_v61 = vld [vmem:[#allocation87_spill] sm:$0xff]  ;;  %v9292_v37 = vld [vmem:[#allocation14_spill] sm:$0xff] }
 0x437   : > { %v2966_v18 = vpack.c.bf16 %v2662_v33, %v2598_v25  ;;  %v7834_v3 = vpop.permute.xlu1 %2782  ;;  %v7836_v13 = vpop.permute.xlu0 %2776  ;;  %v2678_v33 = vmul.f32 %v9286_v40, %v9285_v60  ;;  %v9287_v25 = vld [vmem:[#allocation158_spill] sm:$0xff]  ;;  %v2807_v46 = vmul.f32 %v2803_v34, %v9289_v23  ;;  %v2870_v35 = vmul.f32 %v2868_v2, %v9290_v61  ;;  %v4896_v32 = vld [vmem:[%s8737_s1 + $0x80] ss:$0 sm:$0xff]  ;;  %v9293_v2 = vld [vmem:[#allocation88_spill] sm:$0xff] }
 0x438   : > { %v2931_v11 = vsel %vm1426_vm7, %v9283_v31, %v9287_v25  ;;  %v2934_v60 = vmul.f32 %v4896_v32, %v2932_v7  ;;  %v2528_v34 = vsel %vm572_vm0, %v9292_v37, %v9291_v21  ;;  %v2806_v61 = vmul.f32 %v2804_v20, %v9293_v2  ;;  %v9299_v20 = vld [vmem:[#allocation57_spill] sm:$0xff] }
 0x439   : > { %3091 = vmatpush1.bf16.msra.mxu0 %v2966_v18  ;;  %v2982_v22 = vpack.c.bf16 %v2742_v62, %v2678_v33  ;;  %v4897_v18 = vld [vmem:[%s8737_s1 + $0x88] ss:$0 sm:$0xff]  ;;  %v2999_v62 = vpack.c.bf16 %v2871_v43, %v2807_v46  ;;  %v9295_v33 = vld [vmem:[#allocation15_spill] sm:$0xff]  ;;  %v2539_v48 = vmul.f32 %v2528_v34, %v9296_v12  ;;  %v2529_v46 = vsel %vm572_vm0, %v9299_v20, %v9292_v37  ;;  %v9300_v21 = vld [vmem:[#allocation97_spill] sm:$0xff] }
 0x43a   : > { %3092 = vmatprep.subr.bf16.mxu0 %v2983_v17  ;;  %v2935_v25 = vmul.f32 %v4897_v18, %v2931_v11  ;;  %v9294_v17 = vld [vmem:[#allocation16_spill] sm:$0xff]  ;;  %v2998_v23 = vpack.c.bf16 %v2870_v35, %v2806_v61  ;;  %v3014_v32 = vpack.c.bf16 %v2934_v60, %v2934_v60  ;;  %v9298_v43 = vld [vmem:[#allocation159_spill] sm:$0xff] }
 0x43b   : > { %v7862_v40 = vpop.permute.xlu1 %2842  ;;  %v2781_v31 = vpop.permute.xlu0 %2780  ;;  %v2464_v7 = vsel %vm443_vm1, %v9295_v33, %v9294_v17 }
 0x43c   : > { %v3015_v44 = vpack.c.bf16 %v2935_v25, %v2935_v25  ;;  %v2475_v35 = vmul.f32 %v2464_v7, %v9300_v21  ;;  %v2793_v12 = vsel %vm1168_vm5, %v2781_v31, %v7834_v3  ;;  %v2794_v60 = vsel %vm1168_vm5, %v7808_v38, %v2781_v31  ;;  %v9301_v25 = vld [vmem:[#allocation96_spill] sm:$0xff]  ;;  %v9303_v7 = vld [vmem:[#allocation7_spill] sm:$0xff] }
 0x43d   : > { %3093 = vmatpush1.bf16.msra.mxu0 %v2982_v22  ;;  %v2465_v22 = vsel %vm443_vm1, %v9298_v43, %v9295_v33  ;;  %v3041_v17 = vsel %vm1626_vm8, %v3014_v32, 0  ;;  %v9304_v32 = vld [vmem:[#allocation76_spill] sm:$0xff] }
 0x43e   : > { %3094 = vmatprep.subr.bf16.mxu0 %v2999_v62  ;;  %v2474_v34 = vmul.f32 %v2465_v22, %v9301_v25  ;;  %v9302_v62 = vld [vmem:[#allocation94_spill] sm:$0xff]  ;;  %v2955_v33 = vpack.c.bf16 %v2539_v48, %v2475_v35  ;;  %v2816_v48 = vmul.f32 %v2794_v60, %v9304_v32  ;;  %v9305_v22 = vld [vmem:[#allocation69_spill] sm:$0xff] }
 0x43f   : > { %v7877_v11 = vpop.permute.xlu1 %2846  ;;  %v7879_v18 = vpop.permute.xlu0 %2840  ;;  %v2538_v2 = vmul.f32 %v2529_v46, %v9302_v62  ;;  %v2817_v20 = vmul.f32 %v2793_v12, %v9305_v22  ;;  %v9306_v46 = vld [vmem:[#allocation77_spill] sm:$0xff]  ;;  %v9308_v25 = vld [vmem:[#allocation58_spill] sm:$0xff] }
 0x440   : > { %9297 = vst [vmem:[#allocation30_spill] sm:$0xff] %v7877_v11  ;;  %v9309_v62 = vld [vmem:[#allocation102_spill] sm:$0xff]  ;;  %v9310_v32 = vld [vmem:[#allocation109_spill] sm:$0xff] }
 0x441   : > { %3095 = vmatpush1.bf16.msra.mxu0 %v2998_v23  ;;  %v2657_v23 = vsel %vm830_vm3, %v9303_v7, %v7473_v57  ;;  %v9307_v57 = vld [vmem:[#allocation70_spill] sm:$0xff] }
 0x442   : > { %4792 = vmatprep.subr.msk.bf16.mxu0 %vm1626_vm8, %v3015_v44  ;;  %v2735_v44 = vsel %vm1039_vm4, %v7495_v10, %v7385_v52  ;;  %v2593_v52 = vsel %vm701_vm2, %v9308_v25, %v7451_v29  ;;  %v2954_v10 = vpack.c.bf16 %v2538_v2, %v2474_v34  ;;  %v2666_v7 = vmul.f32 %v2657_v23, %v9309_v62  ;;  %v9313_v34 = vld [vmem:[#allocation108_spill] sm:$0xff]  ;;  %v9314_v2 = vld [vmem:[#allocation154_spill] sm:$0xff] }
 0x443   : > { %v7899_v61 = vpop.permute.xlu1 %2906  ;;  %v2845_v37 = vpop.permute.xlu0 %2844  ;;  %v9312_v29 = vpack.c.bf16 %v7528_v50, %v7523_v1  ;;  %v2927_v50 = vsel %vm1426_vm7, %v7632_v16, %v7425_v24 }
 0x444   : > { %v2857_v31 = vsel %vm1297_vm6, %v2845_v37, %v7877_v11  ;;  %v2858_v43 = vsel %vm1297_vm6, %v7862_v40, %v2845_v37 }
 0x445   : > { %v2880_v21 = vmul.f32 %v2858_v43, %v9306_v46  ;;  %v2881_v35 = vmul.f32 %v2857_v31, %v9307_v57  ;;  %3097 = vmatpush1.bf16.msra.mxu0 %v3041_v17  ;;  %v2747_v43 = vmul.f32 %v2735_v44, %v9310_v32  ;;  %v9311_v17 = vld [vmem:[#allocation103_spill] sm:$0xff] }
 0x446   : > { %3170 = vmatprep.subr.bf16.mxu0 %v2955_v33  ;;  %v2602_v31 = vmul.f32 %v2593_v52, %v9311_v17  ;;  %v2683_v33 = vmul.f32 %v9314_v2, %v9313_v34  ;;  %v9318_v34 = vpack.c.bf16 %v7601_v63, %v7586_v56  ;;  %v9320_v63 = vld [vmem:[#allocation82_spill] sm:$0xff] }
 0x447   : > { %v3008_v11 = vpack.c.bf16 %v2880_v21, %v2816_v48  ;;  %v7925_v37 = vpop.permute.xlu1 %2910  ;;  %v7927_v60 = vpop.permute.xlu0 %2904  ;;  %v3009_v12 = vpack.c.bf16 %v2881_v35, %v2817_v20  ;;  %v4898_v21 = vld [vmem:[%s8737_s1 + $0xd0] ss:$0 sm:$0xff]  ;;  %v4899_v35 = vld [vmem:[%s8737_s1 + $0xd8] ss:$0 sm:$0xff] }
 0x448   : > { %4793 = vmatmul.mubr.msk.bf16.vlgmr.msra.gmra.mrb[32].mxu0 %vm1622_vm9, %v7432_v8  ;;  %v2970_v23 = vpack.c.bf16 %v2666_v7, %v2602_v31  ;;  %v2987_v1 = vpack.c.bf16 %v2747_v43, %v2683_v33  ;;  %v9316_v43 = vld [vmem:[#allocation19_spill] sm:$0xff] }
 0x449   : > { %3171 = vmatpush1.bf16.msra.mxu0 %v2954_v10  ;;  %3299 = vmatprep.subr.bf16.mxu1 %v3009_v12  ;;  %v4901_v12 = vld [vmem:[%s8737_s1 + $0xa8] ss:$0 sm:$0xff]  ;;  %v9317_v17 = vpack.c.bf16 %v7506_v9, %v9316_v43 }
 0x44a   : > { %3172 = vmatprep.subr.bf16.mxu0 %v9312_v29  ;;  %3300 = vmatpush1.bf16.msra.mxu1 %v3008_v11  ;;  %v9315_v11 = vld [vmem:[#allocation17_spill] sm:$0xff]  ;;  %v2939_v32 = vmul.f32 %v4901_v12, %v2927_v50 }
 0x44b   : > { %v7938_v48 = vpop.permute.xlu1 %2510  ;;  %v2909_v22 = vpop.permute.xlu0 %2908  ;;  %3202 = vmatprep.mubr.bf16.mxu0 %v9020_v19  ;;  %v2928_v46 = vsel %vm1426_vm7, %v9315_v11, %v7632_v16  ;;  %v4900_v16 = vld [vmem:[%s8737_s1 + $0xa0] ss:$0 sm:$0xff]  ;;  %v9322_v11 = vld [vmem:[#allocation110_spill] sm:$0xff] }
 0x44c   : > { %v2921_v44 = vsel %vm1426_vm7, %v2909_v22, %v7925_v37  ;;  %v2922_v20 = vsel %vm1426_vm7, %v7899_v61, %v2909_v22  ;;  %v2938_v7 = vmul.f32 %v4900_v16, %v2928_v46 }
 0x44d   : > { %v2944_v57 = vmul.f32 %v4898_v21, %v2922_v20  ;;  %v2945_v25 = vmul.f32 %v4899_v35, %v2921_v44  ;;  %3173 = vmatpush1.bf16.msra.mxu0 %v2970_v23  ;;  %v3019_v23 = vpack.c.bf16 %v2939_v32, %v2939_v32  ;;  %v9319_v44 = vld [vmem:[#allocation81_spill] sm:$0xff]  ;;  %v9323_v21 = vld [vmem:[#allocation47_spill] sm:$0xff]  ;;  %v9324_v35 = vld [vmem:[#allocation44_spill] sm:$0xff] }
 0x44e   : > { %3174 = vmatprep.subr.bf16.mxu0 %v2987_v1  ;;  %v3018_v9 = vpack.c.bf16 %v2938_v7, %v2938_v7  ;;  %v9321_v1 = vpack.c.bf16 %v7598_v0, %v7583_v26  ;;  %v9327_v32 = vld [vmem:[#allocation112_spill] sm:$0xff] }
 0x44f   : > { %v3024_v52 = vpack.c.bf16 %v2944_v57, %v2944_v57  ;;  %v3025_v10 = vpack.c.bf16 %v2945_v25, %v2945_v25  ;;  %v7961_v24 = vpop.permute.xlu1 %2514  ;;  %v7963_v62 = vpop.permute.xlu0 %2446 }
 0x450   : > { %v2518_v29 = vsel %vm572_vm0, %v7961_v24, %v7762_v5  ;;  %v2652_v5 = vsel %vm830_vm3, %v7727_v36, %v7725_v45  ;;  %v3053_v46 = vsel %vm1626_vm8, %v3018_v9, 0  ;;  %v2923_v9 = vsel %vm1426_vm7, %v7927_v60, %v7899_v61 }
 0x451   : > { %3175 = vmatpush1.bf16.msra.mxu0 %v9317_v17  ;;  %4802 = vmatprep.subr.msk.bf16.mxu1 %vm1626_vm8, %v3025_v10  ;;  %v3071_v31 = vsel %vm1626_vm8, %v3024_v52, 0  ;;  %v2549_v56 = vmul.f32 %v2518_v29, %v9319_v44  ;;  %v2671_v26 = vmul.f32 %v2652_v5, %v9322_v11  ;;  %v9325_v52 = vld [vmem:[#allocation111_spill] sm:$0xff]  ;;  %v2795_v17 = vsel %vm1168_vm5, %v7836_v13, %v7808_v38  ;;  %v9333_v5 = vld [vmem:[#allocation29_spill] sm:$0xff] }
 0x452   : > { %3176 = vmatprep.subr.bf16.mxu0 %v9318_v34  ;;  %3302 = vmatpush1.bf16.msra.mxu1 %v3071_v31  ;;  %v2607_v10 = vmul.f32 %v7718_v47, %v9325_v52  ;;  %v2859_v47 = vsel %vm1297_vm6, %v7879_v18, %v7862_v40  ;;  %v9330_v31 = vld [vmem:[#allocation113_spill] sm:$0xff]  ;;  %v9331_v40 = vld [vmem:[#allocation160_spill] sm:$0xff]  ;;  %v2860_v34 = vsel %vm1297_vm6, %v7612_v49, %v7879_v18  ;;  %v9334_v44 = vld [vmem:[#allocation155_spill] sm:$0xff] }
 0x453   : > { %v7983_v2 = vpop.permute.xlu1 %2638  ;;  %v7985_v33 = vpop.permute.xlu0 %2450  ;;  %v2687_v29 = vmul.f32 %v9331_v40, %v9330_v31  ;;  %v2924_v38 = vsel %vm1426_vm7, %v7630_v58, %v7927_v60  ;;  %v2796_v49 = vsel %vm1168_vm5, %v7580_v54, %v7836_v13  ;;  %v9337_v58 = vld [vmem:[#allocation114_spill] sm:$0xff]  ;;  %v4903_v54 = vld [vmem:[%s8737_s1 + $0xc8] ss:$0 sm:$0xff]  ;;  %v9345_v40 = vld [vmem:[#allocation37_spill] sm:$0xff] }
 0x454   : > { %v2454_v22 = vsel %vm443_vm1, %v7985_v33, %v7790_v6  ;;  %v2649_v6 = vsel %vm830_vm3, %v7746_v39, %v7983_v2  ;;  %v2731_v39 = vsel %vm1039_vm4, %v7760_v42, %v7638_v53  ;;  %v2732_v53 = vsel %vm1039_vm4, %v7560_v4, %v7760_v42 }
 0x455   : > { %v2485_v20 = vmul.f32 %v2454_v22, %v9320_v63  ;;  %3177 = vmatpush1.bf16.msra.mxu0 %v9321_v1  ;;  %4803 = vmatmul.mubr.msk.bf16.vlgmr.msra.gmra.mrb[40].mxu1 %vm1622_vm9, %v7432_v8  ;;  %v8023_v57 = vmul.f32 %v2649_v6, %v9323_v21  ;;  %v2751_v43 = vmul.f32 %v2731_v39, %v9327_v32  ;;  %v9335_v63 = vld [vmem:[#allocation34_spill] sm:$0xff]  ;;  %v4902_v1 = vld [vmem:[%s8737_s1 + $0xc0] ss:$0 sm:$0xff] }
 0x456   : > { %4796 = vmatprep.subr.msk.bf16.mxu0 %vm1626_vm8, %v3019_v23  ;;  %3407 = vmatprep.mubr.bf16.mxu1 %v9020_v19  ;;  %v9328_v4 = vpack.c.bf16 %v7691_v51, %v7685_v55  ;;  %v9332_v55 = vld [vmem:[#allocation26_spill] sm:$0xff]  ;;  %v2815_v61 = vmul.f32 %v2795_v17, %v9335_v63  ;;  %v2878_v60 = vmul.f32 %v2860_v34, %v9337_v58  ;;  %v9346_v34 = vld [vmem:[#allocation40_spill] sm:$0xff]  ;;  %v9348_v63 = vld [vmem:[#allocation91_spill] sm:$0xff] }
 0x457   : > { %v8008_v45 = vpop.permute.xlu1 %2642  ;;  %v8010_v36 = vpop.permute.xlu0 %2574  ;;  %v2965_v50 = vpack.c.bf16 %v2549_v56, %v2485_v20  ;;  %v2879_v51 = vmul.f32 %v2859_v47, %v9332_v55  ;;  %v2991_v18 = vpack.c.bf16 %v2751_v43, %v2687_v29  ;;  %v2686_v56 = vmul.f32 %v9334_v44, %v9333_v5  ;;  %v9341_v32 = vld [vmem:[#allocation86_spill] sm:$0xff]  ;;  %v9342_v47 = vld [vmem:[#allocation85_spill] sm:$0xff]  ;;  %v9347_v44 = vld [vmem:[#allocation92_spill] sm:$0xff] }
 0x458   : > { %v2585_v0 = vsel %vm701_vm2, %v7723_v28, %v8010_v36  ;;  %v9326_v28 = vpack.c.bf16 %v7694_v27, %v7688_v41  ;;  %v2975_v41 = vpack.c.bf16 %v2671_v26, %v2607_v10  ;;  %v9329_v27 = vld [vmem:[#allocation56_spill] sm:$0xff]  ;;  %v9336_v20 = vpack.c.bf16 %v7737_v15, %v7734_v30  ;;  %v9338_v30 = vld [vmem:[#allocation43_spill] sm:$0xff]  ;;  %v9339_v26 = vld [vmem:[#allocation25_spill] sm:$0xff] }
 0x459   : > { %v8026_v25 = vmul.f32 %v2585_v0, %v9324_v35  ;;  %3179 = vmatpush1.bf16.msra.mxu0 %v3053_v46  ;;  %3375 = vmatprep.subr.bf16.mxu1 %v2965_v50  ;;  %v2750_v42 = vmul.f32 %v2732_v53, %v9329_v27  ;;  %v2942_v6 = vmul.f32 %v4902_v1, %v2924_v38 }
 0x45a   : > { %3252 = vmatprep.subr.bf16.mxu0 %v9326_v28  ;;  %v2943_v13 = vmul.f32 %v4903_v54, %v2923_v9  ;;  %v2814_v15 = vmul.f32 %v2796_v49, %v9338_v30  ;;  %v2646_v0 = vsel %vm830_vm3, %v8008_v45, %v9339_v26  ;;  %v3007_v21 = vpack.c.bf16 %v2879_v51, %v2815_v61  ;;  %v9340_v28 = vld [vmem:[#allocation90_spill] sm:$0xff] }
 0x45b   : > { %v2978_v16 = vpack.c.bf16 %v8023_v57, %v8026_v25  ;;  %v8039_v7 = vpop.permute.xlu1 %2722  ;;  %v2579_v12 = vpop.permute.xlu0 %2578  ;;  %v2990_v11 = vpack.c.bf16 %v2750_v42, %v2686_v56  ;;  %v9343_v42 = vld [vmem:[#allocation22_spill] sm:$0xff]  ;;  %v4904_v57 = vld [vmem:[%s8737_s1 + $0xe0] ss:$0 sm:$0xff] }
 0x45c   : > { %4797 = vmatmul.mubr.msk.bf16.vlgmr.msra.gmra.mrb[36].mxu0 %vm1622_vm9, %v7432_v8  ;;  %v2582_v50 = vsel %vm701_vm2, %v2579_v12, %v7810_v59  ;;  %v3023_v27 = vpack.c.bf16 %v2943_v13, %v2943_v13  ;;  %v2457_v17 = vsel %vm443_vm1, %v9343_v42, %v7963_v62 }
 0x45d   : > { %3253 = vmatpush1.bf16.msra.mxu0 %v9328_v4  ;;  %3284 = vmatprep.mubr.bf16.mxu0 %v9020_v19  ;;  %v2613_v53 = vmul.f32 %v2582_v50, %v9340_v28  ;;  %v3022_v4 = vpack.c.bf16 %v2942_v6, %v2942_v6  ;;  %v9352_v6 = vld [vmem:[#allocation117_spill] sm:$0xff] }
 0x45e   : > { %3254 = vmatprep.subr.bf16.mxu0 %v2975_v41 }
 0x45f   : > { %v8072_v23 = vpop.permute.xlu1 %2850  ;;  %v8074_v22 = vpop.permute.xlu0 %2786 }
 0x461   : > { %3255 = vmatpush1.bf16.msra.mxu0 %v9336_v20 }
 0x462   : > { %3256 = vmatprep.subr.bf16.mxu0 %v2991_v18 }
 0x463   : > { %v2449_v46 = vpop.permute.xlu1 %2448  ;;  %v2513_v39 = vpop.permute.xlu0 %2512 }
 0x464   : > { %v2455_v35 = vsel %vm443_vm1, %v2449_v46, %v7985_v33  ;;  %v2456_v59 = vsel %vm443_vm1, %v7963_v62, %v2449_v46  ;;  %v2519_v52 = vsel %vm572_vm0, %v2513_v39, %v7961_v24  ;;  %v2520_v10 = vsel %vm572_vm0, %v7938_v48, %v2513_v39  ;;  %v9344_v24 = vld [vmem:[#allocation89_spill] sm:$0xff] }
 0x465   : > { %v2484_v43 = vmul.f32 %v2455_v35, %v9341_v32  ;;  %v2548_v41 = vmul.f32 %v2519_v52, %v9342_v47  ;;  %3257 = vmatpush1.bf16.msra.mxu0 %v2990_v11  ;;  %v3006_v33 = vpack.c.bf16 %v2878_v60, %v2814_v15  ;;  %v2677_v31 = vmul.f32 %v2646_v0, %v9344_v24  ;;  %v9351_v60 = vld [vmem:[#allocation118_spill] sm:$0xff]  ;;  %v9353_v15 = vld [vmem:[#allocation115_spill] sm:$0xff]  ;;  %v9355_v52 = vld [vmem:[#allocation93_spill] sm:$0xff] }
 0x466   : > { %3258 = vmatprep.subr.bf16.mxu0 %v3007_v21  ;;  %v2483_v29 = vmul.f32 %v2456_v59, %v9345_v40  ;;  %v2547_v55 = vmul.f32 %v2520_v10, %v9346_v34  ;;  %v3065_v11 = vsel %vm1626_vm8, %v3022_v4, 0  ;;  %v9354_v35 = vld [vmem:[#allocation23_spill] sm:$0xff]  ;;  %v9358_v47 = vld [vmem:[#allocation21_spill] sm:$0xff]  ;;  %vm4625_vm1 = vcmask 1046534  }
 0x467   : > { %v2964_v51 = vpack.c.bf16 %v2548_v41, %v2484_v43  ;;  %v2577_v9 = vpop.permute.xlu1 %2576  ;;  %v2641_v38 = vpop.permute.xlu0 %2640  ;;  %v2981_v20 = vpack.c.bf16 %v2677_v31, %v2613_v53  ;;  %v9356_v53 = vld [vmem:[#allocation6_spill] sm:$0xff]  ;;  %v9362_v24 = vld [vmem:[#allocation161_spill] sm:$0xff] }
 0x468   : > { %v2583_v49 = vsel %vm701_vm2, %v2577_v9, %v2579_v12  ;;  %v2584_v18 = vsel %vm701_vm2, %v8010_v36, %v2577_v9  ;;  %v2647_v62 = vsel %vm830_vm3, %v2641_v38, %v8008_v45  ;;  %v2648_v5 = vsel %vm830_vm3, %v7983_v2, %v2641_v38  ;;  %v9349_v12 = vld [vmem:[#allocation24_spill] sm:$0xff]  ;;  %v9357_v43 = vld [vmem:[#allocation98_spill] sm:$0xff]  ;;  %v9363_v40 = vld [vmem:[#allocation53_spill] sm:$0xff] }
 0x469   : > { %v2612_v56 = vmul.f32 %v2583_v49, %v9347_v44  ;;  %v2676_v61 = vmul.f32 %v2647_v62, %v9348_v63  ;;  %3259 = vmatpush1.bf16.msra.mxu0 %v3006_v33  ;;  %v2521_v58 = vsel %vm572_vm0, %v9349_v12, %v7938_v48  ;;  %3376 = vmatpush1.bf16.msra.mxu1 %v2964_v51  ;;  %v9350_v36 = vld [vmem:[#allocation116_spill] sm:$0xff]  ;;  %v9359_v33 = vld [vmem:[#allocation99_spill] sm:$0xff]  ;;  %v9367_v38 = vld [vmem:[#allocation50_spill] sm:$0xff]  ;;  %vm4623_vm0 = vcmask 1045509  }
 0x46a   : > { %4800 = vmatprep.subr.msk.bf16.mxu0 %vm1626_vm8, %v3023_v27  ;;  %v2482_v45 = vmul.f32 %v2457_v17, %v9350_v36  ;;  %v2611_v1 = vmul.f32 %v2584_v18, %v9351_v60  ;;  %v2675_v2 = vmul.f32 %v2648_v5, %v9352_v6  ;;  %3377 = vmatprep.subr.bf16.mxu1 %v2981_v20  ;;  %v9360_v27 = vld [vmem:[#allocation101_spill] sm:$0xff]  ;;  %v9361_v17 = vld [vmem:[#allocation100_spill] sm:$0xff]  ;;  %vm4627_vm2 = vcmask 1047559  }
 0x46b   : > { %v2980_v54 = vpack.c.bf16 %v2676_v61, %v2612_v56  ;;  %v2785_v13 = vpop.permute.xlu1 %2784  ;;  %v2721_v50 = vpop.permute.xlu0 %2720  ;;  %v2963_v30 = vpack.c.bf16 %v2547_v55, %v2483_v29  ;;  %v2546_v26 = vmul.f32 %v2521_v58, %v9353_v15  ;;  %v2692_v41 = vmul.f32 %v9358_v47, %v9357_v43  ;;  %v9364_v29 = vld [vmem:[#allocation11_spill] sm:$0xff]  ;;  %v9366_v55 = vld [vmem:[#allocation20_spill] sm:$0xff]  ;;  %v9368_v61 = vld [vmem:[#allocation30_spill] sm:$0xff] }
 0x46c   : > { %v2727_v48 = vsel %vm1039_vm4, %v2721_v50, %v8039_v7  ;;  %v2979_v21 = vpack.c.bf16 %v2675_v2, %v2611_v1  ;;  %v2728_v59 = vsel %vm1039_vm4, %v9354_v35, %v2721_v50  ;;  %v2693_v31 = vmul.f32 %v9362_v24, %v9361_v17  ;;  %v9372_v6 = vld [vmem:[#allocation156_spill] sm:$0xff] }
 0x46d   : > { %3261 = vmatpush1.bf16.msra.mxu0 %v3065_v11  ;;  %3378 = vmatpush1.bf16.msra.mxu1 %v2980_v54  ;;  %v2962_v0 = vpack.c.bf16 %v2546_v26, %v2482_v45  ;;  %v2755_v10 = vmul.f32 %v2727_v48, %v9355_v52  ;;  %v2690_v34 = vmul.f32 %v9364_v29, %v9363_v40  ;;  %v9370_v45 = vld [vmem:[#allocation120_spill] sm:$0xff]  ;;  %v9374_v11 = vld [vmem:[#allocation121_spill] sm:$0xff] }
 0x46e   : > { %3334 = vmatprep.subr.bf16.mxu0 %v2963_v30  ;;  %v2792_v9 = vsel %vm1168_vm5, %v7834_v3, %v2785_v13  ;;  %v2754_v49 = vmul.f32 %v2728_v59, %v9367_v38  ;;  %v9369_v3 = vld [vmem:[#allocation61_spill] sm:$0xff]  ;;  %v4905_v59 = vld [vmem:[%s8737_s1 + $0xf8] ss:$0 sm:$0xff]  ;;  %v4906_v17 = vld [vmem:[%s8737_s1 + $0xe8] ss:$0 sm:$0xff] }
 0x46f   : > { %v2789_v46 = vpop.permute.xlu1 %2788  ;;  %v2725_v39 = vpop.permute.xlu0 %2724 }
 0x470   : > { %v2726_v28 = vsel %vm1039_vm4, %v8039_v7, %v2725_v39  ;;  %v2741_v32 = vsel %vm1039_vm4, %v2725_v39, %v9356_v53  ;;  %4801 = vmatmul.mubr.msk.bf16.vlgmr.msra.gmra.mrb[40].mxu0 %vm1622_vm9, %v7432_v8  ;;  %v2791_v7 = vsel %vm1168_vm5, %v2785_v13, %v8074_v22  ;;  %v9365_v8 = vld [vmem:[#allocation119_spill] sm:$0xff]  ;;  %v2790_v56 = vsel %vm1168_vm5, %v8074_v22, %v2789_v46  ;;  %v9379_v53 = vld [vmem:[#allocation104_spill] sm:$0xff] }
 0x471   : > { %v2756_v4 = vmul.f32 %v2726_v28, %v9359_v33  ;;  %v2757_v42 = vmul.f32 %v2741_v32, %v9360_v27  ;;  %3335 = vmatpush1.bf16.msra.mxu0 %v2962_v0  ;;  %v2691_v51 = vmul.f32 %v9366_v55, %v9365_v8  ;;  %3366 = vmatprep.mubr.bf16.mxu0 %v9020_v19  ;;  %v9371_v22 = vld [vmem:[#allocation71_spill] sm:$0xff] }
 0x472   : > { %3336 = vmatprep.subr.bf16.mxu0 %v2979_v21  ;;  %v2819_v58 = vmul.f32 %v2791_v7, %v9369_v3  ;;  %v2818_v1 = vmul.f32 %v2792_v9, %v9371_v22  ;;  %v2805_v2 = vsel %vm1168_vm5, %v2789_v46, %v9372_v6  ;;  %v2994_v54 = vpack.c.bf16 %v2754_v49, %v2690_v34  ;;  %v9373_v13 = vld [vmem:[#allocation107_spill] sm:$0xff]  ;;  %v9376_v46 = vld [vmem:[#allocation12_spill] sm:$0xff]  ;;  %v9377_v21 = vld [vmem:[#allocation105_spill] sm:$0xff] }
 0x473   : > { %v2996_v18 = vpack.c.bf16 %v2756_v4, %v2692_v41  ;;  %v2913_v62 = vpop.permute.xlu1 %2912  ;;  %v2849_v5 = vpop.permute.xlu0 %2848  ;;  %v2997_v44 = vpack.c.bf16 %v2757_v42, %v2693_v31  ;;  %v2995_v12 = vpack.c.bf16 %v2755_v10, %v2691_v51  ;;  %v2820_v50 = vmul.f32 %v2790_v56, %v9373_v13  ;;  %v9378_v10 = vld [vmem:[#allocation106_spill] sm:$0xff]  ;;  %v4907_v31 = vld [vmem:[%s8737_s1 + $0xf0] ss:$0 sm:$0xff]  ;;  %v4908_v55 = vld [vmem:[%s8742_s6] sm:$0xf] }
 0x474   : > { %v2855_v63 = vsel %vm1297_vm6, %v2849_v5, %v8072_v23  ;;  %v2856_v20 = vsel %vm1297_vm6, %v9368_v61, %v2849_v5  ;;  %v2920_v36 = vsel %vm1426_vm7, %v7925_v37, %v2913_v62  ;;  %v2821_v35 = vmul.f32 %v2805_v2, %v9377_v21 }
 0x475   : > { %v2883_v60 = vmul.f32 %v2855_v63, %v9370_v45  ;;  %3337 = vmatpush1.bf16.msra.mxu0 %v2978_v16  ;;  %3379 = vmatprep.subr.bf16.mxu1 %v2997_v44  ;;  %v2882_v37 = vmul.f32 %v2856_v20, %v9374_v11  ;;  %v2946_v25 = vmul.f32 %v4904_v57, %v2920_v36  ;;  %v9375_v16 = vld [vmem:[#allocation157_spill] sm:$0xff] }
 0x476   : > { %3338 = vmatprep.subr.bf16.mxu0 %v2995_v12  ;;  %3380 = vmatpush1.bf16.msra.mxu1 %v2996_v18  ;;  %v8250_v12 = vld [vmem:[%s8744_s8] sm:$0xff]  }
 0x477   : > { %v2917_v30 = vpop.permute.xlu1 %2916  ;;  %v2853_v15 = vpop.permute.xlu0 %2852  ;;  %v3011_v26 = vpack.c.bf16 %v2883_v60, %v2819_v58  ;;  %v3010_v43 = vpack.c.bf16 %v2882_v37, %v2818_v1  ;;  %v3026_v33 = vpack.c.bf16 %v2946_v25, %v2946_v25 }
 0x478   : > { %v2933_v48 = vsel %vm1426_vm7, %v2917_v30, %v9375_v16  ;;  %v2854_v0 = vsel %vm1297_vm6, %v8072_v23, %v2853_v15  ;;  %v2869_v39 = vsel %vm1297_vm6, %v2853_v15, %v9376_v46 }
 0x479   : > { %v2949_v52 = vmul.f32 %v4905_v59, %v2933_v48  ;;  %v2884_v28 = vmul.f32 %v2854_v0, %v9378_v10  ;;  %v2885_v32 = vmul.f32 %v2869_v39, %v9379_v53  ;;  %3339 = vmatpush1.bf16.msra.mxu0 %v2994_v54  ;;  %v3077_v34 = vsel %vm1626_vm8, %v3026_v33, 0 }
 0x47a   : > { %3340 = vmatprep.subr.bf16.mxu0 %v3011_v26 }
 0x47b   : > { %v3012_v47 = vpack.c.bf16 %v2884_v28, %v2820_v50  ;;  %v2915_v23 = vpop.permute.xlu0 %2914  ;;  %v3013_v41 = vpack.c.bf16 %v2885_v32, %v2821_v35  ;;  %v3029_v42 = vpack.c.bf16 %v2949_v52, %v2949_v52 }
 0x47c   : > { %v2918_v4 = vsel %vm1426_vm7, %v2915_v23, %v2917_v30  ;;  %v2919_v27 = vsel %vm1426_vm7, %v2913_v62, %v2915_v23 }
 0x47d   : > { %v2947_v24 = vmul.f32 %v4906_v17, %v2919_v27  ;;  %v2948_v7 = vmul.f32 %v4907_v31, %v2918_v4  ;;  %3341 = vmatpush1.bf16.msra.mxu0 %v3010_v43  ;;  %3381 = vmatprep.subr.bf16.mxu1 %v3013_v41 }
 0x47e   : > { %3382 = vmatpush1.bf16.msra.mxu1 %v3012_v47 }
 0x47f   : > { %v3027_v40 = vpack.c.bf16 %v2947_v24, %v2947_v24  ;;  %v3028_v29 = vpack.c.bf16 %v2948_v7, %v2948_v7  ;;  %4806 = vmatprep.subr.msk.bf16.mxu1 %vm1626_vm8, %v3029_v42 }
 0x481   : > { %4804 = vmatprep.subr.msk.bf16.mxu0 %vm1626_vm8, %v3027_v40  ;;  %v3083_v8 = vsel %vm1626_vm8, %v3028_v29, 0 }
 0x482   : > { %3343 = vmatpush1.bf16.msra.mxu0 %v3077_v34  ;;  %3384 = vmatpush1.bf16.msra.mxu1 %v3083_v8 }
 0x485   : > { %4805 = vmatmul.mubr.msk.bf16.vlgmr.msra.gmra.mrb[44].mxu0 %vm1622_vm9, %v4908_v55  ;;  %4807 = vmatmul.mubr.msk.bf16.vlgmr.msra.gmra.mrb[44].mxu1 %vm1622_vm9, %v4908_v55 }
 0x486   : > { %3594 = vmatprep.mubr.bf16.mxu1 %v9020_v19  ;;  %3551 = vmatprep.mubr.bf16.mxu0 %v9020_v19 }
 0x48c   : > { %v8241_v51 = vpop.permute.xlu0 %3034 }
 0x4a5   : > { %v3163_v9 = vpop.f32.mrb[32].mxu1 }
 0x4a6   : > { %v3164_v38 = vadd.f32 %v3163_v9, %v8241_v51  ;;  %v3165_v49 = vpop.f32.mrb[33].mxu1 }
 0x4a7   : > { %v3166_v18 = vadd.f32 %v3165_v49, %v8241_v51  ;;  %v3167_v62 = vpop.f32.mrb[34].mxu1 }
 0x4a8   : > { %v3418_v5 = vmax.f32 %v3164_v38, 0.0  ;;  %v3168_v44 = vpop.f32.mrb[35].mxu1 }
 0x4a9   : > { %v3419_v56 = vmax.f32 %v3166_v18, 0.0 }
 0x4aa   : > { %v3436_v63 = vpack.c.bf16 %v3418_v5, %v3418_v5 }
 0x4ab   : > { %v3437_v61 = vpack.c.bf16 %v3419_v56, %v3419_v56 }
 0x4ac   : > { %v3478_v20 = vsel %vm1626_vm8, %v3436_v63, 0 }
 0x4ad   : > { %4811 = vmatprep.subr.msk.bf16.mxu1 %vm1626_vm8, %v3437_v61 }
 0x4ae   : > { %3563 = vmatpush1.bf16.msra.mxu1 %v3478_v20 }
 0x4b1   : > { %4812 = vmatmul.mubr.msk.bf16.vlgmr.msra.gmra.mrb[48].mxu1 %vm3467_vm11, %v8250_v12 }
 0x4b2   : > { %3680 = vmatprep.mubr.bf16.mxu1 %v9020_v19 }
 0x4e1   : > { %v3245_v3 = vpop.f32.mrb[36].mxu1 }
 0x4e2   : > { %v3246_v58 = vadd.f32 %v3245_v3, %v8241_v51  ;;  %v3247_v36 = vpop.f32.mrb[37].mxu1 }
 0x4e3   : > { %v3248_v45 = vadd.f32 %v3247_v36, %v8241_v51  ;;  %v3249_v60 = vpop.f32.mrb[38].mxu1 }
 0x4e4   : > { %v3422_v22 = vmax.f32 %v3246_v58, 0.0  ;;  %v3250_v1 = vpop.f32.mrb[39].mxu1 }
 0x4e5   : > { %v3423_v6 = vmax.f32 %v3248_v45, 0.0 }
 0x4e6   : > { %v3440_v2 = vpack.c.bf16 %v3422_v22, %v3422_v22 }
 0x4e7   : > { %v3441_v54 = vpack.c.bf16 %v3423_v6, %v3423_v6 }
 0x4e8   : > { %v3490_v13 = vsel %vm1626_vm8, %v3440_v2, 0 }
 0x4e9   : > { %4815 = vmatprep.subr.msk.bf16.mxu1 %vm1626_vm8, %v3441_v54 }
 0x4ea   : > { %3649 = vmatpush1.bf16.msra.mxu1 %v3490_v13 }
 0x4ed   : > { %4816 = vmatmul.mubr.msk.bf16.vlgmr.msra.gmra.mrb[52].mxu1 %vm3467_vm11, %v8250_v12 }
 0x4ee   : > { %3766 = vmatprep.mubr.bf16.mxu1 %v9020_v19 }
 0x51b   : > { %v3122_v50 = vpop.f32.mrb[32].mxu0 }
 0x51c   : > { %v3123_v11 = vadd.f32 %v3122_v50, %v8241_v51  ;;  %v3124_v37 = vpop.f32.mrb[33].mxu0 }
 0x51d   : > { %v3125_v30 = vadd.f32 %v3124_v37, %v8241_v51  ;;  %v3126_v15 = vpop.f32.mrb[34].mxu0 }
 0x51e   : > { %v3416_v26 = vmax.f32 %v3123_v11, 0.0  ;;  %v3127_v57 = vpop.f32.mrb[35].mxu0 }
 0x51f   : > { %v3417_v25 = vmax.f32 %v3125_v30, 0.0 }
 0x520   : > { %v3434_v16 = vpack.c.bf16 %v3416_v26, %v3416_v26 }
 0x521   : > { %v3435_v48 = vpack.c.bf16 %v3417_v25, %v3417_v25 }
 0x522   : > { %v3472_v0 = vsel %vm1626_vm8, %v3434_v16, 0  ;;  %v8302_v16 = vpop.permute.xlu1 %3454 }
 0x523   : > { %4809 = vmatprep.subr.msk.bf16.mxu0 %vm1626_vm8, %v3435_v48 }
 0x524   : > { %3520 = vmatpush1.bf16.msra.mxu0 %v3472_v0  ;;  %v8305_v0 = vpop.permute.xlu0 %3459 }
 0x527   : > { %4810 = vmatmul.mubr.msk.bf16.vlgmr.msra.gmra.mrb[48].mxu0 %vm3467_vm11, %v8250_v12 }
 0x528   : > { %v3327_v46 = vpop.f32.mrb[40].mxu1  ;;  %3637 = vmatprep.mubr.bf16.mxu0 %v9020_v19 }
 0x529   : > { %v3328_v39 = vadd.f32 %v3327_v46, %v8241_v51  ;;  %v3329_v21 = vpop.f32.mrb[41].mxu1 }
 0x52a   : > { %v3330_v35 = vadd.f32 %v3329_v21, %v8241_v51  ;;  %v3331_v59 = vpop.f32.mrb[42].mxu1 }
 0x52b   : > { %v3426_v52 = vmax.f32 %v3328_v39, 0.0  ;;  %v3332_v10 = vpop.f32.mrb[43].mxu1  ;;  %v9380_v59 = vld [vmem:[#allocation123_spill] sm:$0xff] }
 0x52c   : > { %v3427_v28 = vmax.f32 %v3330_v35, 0.0 }
 0x52d   : > { %v3444_v53 = vpack.c.bf16 %v3426_v52, %v3426_v52  ;;  %v9381_v52 = vmax.f32 %v9380_v59, 0.0 }
 0x52e   : > { %v3445_v32 = vpack.c.bf16 %v3427_v28, %v3427_v28 }
 0x52f   : > { %v3204_v43 = vpop.f32.mrb[36].mxu0  ;;  %v3502_v47 = vsel %vm1626_vm8, %v3444_v53, 0  ;;  %v9382_v53 = vld [vmem:[#allocation122_spill] sm:$0xff] }
 0x530   : > { %v3205_v23 = vadd.f32 %v3204_v43, %v8241_v51  ;;  %v3206_v41 = vpop.f32.mrb[37].mxu0  ;;  %4819 = vmatprep.subr.msk.bf16.mxu1 %vm1626_vm8, %v3445_v32  ;;  %v9383_v32 = vmax.f32 %v9382_v53, 0.0 }
 0x531   : > { %v3207_v33 = vadd.f32 %v3206_v41, %v8241_v51  ;;  %v3208_v4 = vpop.f32.mrb[38].mxu0  ;;  %3735 = vmatpush1.bf16.msra.mxu1 %v3502_v47  ;;  %v9384_v41 = vld [vmem:[#allocation68_spill] sm:$0xff] }
 0x532   : > { %v3420_v27 = vmax.f32 %v3205_v23, 0.0  ;;  %v3209_v42 = vpop.f32.mrb[39].mxu0 }
 0x533   : > { %v3421_v17 = vmax.f32 %v3207_v33, 0.0  ;;  %v9385_v33 = vmax.f32 %v9384_v41, 0.0 }
 0x534   : > { %v3438_v24 = vpack.c.bf16 %v3420_v27, %v3420_v27  ;;  %4820 = vmatmul.mubr.msk.bf16.vlgmr.msra.gmra.mrb[56].mxu1 %vm3467_vm11, %v8250_v12  ;;  %v9386_v27 = vld [vmem:[#allocation124_spill] sm:$0xff] }
 0x535   : > { %v3439_v31 = vpack.c.bf16 %v3421_v17, %v3421_v17  ;;  %3852 = vmatprep.mubr.bf16.mxu1 %v9020_v19  ;;  %v9387_v42 = vmax.f32 %v9386_v27, 0.0 }
 0x536   : > { %v3484_v7 = vsel %vm1626_vm8, %v3438_v24, 0 }
 0x537   : > { %4813 = vmatprep.subr.msk.bf16.mxu0 %vm1626_vm8, %v3439_v31 }
 0x538   : > { %3606 = vmatpush1.bf16.msra.mxu0 %v3484_v7  ;;  %v9388_v7 = vld [vmem:[#allocation80_spill] sm:$0xff] }
 0x53b   : > { %4814 = vmatmul.mubr.msk.bf16.vlgmr.msra.gmra.mrb[52].mxu0 %vm3467_vm11, %v8250_v12 }
 0x53c   : > { %3723 = vmatprep.mubr.bf16.mxu0 %v9020_v19 }
 0x543   : > { %v3286_v40 = vpop.f32.mrb[40].mxu0 }
 0x544   : > { %v3287_v29 = vadd.f32 %v3286_v40, %v8241_v51  ;;  %v3288_v34 = vpop.f32.mrb[41].mxu0  ;;  %v9389_v40 = vmax.f32 %v9388_v7, 0.0 }
 0x545   : > { %v3289_v8 = vadd.f32 %v3288_v34, %v8241_v51  ;;  %v3290_v55 = vpop.f32.mrb[42].mxu0  ;;  %v9390_v34 = vld [vmem:[#allocation125_spill] sm:$0xff] }
 0x546   : > { %v3424_v9 = vmax.f32 %v3287_v29, 0.0  ;;  %v3291_v38 = vpop.f32.mrb[43].mxu0 }
 0x547   : > { %v3425_v49 = vmax.f32 %v3289_v8, 0.0  ;;  %v9391_v8 = vmax.f32 %v9390_v34, 0.0 }
 0x548   : > { %v3442_v18 = vpack.c.bf16 %v3424_v9, %v3424_v9 }
 0x549   : > { %v3443_v62 = vpack.c.bf16 %v3425_v49, %v3425_v49 }
 0x54a   : > { %v3496_v5 = vsel %vm1626_vm8, %v3442_v18, 0  ;;  %v9392_v18 = vld [vmem:[#allocation126_spill] sm:$0xff] }
 0x54b   : > { %4817 = vmatprep.subr.msk.bf16.mxu0 %vm1626_vm8, %v3443_v62  ;;  %v9393_v62 = vmax.f32 %v9392_v18, 0.0 }
 0x54c   : > { %3692 = vmatpush1.bf16.msra.mxu0 %v3496_v5 }
 0x54f   : > { %4818 = vmatmul.mubr.msk.bf16.vlgmr.msra.gmra.mrb[56].mxu0 %vm3467_vm11, %v8250_v12 }
 0x550   : > { %3809 = vmatprep.mubr.bf16.mxu0 %v9020_v19 }
 0x558   : > { %v3368_v44 = vpop.f32.mrb[44].mxu0  ;;  %v3409_v56 = vpop.f32.mrb[44].mxu1 }
 0x559   : > { %v3369_v63 = vadd.f32 %v3368_v44, %v8241_v51  ;;  %v3410_v61 = vadd.f32 %v3409_v56, %v8241_v51  ;;  %v3370_v20 = vpop.f32.mrb[45].mxu0  ;;  %v3411_v3 = vpop.f32.mrb[45].mxu1 }
 0x55a   : > { %v3371_v58 = vadd.f32 %v3370_v20, %v8241_v51  ;;  %v3412_v36 = vadd.f32 %v3411_v3, %v8241_v51  ;;  %v3372_v45 = vpop.f32.mrb[46].mxu0  ;;  %v3413_v60 = vpop.f32.mrb[46].mxu1 }
 0x55b   : > { %v3428_v22 = vmax.f32 %v3369_v63, 0.0  ;;  %v3430_v1 = vmax.f32 %v3410_v61, 0.0  ;;  %v3373_v6 = vpop.f32.mrb[47].mxu0  ;;  %v3414_v2 = vpop.f32.mrb[47].mxu1  ;;  %v9394_v63 = vld [vmem:[#allocation127_spill] sm:$0xff] }
 0x55c   : > { %v3429_v54 = vmax.f32 %v3371_v58, 0.0  ;;  %v3431_v19 = vmax.f32 %v3412_v36, 0.0  ;;  %v9395_v61 = vmax.f32 %v9394_v63, 0.0 }
 0x55d   : > { %v3446_v13 = vpack.c.bf16 %v3428_v22, %v3428_v22  ;;  %v3448_v50 = vpack.c.bf16 %v3430_v1, %v3430_v1 }
 0x55e   : > { %v3447_v11 = vpack.c.bf16 %v3429_v54, %v3429_v54  ;;  %v3449_v37 = vpack.c.bf16 %v3431_v19, %v3431_v19 }
 0x55f   : > { %v3508_v30 = vsel %vm1626_vm8, %v3446_v13, 0  ;;  %v3514_v15 = vsel %vm1626_vm8, %v3448_v50, 0 }
 0x560   : > { %4821 = vmatprep.subr.msk.bf16.mxu0 %vm1626_vm8, %v3447_v11  ;;  %4823 = vmatprep.subr.msk.bf16.mxu1 %vm1626_vm8, %v3449_v37 }
 0x561   : > { %3778 = vmatpush1.bf16.msra.mxu0 %v3508_v30  ;;  %3821 = vmatpush1.bf16.msra.mxu1 %v3514_v15  ;;  %v4982_v15 = vmov 1983009808  }
 0x564   : > { %4822 = vmatmul.mubr.msk.bf16.vlgmr.msra.gmra.mrb[60].mxu0 %vm3467_vm11, %v8250_v12  ;;  %4824 = vmatmul.mubr.msk.bf16.vlgmr.msra.gmra.mrb[60].mxu1 %vm3467_vm11, %v8250_v12 }
 0x584   : > { %v3596_v51 = vpop.f32.mrb[48].mxu1 }
 0x585   : > { %v3598_v26 = vpop.f32.mrb[49].mxu1  ;;  %v3597_v48 = vadd.f32 %v3596_v51, %v8302_v16  ;;  %v3930_v51 = vunpack.c.l.s4 %v4982_v15 }
 0x586   : > { %v3600_v57 = vpop.f32.mrb[50].mxu1  ;;  %v3599_v46 = vadd.f32 %v3598_v26, %v8302_v16 }
 0x587   : > { %v3602_v25 = vpop.f32.mrb[51].mxu1  ;;  %v3601_v39 = vadd.f32 %v3600_v57, %v8305_v0  ;;  %v3865_v12 = vadd.f32 %v3597_v48, %v9381_v52  ;;  %v3931_v57 = vunpack.c.0.s8 %v3930_v51 }
 0x588   : > { %v3603_v21 = vadd.f32 %v3602_v25, %v8305_v0  ;;  %v3866_v43 = vadd.f32 %v3599_v46, %v9383_v32 }
 0x589   : > { %v3881_v4 = vadd.f32 %v3601_v39, %v9385_v33  ;;  %v3897_v38 = vmax.f32 %v3865_v12, 0.0  ;;  %v9399_v33 = vld [vmem:[#allocation132_spill] sm:$0xff] }
 0x58a   : > { %v3882_v29 = vadd.f32 %v3603_v21, %v9389_v40  ;;  %v3898_v44 = vmax.f32 %v3866_v43, 0.0  ;;  %v9396_v21 = vld [vmem:[#allocation5_spill] sm:$0xff] }
 0x58b   : > { %v3913_v3 = vmax.f32 %v3881_v4, 0.0  ;;  %v9400_v4 = vmax.f32 %v9399_v33, 0.0 }
 0x58c   : > { %v3914_v60 = vmax.f32 %v3882_v29, 0.0  ;;  %v9403_v29 = vld [vmem:[#allocation141_spill] sm:$0xff] }
 0x58d   : > { %v9404_v34 = vmax.f32 %v9403_v29, 0.0 }
 0x5c0   : > { %v3682_v35 = vpop.f32.mrb[52].mxu1 }
 0x5c1   : > { %v3683_v10 = vadd.f32 %v3682_v35, %v8302_v16  ;;  %v3684_v28 = vpop.f32.mrb[53].mxu1  ;;  %v8344_v35 = vsub.s32 %v3931_v57, %v9396_v21 }
 0x5c2   : > { %v3685_v47 = vadd.f32 %v3684_v28, %v8302_v16  ;;  %v3686_v23 = vpop.f32.mrb[54].mxu1  ;;  %v9397_v28 = vld [vmem:[#allocation133_spill] sm:$0xff] }
 0x5c3   : > { %v3869_v17 = vadd.f32 %v3683_v10, %v9387_v42  ;;  %v3687_v24 = vadd.f32 %v3686_v23, %v8305_v0  ;;  %v3688_v31 = vpop.f32.mrb[55].mxu1  ;;  %v9398_v53 = vmax.f32 %v9397_v28, 0.0 }
 0x5c4   : > { %v3870_v55 = vadd.f32 %v3685_v47, %v9391_v8  ;;  %v3689_v9 = vadd.f32 %v3688_v31, %v8305_v0  ;;  %v9401_v31 = vld [vmem:[#allocation134_spill] sm:$0xff] }
 0x5c5   : > { %v3901_v49 = vmax.f32 %v3869_v17, 0.0  ;;  %v3885_v5 = vadd.f32 %v3687_v24, %v9393_v62  ;;  %v9402_v7 = vmax.f32 %v9401_v31, 0.0 }
 0x5c6   : > { %v3902_v56 = vmax.f32 %v3870_v55, 0.0  ;;  %v3886_v20 = vadd.f32 %v3689_v9, %v9395_v61 }
 0x5c7   : > { %v3943_v58 = vcombine.low %v3897_v38, %v3901_v49  ;;  %v3944_v36 = vcombine.high %v3897_v38, %v3901_v49  ;;  %v3917_v45 = vmax.f32 %v3885_v5, 0.0  ;;  %v9405_v49 = vld [vmem:[#allocation135_spill] sm:$0xff]  ;;  %v9407_v5 = vld [vmem:[#allocation140_spill] sm:$0xff] }
 0x5c8   : > { %v4215_v22 = vcombine.low %v3898_v44, %v3902_v56  ;;  %v4216_v1 = vcombine.high %v3898_v44, %v3902_v56  ;;  %v3918_v6 = vmax.f32 %v3886_v20, 0.0  ;;  %v9406_v18 = vmax.f32 %v9405_v49, 0.0 }
 0x5c9   : > { %v4079_v2 = vcombine.low %v3913_v3, %v3917_v45  ;;  %v4080_v54 = vcombine.high %v3913_v3, %v3917_v45  ;;  %v8353_v23 = vrot.slane %v3943_v58, %v8344_v35  ;;  %v8356_v41 = vrot.slane %v3944_v36, %v8344_v35  ;;  %v9409_v58 = vld [vmem:[#allocation142_spill] sm:$0xff] }
 0x5ca   : > { %v8330_v19 = vcombine.low %v3914_v60, %v3918_v6  ;;  %v8332_v13 = vcombine.high %v3914_v60, %v3918_v6  ;;  %v8362_v24 = vrot.slane %v4215_v22, %v8344_v35  ;;  %v8370_v38 = vrot.slane %v4216_v1, %v8344_v35  ;;  %v9411_v6 = vld [vmem:[#allocation143_spill] sm:$0xff] }
 0x5cb   : > { %v9408_v44 = vmax.f32 %v9407_v5, 0.0  ;;  %v8378_v61 = vrot.slane %v4079_v2, %v8344_v35  ;;  %v9410_v36 = vmax.f32 %v9409_v58, 0.0  ;;  %v8383_v60 = vrot.slane %v4080_v54, %v8344_v35 }
 0x5fa   : > { %v3553_v50 = vpop.f32.mrb[48].mxu0 }
 0x5fb   : > { %v3555_v11 = vpop.f32.mrb[49].mxu0  ;;  %v3554_v39 = vadd.f32 %v3553_v50, %v8302_v16  ;;  %v9412_v50 = vmax.f32 %v9411_v6, 0.0  ;;  %v9415_v6 = vld [vmem:[#allocation129_spill] sm:$0xff] }
 0x5fc   : > { %v3557_v37 = vpop.f32.mrb[50].mxu0  ;;  %v3556_v59 = vadd.f32 %v3555_v11, %v8302_v16 }
 0x5fd   : > { %v3559_v30 = vpop.f32.mrb[51].mxu0  ;;  %v3558_v52 = vadd.f32 %v3557_v37, %v8305_v0  ;;  %v3863_v32 = vadd.f32 %v3554_v39, %v9398_v53 }
 0x5fe   : > { %v3560_v12 = vadd.f32 %v3559_v30, %v8305_v0  ;;  %v3864_v27 = vadd.f32 %v3556_v59, %v9400_v4 }
 0x5ff   : > { %v3879_v40 = vadd.f32 %v3558_v52, %v9402_v7  ;;  %v3895_v20 = vmax.f32 %v3863_v32, 0.0 }
 0x600   : > { %v3880_v62 = vadd.f32 %v3560_v12, %v9406_v18  ;;  %v3896_v22 = vmax.f32 %v3864_v27, 0.0 }
 0x601   : > { %v3911_v37 = vmax.f32 %v3879_v40, 0.0 }
 0x602   : > { %v3912_v57 = vmax.f32 %v3880_v62, 0.0 }
 0x607   : > { %v8334_v26 = vpop.f32.mrb[56].mxu1 }
 0x608   : > { %v8336_v25 = vpop.f32.mrb[57].mxu1 }
 0x609   : > { %v8338_v48 = vpop.f32.mrb[58].mxu1 }
 0x60a   : > { %v8340_v46 = vpop.f32.mrb[59].mxu1  ;;  %v3773_v58 = vadd.f32 %v8338_v48, %v8305_v0  ;;  %v9419_v48 = vld [vmem:[#allocation131_spill] sm:$0xff] }
 0x60e   : > { %v3639_v10 = vpop.f32.mrb[52].mxu0 }
 0x60f   : > { %v3640_v43 = vadd.f32 %v3639_v10, %v8302_v16  ;;  %v3641_v47 = vpop.f32.mrb[53].mxu0 }
 0x610   : > { %v3642_v42 = vadd.f32 %v3641_v47, %v8302_v16  ;;  %v3643_v17 = vpop.f32.mrb[54].mxu0 }
 0x611   : > { %v3867_v8 = vadd.f32 %v3640_v43, %v9404_v34  ;;  %v3644_v55 = vadd.f32 %v3643_v17, %v8305_v0  ;;  %v3645_v9 = vpop.f32.mrb[55].mxu0 }
 0x612   : > { %v3868_v56 = vadd.f32 %v3642_v42, %v9408_v44  ;;  %v3646_v63 = vadd.f32 %v3645_v9, %v8305_v0 }
 0x613   : > { %v3899_v3 = vmax.f32 %v3867_v8, 0.0  ;;  %v3883_v45 = vadd.f32 %v3644_v55, %v9410_v36 }
 0x614   : > { %v3900_v1 = vmax.f32 %v3868_v56, 0.0  ;;  %v3884_v11 = vadd.f32 %v3646_v63, %v9412_v50  ;;  %v4983_v63 = vmov 1934713408   ;;  %v9416_v50 = vmax.f32 %v9415_v6, 0.0 }
 0x615   : > { %v3927_v30 = vcombine.low %v3895_v20, %v3899_v3  ;;  %v3928_v15 = vcombine.high %v3895_v20, %v3899_v3  ;;  %v3915_v51 = vmax.f32 %v3883_v45, 0.0  ;;  %v3994_v20 = vunpack.c.l.s4 %v4983_v63 }
 0x616   : > { %v4199_v2 = vcombine.low %v3896_v22, %v3900_v1  ;;  %v4200_v39 = vcombine.high %v3896_v22, %v3900_v1  ;;  %v3916_v59 = vmax.f32 %v3884_v11, 0.0  ;;  %v3771_v3 = vadd.f32 %v8336_v25, %v8302_v16 }
 0x617   : > { %v3935_v52 = vrot.slane %v3927_v30, %v8344_v35  ;;  %v8389_v12 = vrot.slane %v3928_v15, %v8344_v35  ;;  %v4063_v54 = vcombine.low %v3911_v37, %v3915_v51  ;;  %v4064_v10 = vcombine.high %v3911_v37, %v3915_v51  ;;  %v9417_v37 = vld [vmem:[#allocation130_spill] sm:$0xff] }
 0x618   : > { %v4207_v28 = vrot.slane %v4199_v2, %v8344_v35  ;;  %v8393_v53 = vrot.slane %v4200_v39, %v8344_v35  ;;  %v4335_v32 = vcombine.low %v3912_v57, %v3916_v59  ;;  %v4336_v43 = vcombine.high %v3912_v57, %v3916_v59 }
 0x619   : > { %v3991_v47 = vcombine.low %v3935_v52, %v8353_v23  ;;  %v3992_v33 = vcombine.high %v3935_v52, %v8353_v23  ;;  %v4007_v4 = vcombine.low %v8389_v12, %v8356_v41  ;;  %v4008_v27 = vcombine.high %v8389_v12, %v8356_v41 }
 0x61a   : > { %v4263_v42 = vcombine.low %v4207_v28, %v8362_v24  ;;  %v4264_v17 = vcombine.high %v4207_v28, %v8362_v24  ;;  %v4279_v31 = vcombine.low %v8393_v53, %v8370_v38  ;;  %v4280_v7 = vcombine.high %v8393_v53, %v8370_v38 }
 0x61b   : > { %v4071_v40 = vrot.slane %v4063_v54, %v8344_v35  ;;  %v4078_v23 = vrot.slane %v4064_v10, %v8344_v35  ;;  %v4343_v29 = vrot.slane %v4335_v32, %v8344_v35  ;;  %v8411_v34 = vrot.slane %v4336_v43, %v8344_v35  ;;  %v9421_v32 = vld [vmem:[#allocation145_spill] sm:$0xff] }
 0x61c   : > { %v4359_v41 = vrot.slane %v8330_v19, %v8344_v35  ;;  %v8417_v24 = vrot.slane %v8332_v13, %v8344_v35  ;;  %v3995_v36 = vunpack.c.0.s8 %v3994_v20  ;;  %v3775_v45 = vadd.f32 %v8340_v46, %v8305_v0 }
 0x61d   : > { %v4127_v8 = vcombine.low %v4071_v40, %v8378_v61  ;;  %v4128_v55 = vcombine.high %v4071_v40, %v8378_v61  ;;  %v4143_v9 = vcombine.low %v4078_v23, %v8383_v60  ;;  %v4144_v38 = vcombine.high %v4078_v23, %v8383_v60  ;;  %v9413_v60 = vld [vmem:[#allocation128_spill] sm:$0xff] }
 0x61e   : > { %v4399_v49 = vcombine.low %v4343_v29, %v4359_v41  ;;  %v4400_v18 = vcombine.high %v4343_v29, %v4359_v41  ;;  %v4415_v62 = vcombine.low %v8411_v34, %v8417_v24  ;;  %v4416_v19 = vcombine.high %v8411_v34, %v8417_v24  ;;  %v9423_v23 = vld [vmem:[#allocation144_spill] sm:$0xff] }
 0x61f   : > { %v3769_v61 = vadd.f32 %v8334_v26, %v8302_v16  ;;  %v9414_v22 = vmax.f32 %v9413_v60, 0.0  ;;  %v8441_v11 = vadd.f32 %v3771_v3, %v9416_v50  ;;  %v9418_v26 = vmax.f32 %v9417_v37, 0.0 }
 0x620   : > { %v8448_v25 = vsub.s32 %v3995_v36, %v9396_v21  ;;  %v9420_v15 = vmax.f32 %v9419_v48, 0.0  ;;  %v9422_v43 = vmax.f32 %v9421_v32, 0.0  ;;  %v9424_v29 = vmax.f32 %v9423_v23, 0.0 }
 0x621   : > { %v8437_v1 = vadd.f32 %v3769_v61, %v9414_v22  ;;  %v8445_v30 = vadd.f32 %v3773_v58, %v9418_v26  ;;  %v3906_v52 = vmax.f32 %v8441_v11, 0.0 }
 0x622   : > { %v3725_v5 = vpop.f32.mrb[56].mxu0  ;;  %v8452_v51 = vadd.f32 %v3775_v45, %v9420_v15  ;;  %v8463_v10 = vrot.slane %v3991_v47, %v8448_v25  ;;  %v8466_v28 = vrot.slane %v4263_v42, %v8448_v25  ;;  %v8469_v53 = vrot.slane %v3992_v33, %v8448_v25  ;;  %v9425_v47 = vld [vmem:[#allocation146_spill] sm:$0xff]  ;;  %v9427_v42 = vld [vmem:[#allocation147_spill] sm:$0xff]  ;;  %v9431_v15 = vld [vmem:[#allocation137_spill] sm:$0xff] }
 0x623   : > { %v3727_v44 = vpop.f32.mrb[57].mxu0  ;;  %v3726_v46 = vadd.f32 %v3725_v5, %v8302_v16  ;;  %v3905_v59 = vmax.f32 %v8437_v1, 0.0  ;;  %v3921_v12 = vmax.f32 %v8445_v30, 0.0  ;;  %v8476_v5 = vrot.slane %v4264_v17, %v8448_v25 }
 0x624   : > { %v3729_v13 = vpop.f32.mrb[58].mxu0  ;;  %v3728_v57 = vadd.f32 %v3727_v44, %v8302_v16  ;;  %v3922_v54 = vmax.f32 %v8452_v51, 0.0  ;;  %v8479_v44 = vrot.slane %v4007_v4, %v8448_v25  ;;  %v9428_v63 = vmax.f32 %v9427_v42, 0.0 }
 0x625   : > { %v3731_v56 = vpop.f32.mrb[59].mxu0  ;;  %v3730_v2 = vadd.f32 %v3729_v13, %v8305_v0  ;;  %v3871_v40 = vadd.f32 %v3726_v46, %v9422_v43  ;;  %v9426_v13 = vmax.f32 %v9425_v47, 0.0  ;;  %v8490_v20 = vrot.slane %v4279_v31, %v8448_v25 }
 0x626   : > { %v3732_v39 = vadd.f32 %v3731_v56, %v8305_v0  ;;  %v3872_v41 = vadd.f32 %v3728_v57, %v9424_v29  ;;  %v8493_v61 = vrot.slane %v4127_v8, %v8448_v25  ;;  %v8496_v17 = vrot.slane %v4399_v49, %v8448_v25 }
 0x627   : > { %v8483_v56 = vadd.f32 %v3730_v2, %v9426_v13  ;;  %v8499_v4 = vrot.slane %v4128_v55, %v8448_v25  ;;  %v8502_v3 = vrot.slane %v4400_v18, %v8448_v25  ;;  %v8505_v58 = vrot.slane %v4008_v27, %v8448_v25 }
 0x628   : > { %v8487_v33 = vadd.f32 %v3732_v39, %v9428_v63  ;;  %v8508_v31 = vrot.slane %v4280_v7, %v8448_v25  ;;  %v8511_v8 = vrot.slane %v4143_v9, %v8448_v25  ;;  %v8514_v49 = vrot.slane %v4415_v62, %v8448_v25 }
 0x629   : > { %v8517_v55 = vrot.slane %v4144_v38, %v8448_v25  ;;  %v3903_v60 = vmax.f32 %v3871_v40, 0.0  ;;  %v3904_v18 = vmax.f32 %v3872_v41, 0.0  ;;  %v3919_v7 = vmax.f32 %v8483_v56, 0.0  ;;  %v9429_v38 = vld [vmem:[#allocation149_spill] sm:$0xff]  ;;  %v9433_v40 = vld [vmem:[#allocation148_spill] sm:$0xff] }
 0x62a   : > { %v3920_v50 = vmax.f32 %v8487_v33, 0.0  ;;  %v9430_v26 = vmax.f32 %v9429_v38, 0.0  ;;  %v9432_v46 = vmax.f32 %v9431_v15, 0.0  ;;  %v9434_v23 = vmax.f32 %v9433_v40, 0.0  ;;  %v9435_v41 = vld [vmem:[#allocation136_spill] sm:$0xff]  ;;  %v9437_v33 = vld [vmem:[#allocation150_spill] sm:$0xff] }
 0x62b   : > { %v9436_v47 = vmax.f32 %v9435_v41, 0.0 }
 0x637   : > { %v3811_v36 = vpop.f32.mrb[60].mxu0  ;;  %v3854_v45 = vpop.f32.mrb[60].mxu1 }
 0x638   : > { %v3812_v22 = vadd.f32 %v3811_v36, %v8302_v16  ;;  %v3855_v27 = vadd.f32 %v3854_v45, %v8302_v16  ;;  %v3813_v1 = vpop.f32.mrb[61].mxu0  ;;  %v3856_v6 = vpop.f32.mrb[61].mxu1  ;;  %v9438_v36 = vmax.f32 %v9437_v33, 0.0 }
 0x639   : > { %v3814_v9 = vadd.f32 %v3813_v1, %v8302_v16  ;;  %v3857_v62 = vadd.f32 %v3856_v6, %v8302_v16  ;;  %v3815_v11 = vpop.f32.mrb[62].mxu0  ;;  %v3858_v37 = vpop.f32.mrb[62].mxu1 }
 0x63a   : > { %v3875_v48 = vadd.f32 %v3812_v22, %v9430_v26  ;;  %v3877_v57 = vadd.f32 %v3855_v27, %v9432_v46  ;;  %v3816_v2 = vadd.f32 %v3815_v11, %v8305_v0  ;;  %v3859_v39 = vadd.f32 %v3858_v37, %v8305_v0  ;;  %v3817_v32 = vpop.f32.mrb[63].mxu0  ;;  %v3860_v43 = vpop.f32.mrb[63].mxu1  ;;  %v9439_v22 = vld [vmem:[#allocation138_spill] sm:$0xff]  ;;  %v9441_v37 = vld [vmem:[#allocation151_spill] sm:$0xff] }
 0x63b   : > { %v3876_v29 = vadd.f32 %v3814_v9, %v9434_v23  ;;  %v3878_v16 = vadd.f32 %v3857_v62, %v9436_v47  ;;  %v3818_v13 = vadd.f32 %v3817_v32, %v8305_v0  ;;  %v3861_v56 = vadd.f32 %v3860_v43, %v8305_v0  ;;  %v9443_v26 = vld [vmem:[#allocation139_spill] sm:$0xff] }
 0x63c   : > { %v3907_v42 = vmax.f32 %v3875_v48, 0.0  ;;  %v3909_v63 = vmax.f32 %v3877_v57, 0.0  ;;  %v3891_v45 = vadd.f32 %v3816_v2, %v9438_v36  ;;  %v9440_v27 = vmax.f32 %v9439_v22, 0.0 }
 0x63d   : > { %v3908_v6 = vmax.f32 %v3876_v29, 0.0  ;;  %v3910_v11 = vmax.f32 %v3878_v16, 0.0  ;;  %v9442_v38 = vmax.f32 %v9441_v37, 0.0  ;;  %v9444_v15 = vmax.f32 %v9443_v26, 0.0 }
 0x63e   : > { %v3893_v1 = vadd.f32 %v3859_v39, %v9440_v27  ;;  %v3959_v46 = vcombine.low %v3903_v60, %v3907_v42  ;;  %v3960_v32 = vcombine.high %v3903_v60, %v3907_v42  ;;  %v3975_v40 = vcombine.low %v3905_v59, %v3909_v63 }
 0x63f   : > { %v3892_v9 = vadd.f32 %v3818_v13, %v9442_v38  ;;  %v3894_v62 = vadd.f32 %v3861_v56, %v9444_v15  ;;  %v3976_v0 = vcombine.high %v3905_v59, %v3909_v63  ;;  %v4231_v48 = vcombine.low %v3904_v18, %v3908_v6 }
 0x640   : > { %v4232_v57 = vcombine.high %v3904_v18, %v3908_v6  ;;  %v4247_v43 = vcombine.low %v3906_v52, %v3910_v11  ;;  %v4248_v23 = vcombine.high %v3906_v52, %v3910_v11  ;;  %v3967_v2 = vrot.slane %v3959_v46, %v8344_v35 }
 0x641   : > { %v8547_v39 = vrot.slane %v3960_v32, %v8344_v35  ;;  %v3983_v29 = vrot.slane %v3975_v40, %v8344_v35  ;;  %v8551_v41 = vrot.slane %v3976_v0, %v8344_v35  ;;  %v4239_v47 = vrot.slane %v4231_v48, %v8344_v35 }
 0x642   : > { %v8555_v60 = vrot.slane %v4232_v57, %v8344_v35  ;;  %v4255_v59 = vrot.slane %v4247_v43, %v8344_v35  ;;  %v8559_v18 = vrot.slane %v4248_v23, %v8344_v35  ;;  %v3923_v22 = vmax.f32 %v3891_v45, 0.0 }
 0x643   : > { %v4023_v52 = vcombine.low %v3967_v2, %v3983_v29  ;;  %v4024_v16 = vcombine.high %v3967_v2, %v3983_v29  ;;  %v4039_v13 = vcombine.low %v8547_v39, %v8551_v41  ;;  %v4040_v56 = vcombine.high %v8547_v39, %v8551_v41 }
 0x644   : > { %v4295_v42 = vcombine.low %v4239_v47, %v4255_v59  ;;  %v4296_v63 = vcombine.high %v4239_v47, %v4255_v59  ;;  %v4311_v33 = vcombine.low %v8555_v60, %v8559_v18  ;;  %v4312_v36 = vcombine.high %v8555_v60, %v8559_v18 }
 0x645   : > { %v3925_v27 = vmax.f32 %v3893_v1, 0.0  ;;  %v3924_v6 = vmax.f32 %v3892_v9, 0.0  ;;  %v3926_v11 = vmax.f32 %v3894_v62, 0.0  ;;  %v4031_v37 = vrot.slane %v4023_v52, %v8448_v25 }
 0x646   : > { %v4303_v38 = vrot.slane %v4295_v42, %v8448_v25  ;;  %v4038_v26 = vrot.slane %v4024_v16, %v8448_v25  ;;  %v4310_v15 = vrot.slane %v4296_v63, %v8448_v25  ;;  %v4095_v46 = vcombine.low %v3919_v7, %v3923_v22 }
 0x647   : > { %v4096_v32 = vcombine.high %v3919_v7, %v3923_v22  ;;  %v4111_v40 = vcombine.low %v3921_v12, %v3925_v27  ;;  %v4112_v0 = vcombine.high %v3921_v12, %v3925_v27  ;;  %v4367_v45 = vcombine.low %v3920_v50, %v3924_v6 }
 0x648   : > { %v4368_v1 = vcombine.high %v3920_v50, %v3924_v6  ;;  %v4383_v9 = vcombine.low %v3922_v54, %v3926_v11  ;;  %v4384_v62 = vcombine.high %v3922_v54, %v3926_v11  ;;  %v4103_v48 = vrot.slane %v4095_v46, %v8344_v35 }
 0x649   : > { %v8583_v57 = vrot.slane %v4096_v32, %v8344_v35  ;;  %v4119_v7 = vrot.slane %v4111_v40, %v8344_v35  ;;  %v8587_v43 = vrot.slane %v4112_v0, %v8344_v35  ;;  %v4375_v30 = vrot.slane %v4367_v45, %v8344_v35 }
 0x64a   : > { %v8591_v12 = vrot.slane %v4368_v1, %v8344_v35  ;;  %v4391_v50 = vrot.slane %v4383_v9, %v8344_v35  ;;  %v8595_v51 = vrot.slane %v4384_v62, %v8344_v35  ;;  %v4056_v52 = vcombine.high %v8463_v10, %v4031_v37 }
 0x64b   : > { %v4159_v54 = vcombine.low %v4103_v48, %v4119_v7  ;;  %v4160_v23 = vcombine.high %v4103_v48, %v4119_v7  ;;  %v4175_v2 = vcombine.low %v8583_v57, %v8587_v43  ;;  %v4176_v29 = vcombine.high %v8583_v57, %v8587_v43 }
 0x64c   : > { %v4431_v47 = vcombine.low %v4375_v30, %v4391_v50  ;;  %v4432_v60 = vcombine.high %v4375_v30, %v4391_v50  ;;  %v4447_v59 = vcombine.low %v8591_v12, %v8595_v51  ;;  %v4448_v18 = vcombine.high %v8591_v12, %v8595_v51 }
 0x64d   : > { %v4328_v35 = vcombine.high %v8466_v28, %v4303_v38  ;;  %v4055_v16 = vcombine.low %v8463_v10, %v4031_v37  ;;  %v4327_v42 = vcombine.low %v8466_v28, %v4303_v38  ;;  %v4057_v63 = vcombine.low %v8469_v53, %v4038_v26 }
 0x64e   : > { %v4329_v22 = vcombine.low %v8476_v5, %v4310_v15  ;;  %v4058_v27 = vcombine.high %v8469_v53, %v4038_v26  ;;  %v4330_v6 = vcombine.high %v8476_v5, %v4310_v15  ;;  %v4047_v32 = vrot.slane %v4039_v13, %v8448_v25 }
 0x64f   : > { %v4474_v11 = vadd.f32 %v4328_v35, %v4056_v52  ;;  %v4471_v46 = vadd.f32 %v4327_v42, %v4055_v16  ;;  %v4319_v40 = vrot.slane %v4311_v33, %v8448_v25  ;;  %v4167_v10 = vrot.slane %v4159_v54, %v8448_v25 }
 0x650   : > { %v4477_v0 = vadd.f32 %v4329_v22, %v4057_v63  ;;  %v4480_v45 = vadd.f32 %v4330_v6, %v4058_v27  ;;  %v4439_v28 = vrot.slane %v4431_v47, %v8448_v25  ;;  %v4059_v37 = vcombine.low %v8479_v44, %v4047_v32 }
 0x651   : > { %4475 = vadd.xlane.f32.xlu0 %v4474_v11  ;;  %4472 = vadd.xlane.f32.xlu1 %v4471_v46  ;;  %v4331_v53 = vcombine.low %v8490_v20, %v4319_v40  ;;  %v4060_v5 = vcombine.high %v8479_v44, %v4047_v32  ;;  %v4192_v38 = vcombine.high %v8493_v61, %v4167_v10 }
 0x652   : > { %v4464_v13 = vcombine.high %v8496_v17, %v4439_v28  ;;  %v4332_v33 = vcombine.high %v8490_v20, %v4319_v40  ;;  %v4174_v26 = vrot.slane %v4160_v23, %v8448_v25  ;;  %v4446_v1 = vrot.slane %v4432_v60, %v8448_v25 }
 0x653   : > { %v4483_v15 = vadd.f32 %v4331_v53, %v4059_v37  ;;  %v4054_v9 = vrot.slane %v4040_v56, %v8448_v25  ;;  %v4326_v62 = vrot.slane %v4312_v36, %v8448_v25  ;;  %v4191_v39 = vcombine.low %v8493_v61, %v4167_v10 }
 0x654   : > { %v4498_v48 = vadd.f32 %v4464_v13, %v4192_v38  ;;  %v4486_v44 = vadd.f32 %v4332_v33, %v4060_v5  ;;  %v4193_v57 = vcombine.low %v8499_v4, %v4174_v26  ;;  %v4194_v7 = vcombine.high %v8499_v4, %v4174_v26 }
 0x655   : > { %4478 = vadd.xlane.f32.xlu0 %v4477_v0  ;;  %4481 = vadd.xlane.f32.xlu1 %v4480_v45  ;;  %v4465_v20 = vcombine.low %v8502_v3, %v4446_v1  ;;  %v4061_v43 = vcombine.low %v8505_v58, %v4054_v9  ;;  %v4333_v30 = vcombine.low %v8508_v31, %v4326_v62 }
 0x656   : > { %v4466_v12 = vcombine.high %v8502_v3, %v4446_v1  ;;  %v4463_v41 = vcombine.low %v8496_v17, %v4439_v28  ;;  %v4183_v56 = vrot.slane %v4175_v2, %v8448_v25  ;;  %v4455_v4 = vrot.slane %v4447_v59, %v8448_v25 }
 0x657   : > { %v4501_v36 = vadd.f32 %v4465_v20, %v4193_v57  ;;  %v4489_v50 = vadd.f32 %v4333_v30, %v4061_v43  ;;  %v4062_v51 = vcombine.high %v8505_v58, %v4054_v9  ;;  %v4334_v60 = vcombine.high %v8508_v31, %v4326_v62 }
 0x658   : > { %v4504_v54 = vadd.f32 %v4466_v12, %v4194_v7  ;;  %v4495_v23 = vadd.f32 %v4463_v41, %v4191_v39  ;;  %v4195_v47 = vcombine.low %v8511_v8, %v4183_v56  ;;  %v4467_v61 = vcombine.low %v8514_v49, %v4455_v4 }
 0x659   : > { %4484 = vadd.xlane.f32.xlu0 %v4483_v15  ;;  %4499 = vadd.xlane.f32.xlu1 %v4498_v48  ;;  %v4196_v17 = vcombine.high %v8511_v8, %v4183_v56  ;;  %v4468_v3 = vcombine.high %v8514_v49, %v4455_v4  ;;  %v4492_v2 = vadd.f32 %v4334_v60, %v4062_v51 }
 0x65a   : > { %v4190_v52 = vrot.slane %v4176_v29, %v8448_v25  ;;  %v4430_v58 = vrot.slane %v4416_v19, %v8448_v25  ;;  %v4462_v59 = vrot.slane %v4448_v18, %v8448_v25  ;;  %v4507_v35 = vadd.f32 %v4467_v61, %v4195_v47 }
 0x65b   : > { %v4510_v31 = vadd.f32 %v4468_v3, %v4196_v17 }
 0x65c   : > { %v4197_v16 = vcombine.low %v8517_v55, %v4190_v52  ;;  %v4469_v42 = vcombine.low %v4430_v58, %v4462_v59  ;;  %v4198_v63 = vcombine.high %v8517_v55, %v4190_v52  ;;  %v4470_v8 = vcombine.high %v4430_v58, %v4462_v59 }
 0x65d   : > { %4487 = vadd.xlane.f32.xlu0 %v4486_v44  ;;  %4502 = vadd.xlane.f32.xlu1 %v4501_v36  ;;  %v8656_v55 = vsub.s32 %v5249_v14, %v9396_v21 }
 0x65e   : > { %v4513_v49 = vadd.f32 %v4469_v42, %v4197_v16  ;;  %v4516_v22 = vadd.f32 %v4470_v8, %v4198_v63 }
 0x661   : > { %4490 = vadd.xlane.f32.xlu0 %v4489_v50  ;;  %4505 = vadd.xlane.f32.xlu1 %v4504_v54 }
 0x665   : > { %4496 = vadd.xlane.f32.xlu0 %v4495_v23  ;;  %4508 = vadd.xlane.f32.xlu1 %v4507_v35 }
 0x669   : > { %4493 = vadd.xlane.f32.xlu0 %v4492_v2  ;;  %4511 = vadd.xlane.f32.xlu1 %v4510_v31 }
 0x66d   : > { %4514 = vadd.xlane.f32.xlu0 %v4513_v49  ;;  %4517 = vadd.xlane.f32.xlu1 %v4516_v22 }
 0x6de   : > { %v4476_v34 = vpop.xlane.xlu0 %4475  ;;  %v4473_v24 = vpop.xlane.xlu1 %4472 }
 0x6df   : > { %v4520_v27 = vmul.f32 0.00390625, %v4476_v34  ;;  %v4519_v6 = vmul.f32 0.00390625, %v4473_v24 }
 0x6e1   : > { %v4558_v40 = vrot.slane %v4520_v27, %v8656_v55  ;;  %v4554_v0 = vrot.slane %v4519_v6, %v8656_v55 }
 0x6e2   : > { %v4479_v19 = vpop.xlane.xlu0 %4478  ;;  %v4482_v25 = vpop.xlane.xlu1 %4481 }
 0x6e3   : > { %v4521_v32 = vmul.f32 0.00390625, %v4479_v19  ;;  %v4522_v45 = vmul.f32 0.00390625, %v4482_v25  ;;  %v4616_v21 = vsel %vm4615_vm12, %v4558_v40, %v4554_v0 }
 0x6e5   : > { %v4562_v37 = vrot.slane %v4521_v32, %v8656_v55  ;;  %v4566_v38 = vrot.slane %v4522_v45, %v8656_v55 }
 0x6e6   : > { %v4485_v29 = vpop.xlane.xlu0 %4484  ;;  %v4500_v18 = vpop.xlane.xlu1 %4499 }
 0x6e7   : > { %v4523_v53 = vmul.f32 0.00390625, %v4485_v29  ;;  %v4528_v5 = vmul.f32 0.00390625, %v4500_v18  ;;  %v4618_v1 = vsel %vm4617_vm13, %v4562_v37, %v4616_v21 }
 0x6e8   : > { %v4620_v43 = vsel %vm4619_vm14, %v4566_v38, %v4618_v1 }
 0x6e9   : > { %v4570_v48 = vrot.slane %v4523_v53, %v8656_v55  ;;  %v4590_v44 = vrot.slane %v4528_v5, %v8656_v55 }
 0x6ea   : > { %v4488_v11 = vpop.xlane.xlu0 %4487  ;;  %v4503_v46 = vpop.xlane.xlu1 %4502 }
 0x6eb   : > { %v4524_v14 = vmul.f32 0.00390625, %v4488_v11  ;;  %v4529_v13 = vmul.f32 0.00390625, %v4503_v46  ;;  %v4622_v51 = vsel %vm4621_vm15, %v4570_v48, %v4620_v43 }
 0x6ed   : > { %v4574_v57 = vrot.slane %v4524_v14, %v8656_v55  ;;  %v4594_v30 = vrot.slane %v4529_v13, %v8656_v55 }
 0x6ee   : > { %v4491_v10 = vpop.xlane.xlu0 %4490  ;;  %v4506_v28 = vpop.xlane.xlu1 %4505 }
 0x6ef   : > { %v4525_v33 = vmul.f32 0.00390625, %v4491_v10  ;;  %v4530_v9 = vmul.f32 0.00390625, %v4506_v28  ;;  %v4624_v23 = vsel %vm4623_vm0, %v4574_v57, %v4622_v51 }
 0x6f1   : > { %v4578_v12 = vrot.slane %v4525_v33, %v8656_v55  ;;  %v4598_v56 = vrot.slane %v4530_v9, %v8656_v55 }
 0x6f2   : > { %v4497_v26 = vpop.xlane.xlu0 %4496  ;;  %v4509_v15 = vpop.xlane.xlu1 %4508 }
 0x6f3   : > { %v4527_v62 = vmul.f32 0.00390625, %v4497_v26  ;;  %v4531_v20 = vmul.f32 0.00390625, %v4509_v15  ;;  %v4626_v52 = vsel %vm4625_vm1, %v4578_v12, %v4624_v23 }
 0x6f5   : > { %v4586_v7 = vrot.slane %v4527_v62, %v8656_v55  ;;  %v4602_v60 = vrot.slane %v4531_v20, %v8656_v55 }
 0x6f6   : > { %v4494_v39 = vpop.xlane.xlu0 %4493  ;;  %v4512_v41 = vpop.xlane.xlu1 %4511 }
 0x6f7   : > { %v4629_v36 = vsel %vm4615_vm12, %v4590_v44, %v4586_v7  ;;  %v4526_v50 = vmul.f32 0.00390625, %v4494_v39  ;;  %v4532_v4 = vmul.f32 0.00390625, %v4512_v41 }
 0x6f8   : > { %v4630_v54 = vsel %vm4617_vm13, %v4594_v30, %v4629_v36 }
 0x6f9   : > { %v4631_v47 = vsel %vm4619_vm14, %v4598_v56, %v4630_v54  ;;  %v4582_v61 = vrot.slane %v4526_v50, %v8656_v55  ;;  %v4606_v17 = vrot.slane %v4532_v4, %v8656_v55 }
 0x6fa   : > { %v4515_v3 = vpop.xlane.xlu0 %4514  ;;  %v4518_v2 = vpop.xlane.xlu1 %4517  ;;  %v4632_v58 = vsel %vm4621_vm15, %v4602_v60, %v4631_v47 }
 0x6fb   : > { %v4533_v59 = vmul.f32 0.00390625, %v4515_v3  ;;  %v4534_v35 = vmul.f32 0.00390625, %v4518_v2  ;;  %v4628_v31 = vsel %vm4627_vm2, %v4582_v61, %v4626_v52  ;;  %v4633_v63 = vsel %vm4623_vm0, %v4606_v17, %v4632_v58 }
 0x6fc   : > { %4638 = vxpose.xlu0.b32.start [1/2] (short) (narrow) %v4628_v31, 8 }
 0x6fd   : > { %v4610_v16 = vrot.slane %v4533_v59, %v8656_v55  ;;  %v4614_v42 = vrot.slane %v4534_v35, %v8656_v55 }
 0x6ff   : > { %v4634_v8 = vsel %vm4625_vm1, %v4610_v16, %v4633_v63 }
 0x700   : > { %v4635_v49 = vsel %vm4627_vm2, %v4614_v42, %v4634_v8 }
 0x701   : > { %4639 = vxpose.xlu0.b32.end [2/2] (short) (narrow) %v4635_v49, 8 }
 0x77d   : > { %v4654_v22 = vpop.trf.xlu0 }
 0x77e   : > { %4670 = vst.msk [vmem:[%s353_s29] sm:$0xff] %vm2074_vm10, %v4654_v22 }
 0x77f   : > { %4922 = shalt.err (!%p4919_p3)
}
 0x780   : > { %s4923_s30 = scalar_lea.hbm %s8693_s25, 128  ;;  %s4927_s29 = scalar_lea.hbm %s8746_s10, 256 }
 0x781   : > { %p4924_p4 = scmp.ne.s32.totalorder %s8693_s25, %s4923_s30  ;;  %p4928_p9 = scmp.lt.u32.totalorder %s8693_s25, %s8746_s10 }
 0x782   : > { %p4929_p10 = scmp.lt.u32.totalorder %s4927_s29, %s4923_s30  ;;  %p4931_p12 = scmp.lt.u32.totalorder %s4923_s30, %s8693_s25 }
 0x783   : > { %p4925_p7 = pnand %p4924_p4, %p5078_p5 }
 0x784   : > { %p4930_p11 = por %p4929_p10, %p4928_p9 }
 0x785   : > { %p4926_p8 = pneg %p4925_p7 }
 0x786   : > { %p4932_p13 = por %p4931_p12, %p4930_p11 }
 0x788   : > { %p4933_p0 = pnand %p4932_p13, %p4926_p8 }
 0x78a   : > { %4936 = shalt.err (!%p4933_p0)
}
 0x78b   : > { %4829 = dma.vmem_to_hbm [thread:$0]  (%p5078_p5), %s8695_s21, 128, %s8693_s25, %s4672_s0  }
 0x78c PF: > { %p4835_p1 = scmp.ge.s32.totalorder %s4971_s16, 2  ;;  %s4697_s12 = sand.u32 1, %s4959_s13  }
 0x78d   : > { %s4698_s17 = scalar_lea.sflag [#allocation3], %s4697_s12 }
 0x78e   : > { %p4832_p2 = pnand %p4835_p1, %p5082_p6 }
 0x790   : > { %4954 = dma.done.wait (!%p4832_p2), %s4698_s17, 128  }
 0x791   : > { %4956 = vsyncadd (!%p4832_p2), %s4698_s17, 4294967168  ;;  %p20_p3 = scmp.ge.s32.totalorder %s5065_s19, 4   ;;  %s9445_s13 = smov %s4963_s14 }
 0x792   : > { %s9446_s14 = smov %s4967_s15  ;;  %s9447_s15 = smov %s5076_s22 }
 0x793   : > { %s9448_s16 = smov %s5065_s19  ;;  %22 = sbr.rel (!%p20_p3) target bundleno = 5 (0x5), region = 95 }
 0x79a   :  { %4703 = vsyncpa [#allocation3], 1 }
 0x79b   :  { %4705 = vsyncpa [#allocation3 + $0x1], 1 }

</bundles_post_ra>
